<compile_context>
chip_gen: v6e
topology: v6e:2x2x1
jax: 0.10.0
libtpu: 0.0.40
codegen_flags: <defaults>
</compile_context>

<pallas_src>
import functools

import jax
import jax.numpy as jnp
import numpy as np
from jax.experimental import pallas as pl
from jax.experimental.pallas import tpu as pltpu

LN_EPS = 1e-5


def _cdiv(a, b):
    return -(-a // b)


def _round_up(a, b):
    return _cdiv(a, b) * b


def _feature_perm(channels, width):
    # width-major layout index g = w*C + c  <->  torch layout f = c*width + w
    return np.arange(channels * width).reshape(channels, width).T.reshape(-1)


# ------------------------------- kernel --------------------------------------


def _layer_norm_rows(y, gamma, beta):
    # LayerNorm over the feature (lane) dim, biased variance, eps=1e-5 (f32).
    mean = jnp.mean(y, axis=-1, keepdims=True)
    var = jnp.mean(jnp.square(y - mean), axis=-1, keepdims=True)
    return (y - mean) * jax.lax.rsqrt(var + LN_EPS) * gamma + beta


def tds_block_kernel(C, width, K, N, TR, HALO,
                     xb_ref, xh_ref, wc_ref, bc_ref, g1_ref, be1_ref,
                     w1_ref, b1_ref, w2_ref, b2_ref, g2_ref, be2_ref,
                     o_ref, acc_ref):
    """Fused TDSConv2dBlock + TDSFullyConnectedBlock on one row tile.

    xb_ref : (TR,   F) bf16  body rows [i*TR, (i+1)*TR) of the input
    xh_ref : (HALO, F) bf16  halo rows immediately after the body
    wc_ref : (K*C,  C) bf16  conv weight, wc[k*C+ci, co] = W[co, ci, k]
    bc/g*/be*/b* refs : (1, F) f32 biases / LN params (width-major layout)
    w1_ref, w2_ref : (F, F) bf16 FC weights, stored (in, out)
    o_ref  : (TR, F) bf16 output
    acc_ref: (TR, F) f32 VMEM scratch (conv accumulator)

    Feature layout everywhere is width-major: g = w*C + c.
    All row offsets (k*N, HALO, TR-HALO) are multiples of 8 (N is padded).
    """
    # ---- temporal conv: per-tap matmuls accumulated into the f32 scratch ----
    # Tap 0 covers the full body tile -> initializes the accumulator.
    w0 = wc_ref[0:C, :]
    for w in range(width):
        lo = w * C
        acc_ref[:, lo:lo + C] = jnp.dot(
            xb_ref[:, lo:lo + C], w0, preferred_element_type=jnp.float32)

    # Taps 1..K-1: rows [k*N, TR) come from the body, rows [TR, TR+k*N) from
    # the halo; split at the (sublane-aligned) boundary, no stitch copy.
    for k in range(1, K):
        off = k * N
        nb = TR - off  # body rows contributing at this tap
        wk = wc_ref[k * C:(k + 1) * C, :]
        for w in range(width):
            lo = w * C
            if nb > 0:
                acc_ref[0:nb, lo:lo + C] += jnp.dot(
                    xb_ref[off:TR, lo:lo + C], wk,
                    preferred_element_type=jnp.float32)
            acc_ref[nb:TR, lo:lo + C] += jnp.dot(
                xh_ref[0:off, lo:lo + C], wk,
                preferred_element_type=jnp.float32)

    # ---- conv bias + ReLU + residual (in place, sublane-aligned splits) ----
    bc = bc_ref[0, :]
    nres = TR - HALO  # rows whose residual (input shifted by HALO) is in body
    if nres > 0:
        acc_ref[0:nres, :] = (jnp.maximum(acc_ref[0:nres, :] + bc, 0.0)
                              + xb_ref[HALO:TR, :].astype(jnp.float32))
    acc_ref[nres:TR, :] = (jnp.maximum(acc_ref[nres:TR, :] + bc, 0.0)
                           + xh_ref[0:HALO, :].astype(jnp.float32))

    y = _layer_norm_rows(acc_ref[...], g1_ref[0, :], be1_ref[0, :])  # f32

    # ---- fully connected block (fused) ----
    xfc = y.astype(jnp.bfloat16)
    h = jnp.dot(xfc, w1_ref[...], preferred_element_type=jnp.float32)
    h = jnp.maximum(h + b1_ref[0, :], 0.0).astype(jnp.bfloat16)
    z = jnp.dot(h, w2_ref[...], preferred_element_type=jnp.float32)
    z = z + b2_ref[0, :] + y  # residual folded into the LN input
    o_ref[...] = _layer_norm_rows(z, g2_ref[0, :], be2_ref[0, :]).astype(
        o_ref.dtype)


# ------------------------------- wrapper --------------------------------------


def _vmem_budget_bytes():
    """Generation-aware VMEM budget for the kernel (review items 6/7)."""
    cap = 128 * 1024 * 1024
    try:
        cap = int(getattr(pltpu.get_tpu_info(), "vmem_capacity_bytes", cap))
    except Exception:
        pass
    if cap <= 64 * 1024 * 1024:
        return 44 * 1024 * 1024       # v7x-class: 64 MiB physical, keep headroom
    return 96 * 1024 * 1024           # v5e / v6e: 128 MiB physical


def tds_block_fused(x2, valid_in, conv_w, conv_b, ln1_g, ln1_b, w1, b1, w2, b2,
                    ln2_g, ln2_b, *, n_pad, tr, vmem_limit):
    """One fused TDS block.

    x2       : (rows_in, F) bf16, width-major feature layout; rows_in is a
               multiple of `tr` and >= valid_in (pad rows are don't-care).
    valid_in : Python int, number of valid rows at the start of x2.
    Returns (out, valid_out) with out: (round_up(valid_out, tr), F) bf16.
    """
    rows_in, F = x2.shape
    C, _, K = conv_w.shape
    width = F // C
    HALO = (K - 1) * n_pad
    assert HALO > 0, "kernel_width must be >= 2"
    assert tr % HALO == 0 and rows_in % tr == 0
    valid_out = valid_in - HALO
    assert valid_out > 0, "sequence too short for this kernel_width"

    rows_out = _round_up(valid_out, tr)
    n_tiles = rows_out // tr
    halo_ratio = tr // HALO
    max_halo_block = rows_in // HALO - 1  # clamp: last tile never reads OOB

    # conv weight in im2col-friendly (K*C, C) form: wc[k*C+ci, co] = W[co,ci,k]
    wc = jnp.transpose(conv_w, (2, 1, 0)).reshape(K * C, C).astype(jnp.bfloat16)
    # conv bias in width-major layout: bc[w*C + co] = conv_b[co]
    bc = jnp.tile(conv_b, width)[None, :].astype(jnp.float32)

    kernel = functools.partial(tds_block_kernel, C, width, K, n_pad, tr, HALO)

    def halo_map(i):
        return (jnp.minimum((i + 1) * halo_ratio, max_halo_block), 0)

    resident = lambda shape: pl.BlockSpec(shape, lambda i: (0,) * len(shape))

    flops = 2 * rows_out * F * K * C + 4 * rows_out * F * F
    bytes_acc = 2 * F * (rows_out + n_tiles * HALO + rows_out) \
        + 2 * (K * C * C + 2 * F * F) + 4 * 8 * F

    out = pl.pallas_call(
        kernel,
        grid=(n_tiles,),
        in_specs=[
            pl.BlockSpec((tr, F), lambda i: (i, 0)),    # body rows
            pl.BlockSpec((HALO, F), halo_map),          # halo rows (clamped)
            resident((K * C, C)),   # conv weight (VMEM-resident)
            resident((1, F)),       # conv bias
            resident((1, F)),       # ln1 gamma
            resident((1, F)),       # ln1 beta
            resident((F, F)),       # fc w1 (resident)
            resident((1, F)),       # fc b1
            resident((F, F)),       # fc w2 (resident)
            resident((1, F)),       # fc b2
            resident((1, F)),       # ln2 gamma
            resident((1, F)),       # ln2 beta
        ],
        out_specs=pl.BlockSpec((tr, F), lambda i: (i, 0)),
        out_shape=jax.ShapeDtypeStruct((rows_out, F), jnp.bfloat16),
        scratch_shapes=[pltpu.VMEM((tr, F), jnp.float32)],
        compiler_params=pltpu.CompilerParams(
            dimension_semantics=("parallel",),
            vmem_limit_bytes=int(vmem_limit)),
        cost_estimate=pl.CostEstimate(
            flops=int(flops),
            transcendentals=int(2 * rows_out),
            bytes_accessed=int(bytes_acc)),
    )(x2, x2, wc, bc,
      ln1_g[None, :].astype(jnp.float32), ln1_b[None, :].astype(jnp.float32),
      w1.astype(jnp.bfloat16), b1[None, :].astype(jnp.float32),
      w2.astype(jnp.bfloat16), b2[None, :].astype(jnp.float32),
      ln2_g[None, :].astype(jnp.float32), ln2_b[None, :].astype(jnp.float32))
    return out, valid_out


def tds_conv_encoder(x, params, *, num_features, tile_rows=None):
    """x: (T, N, num_features) f32.  Returns (T_out, N, num_features) f32."""
    T, N, F = x.shape
    assert F == num_features
    K = params[0]["conv_w"].shape[-1]
    assert all(p["conv_w"].shape[-1] == K for p in params)
    n_blocks = len(params)
    T_out = T - n_blocks * (K - 1)
    assert T_out > 0

    # (review item 1) pad the batch so N is a sublane multiple.
    n_pad = _round_up(max(N, 1), 8)
    if n_pad != N:
        x = jnp.pad(x, ((0, 0), (0, n_pad - N), (0, 0)))
    HALO = (K - 1) * n_pad

    vmem_limit = _vmem_budget_bytes()
    if tile_rows is None:
        tile_rows = 1024 if vmem_limit > 48 * 1024 * 1024 else 512

    valid = T * n_pad
    valid_out0 = valid - HALO
    assert valid_out0 > 0
    mult = max(1, min(tile_rows // HALO, _cdiv(valid_out0, HALO)))
    # (review item 7) keep >= 2 grid tiles so both v7x TensorCores are fed.
    while mult > 1 and _cdiv(valid_out0, HALO * mult) < 2:
        mult -= 1
    TR = HALO * mult

    # Flatten to rows and pad ONCE to a multiple of TR (review item 5: rows
    # stay padded across blocks, no per-block HBM pad/slice round trip).
    h = x.reshape(T * n_pad, F).astype(jnp.bfloat16)
    rows0 = _round_up(valid, TR)
    if rows0 != valid:
        h = jnp.pad(h, ((0, rows0 - valid), (0, 0)))

    cur_perm = np.arange(F)
    for p in params:
        C = p["conv_w"].shape[0]
        width = F // C
        perm = _feature_perm(C, width)
        if not np.array_equal(perm, cur_perm):
            # re-permute activations into this block's width-major layout
            comp = np.argsort(cur_perm)[perm]
            h = h[:, comp]
            cur_perm = perm
        h, valid = tds_block_fused(
            h, valid,
            p["conv_w"], p["conv_b"],
            p["ln1_g"][perm], p["ln1_b"][perm],
            p["w1"][perm][:, perm], p["b1"][perm],
            p["w2"][perm][:, perm], p["b2"][perm],
            p["ln2_g"][perm], p["ln2_b"][perm],
            n_pad=n_pad, tr=TR, vmem_limit=vmem_limit)

    # single slice / un-permute / un-pad at the very end
    h = h[:valid]
    h = h[:, np.argsort(cur_perm)]
    out = h.astype(jnp.float32).reshape(T_out, n_pad, F)
    return out[:, :N, :]


# ----------------------------- parameter init --------------------------------


def init_params(key, num_features, block_channels, kernel_width):
    params = []
    for ch in block_channels:
        assert num_features % ch == 0
        key, k0, k1, k2, k3, k4, k5, k6, k7 = jax.random.split(key, 9)
        fan_conv = ch * kernel_width
        params.append(
            dict(
                conv_w=jax.random.normal(k0, (ch, ch, kernel_width), jnp.float32)
                * (1.0 / fan_conv) ** 0.5,
                conv_b=0.01 * jax.random.normal(k1, (ch,), jnp.float32),
                ln1_g=1.0 + 0.1 * jax.random.normal(k2, (num_features,), jnp.float32),
                ln1_b=0.05 * jax.random.normal(k3, (num_features,), jnp.float32),
                w1=jax.random.normal(k4, (num_features, num_features), jnp.float32)
                * (1.0 / num_features) ** 0.5,
                b1=0.01 * jax.random.normal(k5, (num_features,), jnp.float32),
                w2=jax.random.normal(k6, (num_features, num_features), jnp.float32)
                * (1.0 / num_features) ** 0.5,
                b2=0.01 * jax.random.normal(k7, (num_features,), jnp.float32),
                ln2_g=jnp.ones((num_features,), jnp.float32),
                ln2_b=jnp.zeros((num_features,), jnp.float32),
            )
        )
    return params


# ------------------------- pure-JAX reference (check) ------------------------


def _ref_layer_norm(x, g, b):
    mean = x.mean(-1, keepdims=True)
    var = ((x - mean) ** 2).mean(-1, keepdims=True)
    return (x - mean) / jnp.sqrt(var + LN_EPS) * g + b


def _ref_conv_block(x, conv_w, conv_b, g, b, channels, width):
    T, N, F = x.shape
    K = conv_w.shape[-1]
    T_out = T - K + 1
    x4 = jnp.transpose(x, (1, 2, 0)).reshape(N, channels, width, T)
    out = jnp.zeros((N, channels, width, T_out), x.dtype)
    for k in range(K):
        out = out + jnp.einsum("oc,ncwt->nowt", conv_w[:, :, k],
                               x4[:, :, :, k:k + T_out])
    out = out + conv_b[None, :, None, None]
    out = jnp.maximum(out, 0.0)
    out = jnp.moveaxis(out.reshape(N, F, T_out), -1, 0)
    out = out + x[K - 1:]
    return _ref_layer_norm(out, g, b)


def _ref_fc_block(x, w1, b1, w2, b2, g, b):
    h = jnp.maximum(x @ w1 + b1, 0.0)
    y = h @ w2 + b2 + x
    return _ref_layer_norm(y, g, b)


def _ref_encoder(x, params, *, num_features):
    for p in params:
        channels = p["conv_w"].shape[0]
        width = num_features // channels
        x = _ref_conv_block(x, p["conv_w"], p["conv_b"], p["ln1_g"], p["ln1_b"],
                            channels, width)
        x = _ref_fc_block(x, p["w1"], p["b1"], p["w2"], p["b2"],
                          p["ln2_g"], p["ln2_b"])
    return x


# ---------------------------------- main --------------------------------------

if __name__ == "__main__":
    T, N = 32, 2
    num_features = 32
    block_channels = (4, 4)
    kernel_width = 4

    key = jax.random.PRNGKey(0)
    key, kx = jax.random.split(key)
    x = jax.random.normal(kx, (T, N, num_features), jnp.float32)
    params = init_params(key, num_features, block_channels, kernel_width)

    # small tile_rows -> multiple grid tiles; exercises the halo path, the
    # N-padding (N=2 -> 8) and the clamped halo on the last tile of block 2.
    out = tds_conv_encoder(x, params, num_features=num_features, tile_rows=48)
    out = jax.block_until_ready(out)

    with jax.default_matmul_precision("highest"):
        ref = jax.block_until_ready(_ref_encoder(x, params,
                                                 num_features=num_features))

    T_out = T - len(block_channels) * (kernel_width - 1)
    assert out.shape == (T_out, N, num_features), out.shape
    max_err = float(jnp.max(jnp.abs(out - ref)))
    # abs tolerance is for this toy F=32 config; production F needs a
    # relative / ULP-style check (error scales ~sqrt(F) with bf16 matmuls).
    assert max_err < 1e-1, max_err
    print("KERNEL_OK")
</pallas_src>

<mosaic_0001>
module attributes {stable_mosaic.version = 11 : i64} {
  func.func @tds_block_kernel(%arg0: i32, %arg1: memref<48x32xbf16, #tpu.memory_space<vmem>>, %arg2: memref<24x32xbf16, #tpu.memory_space<vmem>>, %arg3: memref<16x4xbf16, #tpu.memory_space<vmem>>, %arg4: memref<1x32xf32, #tpu.memory_space<vmem>>, %arg5: memref<1x32xf32, #tpu.memory_space<vmem>>, %arg6: memref<1x32xf32, #tpu.memory_space<vmem>>, %arg7: memref<32x32xbf16, #tpu.memory_space<vmem>>, %arg8: memref<1x32xf32, #tpu.memory_space<vmem>>, %arg9: memref<32x32xbf16, #tpu.memory_space<vmem>>, %arg10: memref<1x32xf32, #tpu.memory_space<vmem>>, %arg11: memref<1x32xf32, #tpu.memory_space<vmem>>, %arg12: memref<1x32xf32, #tpu.memory_space<vmem>>, %arg13: memref<48x32xbf16, #tpu.memory_space<vmem>>, %arg14: memref<48x32xf32, #tpu.memory_space<vmem>>) attributes {dimension_semantics = [#tpu.dimension_semantics<parallel>], iteration_bounds = array<i64: 5>, scalar_prefetch = 0 : i64, scratch_operands = 1 : i64, tpu.core_type = #tpu.core_type<tc>, window_params = [{transform_indices = @transform_0, window_bounds = array<i64: 48, 32>}, {transform_indices = @transform_1, window_bounds = array<i64: 24, 32>}, {pipeline_mode = #tpu.pipeline_mode<synchronous>, transform_indices = @transform_2, window_bounds = array<i64: 16, 4>}, {pipeline_mode = #tpu.pipeline_mode<synchronous>, transform_indices = @transform_3, window_bounds = array<i64: 1, 32>}, {pipeline_mode = #tpu.pipeline_mode<synchronous>, transform_indices = @transform_4, window_bounds = array<i64: 1, 32>}, {pipeline_mode = #tpu.pipeline_mode<synchronous>, transform_indices = @transform_5, window_bounds = array<i64: 1, 32>}, {pipeline_mode = #tpu.pipeline_mode<synchronous>, transform_indices = @transform_6, window_bounds = array<i64: 32, 32>}, {pipeline_mode = #tpu.pipeline_mode<synchronous>, transform_indices = @transform_7, window_bounds = array<i64: 1, 32>}, {pipeline_mode = #tpu.pipeline_mode<synchronous>, transform_indices = @transform_8, window_bounds = array<i64: 32, 32>}, {pipeline_mode = #tpu.pipeline_mode<synchronous>, transform_indices = @transform_9, window_bounds = array<i64: 1, 32>}, {pipeline_mode = #tpu.pipeline_mode<synchronous>, transform_indices = @transform_10, window_bounds = array<i64: 1, 32>}, {pipeline_mode = #tpu.pipeline_mode<synchronous>, transform_indices = @transform_11, window_bounds = array<i64: 1, 32>}, {transform_indices = @transform_12, window_bounds = array<i64: 48, 32>}]} {
    %c0 = arith.constant 0 : index
    %c0_0 = arith.constant 0 : index
    %0 = vector.load %arg3[%c0, %c0_0] : memref<16x4xbf16, #tpu.memory_space<vmem>>, vector<4x4xbf16>
    %c0_1 = arith.constant 0 : index
    %c0_2 = arith.constant 0 : index
    %1 = vector.load %arg1[%c0_1, %c0_2] : memref<48x32xbf16, #tpu.memory_space<vmem>>, vector<48x4xbf16>
    %cst = arith.constant dense<0.000000e+00> : vector<48x4xf32>
    %2 = tpu.matmul %1, %0, %cst {dimension_numbers = #tpu.dot_dimension_numbers<[1], [0], [0], [1], [0, 0, 1, 1], [], []>} : vector<48x4xbf16>, vector<4x4xbf16>, vector<48x4xf32> -> vector<48x4xf32>
    %c0_3 = arith.constant 0 : index
    %c0_4 = arith.constant 0 : index
    %3 = vector.load %arg14[%c0_3, %c0_4] : memref<48x32xf32, #tpu.memory_space<vmem>>, vector<48x4xf32>
    tpu.vector_store %arg14[%c0_3, %c0_4], %2 {strides = array<i32>} : memref<48x32xf32, #tpu.memory_space<vmem>>, vector<48x4xf32>,
    %c0_5 = arith.constant 0 : index
    %c4 = arith.constant 4 : index
    %4 = vector.load %arg1[%c0_5, %c4] : memref<48x32xbf16, #tpu.memory_space<vmem>>, vector<48x4xbf16>
    %cst_6 = arith.constant dense<0.000000e+00> : vector<48x4xf32>
    %5 = tpu.matmul %4, %0, %cst_6 {dimension_numbers = #tpu.dot_dimension_numbers<[1], [0], [0], [1], [0, 0, 1, 1], [], []>} : vector<48x4xbf16>, vector<4x4xbf16>, vector<48x4xf32> -> vector<48x4xf32>
    %c0_7 = arith.constant 0 : index
    %c4_8 = arith.constant 4 : index
    %6 = vector.load %arg14[%c0_7, %c4_8] : memref<48x32xf32, #tpu.memory_space<vmem>>, vector<48x4xf32>
    tpu.vector_store %arg14[%c0_7, %c4_8], %5 {strides = array<i32>} : memref<48x32xf32, #tpu.memory_space<vmem>>, vector<48x4xf32>,
    %c0_9 = arith.constant 0 : index
    %c8 = arith.constant 8 : index
    %7 = vector.load %arg1[%c0_9, %c8] : memref<48x32xbf16, #tpu.memory_space<vmem>>, vector<48x4xbf16>
    %cst_10 = arith.constant dense<0.000000e+00> : vector<48x4xf32>
    %8 = tpu.matmul %7, %0, %cst_10 {dimension_numbers = #tpu.dot_dimension_numbers<[1], [0], [0], [1], [0, 0, 1, 1], [], []>} : vector<48x4xbf16>, vector<4x4xbf16>, vector<48x4xf32> -> vector<48x4xf32>
    %c0_11 = arith.constant 0 : index
    %c8_12 = arith.constant 8 : index
    %9 = vector.load %arg14[%c0_11, %c8_12] : memref<48x32xf32, #tpu.memory_space<vmem>>, vector<48x4xf32>
    tpu.vector_store %arg14[%c0_11, %c8_12], %8 {strides = array<i32>} : memref<48x32xf32, #tpu.memory_space<vmem>>, vector<48x4xf32>,
    %c0_13 = arith.constant 0 : index
    %c12 = arith.constant 12 : index
    %10 = vector.load %arg1[%c0_13, %c12] : memref<48x32xbf16, #tpu.memory_space<vmem>>, vector<48x4xbf16>
    %cst_14 = arith.constant dense<0.000000e+00> : vector<48x4xf32>
    %11 = tpu.matmul %10, %0, %cst_14 {dimension_numbers = #tpu.dot_dimension_numbers<[1], [0], [0], [1], [0, 0, 1, 1], [], []>} : vector<48x4xbf16>, vector<4x4xbf16>, vector<48x4xf32> -> vector<48x4xf32>
    %c0_15 = arith.constant 0 : index
    %c12_16 = arith.constant 12 : index
    %12 = vector.load %arg14[%c0_15, %c12_16] : memref<48x32xf32, #tpu.memory_space<vmem>>, vector<48x4xf32>
    tpu.vector_store %arg14[%c0_15, %c12_16], %11 {strides = array<i32>} : memref<48x32xf32, #tpu.memory_space<vmem>>, vector<48x4xf32>,
    %c0_17 = arith.constant 0 : index
    %c16 = arith.constant 16 : index
    %13 = vector.load %arg1[%c0_17, %c16] : memref<48x32xbf16, #tpu.memory_space<vmem>>, vector<48x4xbf16>
    %cst_18 = arith.constant dense<0.000000e+00> : vector<48x4xf32>
    %14 = tpu.matmul %13, %0, %cst_18 {dimension_numbers = #tpu.dot_dimension_numbers<[1], [0], [0], [1], [0, 0, 1, 1], [], []>} : vector<48x4xbf16>, vector<4x4xbf16>, vector<48x4xf32> -> vector<48x4xf32>
    %c0_19 = arith.constant 0 : index
    %c16_20 = arith.constant 16 : index
    %15 = vector.load %arg14[%c0_19, %c16_20] : memref<48x32xf32, #tpu.memory_space<vmem>>, vector<48x4xf32>
    tpu.vector_store %arg14[%c0_19, %c16_20], %14 {strides = array<i32>} : memref<48x32xf32, #tpu.memory_space<vmem>>, vector<48x4xf32>,
    %c0_21 = arith.constant 0 : index
    %c20 = arith.constant 20 : index
    %16 = vector.load %arg1[%c0_21, %c20] : memref<48x32xbf16, #tpu.memory_space<vmem>>, vector<48x4xbf16>
    %cst_22 = arith.constant dense<0.000000e+00> : vector<48x4xf32>
    %17 = tpu.matmul %16, %0, %cst_22 {dimension_numbers = #tpu.dot_dimension_numbers<[1], [0], [0], [1], [0, 0, 1, 1], [], []>} : vector<48x4xbf16>, vector<4x4xbf16>, vector<48x4xf32> -> vector<48x4xf32>
    %c0_23 = arith.constant 0 : index
    %c20_24 = arith.constant 20 : index
    %18 = vector.load %arg14[%c0_23, %c20_24] : memref<48x32xf32, #tpu.memory_space<vmem>>, vector<48x4xf32>
    tpu.vector_store %arg14[%c0_23, %c20_24], %17 {strides = array<i32>} : memref<48x32xf32, #tpu.memory_space<vmem>>, vector<48x4xf32>,
    %c0_25 = arith.constant 0 : index
    %c24 = arith.constant 24 : index
    %19 = vector.load %arg1[%c0_25, %c24] : memref<48x32xbf16, #tpu.memory_space<vmem>>, vector<48x4xbf16>
    %cst_26 = arith.constant dense<0.000000e+00> : vector<48x4xf32>
    %20 = tpu.matmul %19, %0, %cst_26 {dimension_numbers = #tpu.dot_dimension_numbers<[1], [0], [0], [1], [0, 0, 1, 1], [], []>} : vector<48x4xbf16>, vector<4x4xbf16>, vector<48x4xf32> -> vector<48x4xf32>
    %c0_27 = arith.constant 0 : index
    %c24_28 = arith.constant 24 : index
    %21 = vector.load %arg14[%c0_27, %c24_28] : memref<48x32xf32, #tpu.memory_space<vmem>>, vector<48x4xf32>
    tpu.vector_store %arg14[%c0_27, %c24_28], %20 {strides = array<i32>} : memref<48x32xf32, #tpu.memory_space<vmem>>, vector<48x4xf32>,
    %c0_29 = arith.constant 0 : index
    %c28 = arith.constant 28 : index
    %22 = vector.load %arg1[%c0_29, %c28] : memref<48x32xbf16, #tpu.memory_space<vmem>>, vector<48x4xbf16>
    %cst_30 = arith.constant dense<0.000000e+00> : vector<48x4xf32>
    %23 = tpu.matmul %22, %0, %cst_30 {dimension_numbers = #tpu.dot_dimension_numbers<[1], [0], [0], [1], [0, 0, 1, 1], [], []>} : vector<48x4xbf16>, vector<4x4xbf16>, vector<48x4xf32> -> vector<48x4xf32>
    %c0_31 = arith.constant 0 : index
    %c28_32 = arith.constant 28 : index
    %24 = vector.load %arg14[%c0_31, %c28_32] : memref<48x32xf32, #tpu.memory_space<vmem>>, vector<48x4xf32>
    tpu.vector_store %arg14[%c0_31, %c28_32], %23 {strides = array<i32>} : memref<48x32xf32, #tpu.memory_space<vmem>>, vector<48x4xf32>,
    %c4_33 = arith.constant 4 : index
    %c0_34 = arith.constant 0 : index
    %25 = vector.load %arg3[%c4_33, %c0_34] : memref<16x4xbf16, #tpu.memory_space<vmem>>, vector<4x4xbf16>
    %c0_35 = arith.constant 0 : index
    %c0_36 = arith.constant 0 : index
    %26 = vector.load %arg14[%c0_35, %c0_36] : memref<48x32xf32, #tpu.memory_space<vmem>>, vector<40x4xf32>
    %c8_37 = arith.constant 8 : index
    %c0_38 = arith.constant 0 : index
    %27 = vector.load %arg1[%c8_37, %c0_38] : memref<48x32xbf16, #tpu.memory_space<vmem>>, vector<40x4xbf16>
    %cst_39 = arith.constant dense<0.000000e+00> : vector<40x4xf32>
    %28 = tpu.matmul %27, %25, %cst_39 {dimension_numbers = #tpu.dot_dimension_numbers<[1], [0], [0], [1], [0, 0, 1, 1], [], []>} : vector<40x4xbf16>, vector<4x4xbf16>, vector<40x4xf32> -> vector<40x4xf32>
    %29 = arith.addf %26, %28 : vector<40x4xf32>
    %c0_40 = arith.constant 0 : index
    %c0_41 = arith.constant 0 : index
    %30 = vector.load %arg14[%c0_40, %c0_41] : memref<48x32xf32, #tpu.memory_space<vmem>>, vector<40x4xf32>
    tpu.vector_store %arg14[%c0_40, %c0_41], %29 {strides = array<i32>} : memref<48x32xf32, #tpu.memory_space<vmem>>, vector<40x4xf32>,
    %c40 = arith.constant 40 : index
    %c0_42 = arith.constant 0 : index
    %31 = vector.load %arg14[%c40, %c0_42] : memref<48x32xf32, #tpu.memory_space<vmem>>, vector<8x4xf32>
    %c0_43 = arith.constant 0 : index
    %c0_44 = arith.constant 0 : index
    %32 = vector.load %arg2[%c0_43, %c0_44] : memref<24x32xbf16, #tpu.memory_space<vmem>>, vector<8x4xbf16>
    %cst_45 = arith.constant dense<0.000000e+00> : vector<8x4xf32>
    %33 = tpu.matmul %32, %25, %cst_45 {dimension_numbers = #tpu.dot_dimension_numbers<[1], [0], [0], [1], [0, 0, 1, 1], [], []>} : vector<8x4xbf16>, vector<4x4xbf16>, vector<8x4xf32> -> vector<8x4xf32>
    %34 = arith.addf %31, %33 : vector<8x4xf32>
    %c40_46 = arith.constant 40 : index
    %c0_47 = arith.constant 0 : index
    %35 = vector.load %arg14[%c40_46, %c0_47] : memref<48x32xf32, #tpu.memory_space<vmem>>, vector<8x4xf32>
    tpu.vector_store %arg14[%c40_46, %c0_47], %34 {strides = array<i32>} : memref<48x32xf32, #tpu.memory_space<vmem>>, vector<8x4xf32>,
    %c0_48 = arith.constant 0 : index
    %c4_49 = arith.constant 4 : index
    %36 = vector.load %arg14[%c0_48, %c4_49] : memref<48x32xf32, #tpu.memory_space<vmem>>, vector<40x4xf32>
    %c8_50 = arith.constant 8 : index
    %c4_51 = arith.constant 4 : index
    %37 = vector.load %arg1[%c8_50, %c4_51] : memref<48x32xbf16, #tpu.memory_space<vmem>>, vector<40x4xbf16>
    %cst_52 = arith.constant dense<0.000000e+00> : vector<40x4xf32>
    %38 = tpu.matmul %37, %25, %cst_52 {dimension_numbers = #tpu.dot_dimension_numbers<[1], [0], [0], [1], [0, 0, 1, 1], [], []>} : vector<40x4xbf16>, vector<4x4xbf16>, vector<40x4xf32> -> vector<40x4xf32>
    %39 = arith.addf %36, %38 : vector<40x4xf32>
    %c0_53 = arith.constant 0 : index
    %c4_54 = arith.constant 4 : index
    %40 = vector.load %arg14[%c0_53, %c4_54] : memref<48x32xf32, #tpu.memory_space<vmem>>, vector<40x4xf32>
    tpu.vector_store %arg14[%c0_53, %c4_54], %39 {strides = array<i32>} : memref<48x32xf32, #tpu.memory_space<vmem>>, vector<40x4xf32>,
    %c40_55 = arith.constant 40 : index
    %c4_56 = arith.constant 4 : index
    %41 = vector.load %arg14[%c40_55, %c4_56] : memref<48x32xf32, #tpu.memory_space<vmem>>, vector<8x4xf32>
    %c0_57 = arith.constant 0 : index
    %c4_58 = arith.constant 4 : index
    %42 = vector.load %arg2[%c0_57, %c4_58] : memref<24x32xbf16, #tpu.memory_space<vmem>>, vector<8x4xbf16>
    %cst_59 = arith.constant dense<0.000000e+00> : vector<8x4xf32>
    %43 = tpu.matmul %42, %25, %cst_59 {dimension_numbers = #tpu.dot_dimension_numbers<[1], [0], [0], [1], [0, 0, 1, 1], [], []>} : vector<8x4xbf16>, vector<4x4xbf16>, vector<8x4xf32> -> vector<8x4xf32>
    %44 = arith.addf %41, %43 : vector<8x4xf32>
    %c40_60 = arith.constant 40 : index
    %c4_61 = arith.constant 4 : index
    %45 = vector.load %arg14[%c40_60, %c4_61] : memref<48x32xf32, #tpu.memory_space<vmem>>, vector<8x4xf32>
    tpu.vector_store %arg14[%c40_60, %c4_61], %44 {strides = array<i32>} : memref<48x32xf32, #tpu.memory_space<vmem>>, vector<8x4xf32>,
    %c0_62 = arith.constant 0 : index
    %c8_63 = arith.constant 8 : index
    %46 = vector.load %arg14[%c0_62, %c8_63] : memref<48x32xf32, #tpu.memory_space<vmem>>, vector<40x4xf32>
    %c8_64 = arith.constant 8 : index
    %c8_65 = arith.constant 8 : index
    %47 = vector.load %arg1[%c8_64, %c8_65] : memref<48x32xbf16, #tpu.memory_space<vmem>>, vector<40x4xbf16>
    %cst_66 = arith.constant dense<0.000000e+00> : vector<40x4xf32>
    %48 = tpu.matmul %47, %25, %cst_66 {dimension_numbers = #tpu.dot_dimension_numbers<[1], [0], [0], [1], [0, 0, 1, 1], [], []>} : vector<40x4xbf16>, vector<4x4xbf16>, vector<40x4xf32> -> vector<40x4xf32>
    %49 = arith.addf %46, %48 : vector<40x4xf32>
    %c0_67 = arith.constant 0 : index
    %c8_68 = arith.constant 8 : index
    %50 = vector.load %arg14[%c0_67, %c8_68] : memref<48x32xf32, #tpu.memory_space<vmem>>, vector<40x4xf32>
    tpu.vector_store %arg14[%c0_67, %c8_68], %49 {strides = array<i32>} : memref<48x32xf32, #tpu.memory_space<vmem>>, vector<40x4xf32>,
    %c40_69 = arith.constant 40 : index
    %c8_70 = arith.constant 8 : index
    %51 = vector.load %arg14[%c40_69, %c8_70] : memref<48x32xf32, #tpu.memory_space<vmem>>, vector<8x4xf32>
    %c0_71 = arith.constant 0 : index
    %c8_72 = arith.constant 8 : index
    %52 = vector.load %arg2[%c0_71, %c8_72] : memref<24x32xbf16, #tpu.memory_space<vmem>>, vector<8x4xbf16>
    %cst_73 = arith.constant dense<0.000000e+00> : vector<8x4xf32>
    %53 = tpu.matmul %52, %25, %cst_73 {dimension_numbers = #tpu.dot_dimension_numbers<[1], [0], [0], [1], [0, 0, 1, 1], [], []>} : vector<8x4xbf16>, vector<4x4xbf16>, vector<8x4xf32> -> vector<8x4xf32>
    %54 = arith.addf %51, %53 : vector<8x4xf32>
    %c40_74 = arith.constant 40 : index
    %c8_75 = arith.constant 8 : index
    %55 = vector.load %arg14[%c40_74, %c8_75] : memref<48x32xf32, #tpu.memory_space<vmem>>, vector<8x4xf32>
    tpu.vector_store %arg14[%c40_74, %c8_75], %54 {strides = array<i32>} : memref<48x32xf32, #tpu.memory_space<vmem>>, vector<8x4xf32>,
    %c0_76 = arith.constant 0 : index
    %c12_77 = arith.constant 12 : index
    %56 = vector.load %arg14[%c0_76, %c12_77] : memref<48x32xf32, #tpu.memory_space<vmem>>, vector<40x4xf32>
    %c8_78 = arith.constant 8 : index
    %c12_79 = arith.constant 12 : index
    %57 = vector.load %arg1[%c8_78, %c12_79] : memref<48x32xbf16, #tpu.memory_space<vmem>>, vector<40x4xbf16>
    %cst_80 = arith.constant dense<0.000000e+00> : vector<40x4xf32>
    %58 = tpu.matmul %57, %25, %cst_80 {dimension_numbers = #tpu.dot_dimension_numbers<[1], [0], [0], [1], [0, 0, 1, 1], [], []>} : vector<40x4xbf16>, vector<4x4xbf16>, vector<40x4xf32> -> vector<40x4xf32>
    %59 = arith.addf %56, %58 : vector<40x4xf32>
    %c0_81 = arith.constant 0 : index
    %c12_82 = arith.constant 12 : index
    %60 = vector.load %arg14[%c0_81, %c12_82] : memref<48x32xf32, #tpu.memory_space<vmem>>, vector<40x4xf32>
    tpu.vector_store %arg14[%c0_81, %c12_82], %59 {strides = array<i32>} : memref<48x32xf32, #tpu.memory_space<vmem>>, vector<40x4xf32>,
    %c40_83 = arith.constant 40 : index
    %c12_84 = arith.constant 12 : index
    %61 = vector.load %arg14[%c40_83, %c12_84] : memref<48x32xf32, #tpu.memory_space<vmem>>, vector<8x4xf32>
    %c0_85 = arith.constant 0 : index
    %c12_86 = arith.constant 12 : index
    %62 = vector.load %arg2[%c0_85, %c12_86] : memref<24x32xbf16, #tpu.memory_space<vmem>>, vector<8x4xbf16>
    %cst_87 = arith.constant dense<0.000000e+00> : vector<8x4xf32>
    %63 = tpu.matmul %62, %25, %cst_87 {dimension_numbers = #tpu.dot_dimension_numbers<[1], [0], [0], [1], [0, 0, 1, 1], [], []>} : vector<8x4xbf16>, vector<4x4xbf16>, vector<8x4xf32> -> vector<8x4xf32>
    %64 = arith.addf %61, %63 : vector<8x4xf32>
    %c40_88 = arith.constant 40 : index
    %c12_89 = arith.constant 12 : index
    %65 = vector.load %arg14[%c40_88, %c12_89] : memref<48x32xf32, #tpu.memory_space<vmem>>, vector<8x4xf32>
    tpu.vector_store %arg14[%c40_88, %c12_89], %64 {strides = array<i32>} : memref<48x32xf32, #tpu.memory_space<vmem>>, vector<8x4xf32>,
    %c0_90 = arith.constant 0 : index
    %c16_91 = arith.constant 16 : index
    %66 = vector.load %arg14[%c0_90, %c16_91] : memref<48x32xf32, #tpu.memory_space<vmem>>, vector<40x4xf32>
    %c8_92 = arith.constant 8 : index
    %c16_93 = arith.constant 16 : index
    %67 = vector.load %arg1[%c8_92, %c16_93] : memref<48x32xbf16, #tpu.memory_space<vmem>>, vector<40x4xbf16>
    %cst_94 = arith.constant dense<0.000000e+00> : vector<40x4xf32>
    %68 = tpu.matmul %67, %25, %cst_94 {dimension_numbers = #tpu.dot_dimension_numbers<[1], [0], [0], [1], [0, 0, 1, 1], [], []>} : vector<40x4xbf16>, vector<4x4xbf16>, vector<40x4xf32> -> vector<40x4xf32>
    %69 = arith.addf %66, %68 : vector<40x4xf32>
    %c0_95 = arith.constant 0 : index
    %c16_96 = arith.constant 16 : index
    %70 = vector.load %arg14[%c0_95, %c16_96] : memref<48x32xf32, #tpu.memory_space<vmem>>, vector<40x4xf32>
    tpu.vector_store %arg14[%c0_95, %c16_96], %69 {strides = array<i32>} : memref<48x32xf32, #tpu.memory_space<vmem>>, vector<40x4xf32>,
    %c40_97 = arith.constant 40 : index
    %c16_98 = arith.constant 16 : index
    %71 = vector.load %arg14[%c40_97, %c16_98] : memref<48x32xf32, #tpu.memory_space<vmem>>, vector<8x4xf32>
    %c0_99 = arith.constant 0 : index
    %c16_100 = arith.constant 16 : index
    %72 = vector.load %arg2[%c0_99, %c16_100] : memref<24x32xbf16, #tpu.memory_space<vmem>>, vector<8x4xbf16>
    %cst_101 = arith.constant dense<0.000000e+00> : vector<8x4xf32>
    %73 = tpu.matmul %72, %25, %cst_101 {dimension_numbers = #tpu.dot_dimension_numbers<[1], [0], [0], [1], [0, 0, 1, 1], [], []>} : vector<8x4xbf16>, vector<4x4xbf16>, vector<8x4xf32> -> vector<8x4xf32>
    %74 = arith.addf %71, %73 : vector<8x4xf32>
    %c40_102 = arith.constant 40 : index
    %c16_103 = arith.constant 16 : index
    %75 = vector.load %arg14[%c40_102, %c16_103] : memref<48x32xf32, #tpu.memory_space<vmem>>, vector<8x4xf32>
    tpu.vector_store %arg14[%c40_102, %c16_103], %74 {strides = array<i32>} : memref<48x32xf32, #tpu.memory_space<vmem>>, vector<8x4xf32>,
    %c0_104 = arith.constant 0 : index
    %c20_105 = arith.constant 20 : index
    %76 = vector.load %arg14[%c0_104, %c20_105] : memref<48x32xf32, #tpu.memory_space<vmem>>, vector<40x4xf32>
    %c8_106 = arith.constant 8 : index
    %c20_107 = arith.constant 20 : index
    %77 = vector.load %arg1[%c8_106, %c20_107] : memref<48x32xbf16, #tpu.memory_space<vmem>>, vector<40x4xbf16>
    %cst_108 = arith.constant dense<0.000000e+00> : vector<40x4xf32>
    %78 = tpu.matmul %77, %25, %cst_108 {dimension_numbers = #tpu.dot_dimension_numbers<[1], [0], [0], [1], [0, 0, 1, 1], [], []>} : vector<40x4xbf16>, vector<4x4xbf16>, vector<40x4xf32> -> vector<40x4xf32>
    %79 = arith.addf %76, %78 : vector<40x4xf32>
    %c0_109 = arith.constant 0 : index
    %c20_110 = arith.constant 20 : index
    %80 = vector.load %arg14[%c0_109, %c20_110] : memref<48x32xf32, #tpu.memory_space<vmem>>, vector<40x4xf32>
    tpu.vector_store %arg14[%c0_109, %c20_110], %79 {strides = array<i32>} : memref<48x32xf32, #tpu.memory_space<vmem>>, vector<40x4xf32>,
    %c40_111 = arith.constant 40 : index
    %c20_112 = arith.constant 20 : index
    %81 = vector.load %arg14[%c40_111, %c20_112] : memref<48x32xf32, #tpu.memory_space<vmem>>, vector<8x4xf32>
    %c0_113 = arith.constant 0 : index
    %c20_114 = arith.constant 20 : index
    %82 = vector.load %arg2[%c0_113, %c20_114] : memref<24x32xbf16, #tpu.memory_space<vmem>>, vector<8x4xbf16>
    %cst_115 = arith.constant dense<0.000000e+00> : vector<8x4xf32>
    %83 = tpu.matmul %82, %25, %cst_115 {dimension_numbers = #tpu.dot_dimension_numbers<[1], [0], [0], [1], [0, 0, 1, 1], [], []>} : vector<8x4xbf16>, vector<4x4xbf16>, vector<8x4xf32> -> vector<8x4xf32>
    %84 = arith.addf %81, %83 : vector<8x4xf32>
    %c40_116 = arith.constant 40 : index
    %c20_117 = arith.constant 20 : index
    %85 = vector.load %arg14[%c40_116, %c20_117] : memref<48x32xf32, #tpu.memory_space<vmem>>, vector<8x4xf32>
    tpu.vector_store %arg14[%c40_116, %c20_117], %84 {strides = array<i32>} : memref<48x32xf32, #tpu.memory_space<vmem>>, vector<8x4xf32>,
    %c0_118 = arith.constant 0 : index
    %c24_119 = arith.constant 24 : index
    %86 = vector.load %arg14[%c0_118, %c24_119] : memref<48x32xf32, #tpu.memory_space<vmem>>, vector<40x4xf32>
    %c8_120 = arith.constant 8 : index
    %c24_121 = arith.constant 24 : index
    %87 = vector.load %arg1[%c8_120, %c24_121] : memref<48x32xbf16, #tpu.memory_space<vmem>>, vector<40x4xbf16>
    %cst_122 = arith.constant dense<0.000000e+00> : vector<40x4xf32>
    %88 = tpu.matmul %87, %25, %cst_122 {dimension_numbers = #tpu.dot_dimension_numbers<[1], [0], [0], [1], [0, 0, 1, 1], [], []>} : vector<40x4xbf16>, vector<4x4xbf16>, vector<40x4xf32> -> vector<40x4xf32>
    %89 = arith.addf %86, %88 : vector<40x4xf32>
    %c0_123 = arith.constant 0 : index
    %c24_124 = arith.constant 24 : index
    %90 = vector.load %arg14[%c0_123, %c24_124] : memref<48x32xf32, #tpu.memory_space<vmem>>, vector<40x4xf32>
    tpu.vector_store %arg14[%c0_123, %c24_124], %89 {strides = array<i32>} : memref<48x32xf32, #tpu.memory_space<vmem>>, vector<40x4xf32>,
    %c40_125 = arith.constant 40 : index
    %c24_126 = arith.constant 24 : index
    %91 = vector.load %arg14[%c40_125, %c24_126] : memref<48x32xf32, #tpu.memory_space<vmem>>, vector<8x4xf32>
    %c0_127 = arith.constant 0 : index
    %c24_128 = arith.constant 24 : index
    %92 = vector.load %arg2[%c0_127, %c24_128] : memref<24x32xbf16, #tpu.memory_space<vmem>>, vector<8x4xbf16>
    %cst_129 = arith.constant dense<0.000000e+00> : vector<8x4xf32>
    %93 = tpu.matmul %92, %25, %cst_129 {dimension_numbers = #tpu.dot_dimension_numbers<[1], [0], [0], [1], [0, 0, 1, 1], [], []>} : vector<8x4xbf16>, vector<4x4xbf16>, vector<8x4xf32> -> vector<8x4xf32>
    %94 = arith.addf %91, %93 : vector<8x4xf32>
    %c40_130 = arith.constant 40 : index
    %c24_131 = arith.constant 24 : index
    %95 = vector.load %arg14[%c40_130, %c24_131] : memref<48x32xf32, #tpu.memory_space<vmem>>, vector<8x4xf32>
    tpu.vector_store %arg14[%c40_130, %c24_131], %94 {strides = array<i32>} : memref<48x32xf32, #tpu.memory_space<vmem>>, vector<8x4xf32>,
    %c0_132 = arith.constant 0 : index
    %c28_133 = arith.constant 28 : index
    %96 = vector.load %arg14[%c0_132, %c28_133] : memref<48x32xf32, #tpu.memory_space<vmem>>, vector<40x4xf32>
    %c8_134 = arith.constant 8 : index
    %c28_135 = arith.constant 28 : index
    %97 = vector.load %arg1[%c8_134, %c28_135] : memref<48x32xbf16, #tpu.memory_space<vmem>>, vector<40x4xbf16>
    %cst_136 = arith.constant dense<0.000000e+00> : vector<40x4xf32>
    %98 = tpu.matmul %97, %25, %cst_136 {dimension_numbers = #tpu.dot_dimension_numbers<[1], [0], [0], [1], [0, 0, 1, 1], [], []>} : vector<40x4xbf16>, vector<4x4xbf16>, vector<40x4xf32> -> vector<40x4xf32>
    %99 = arith.addf %96, %98 : vector<40x4xf32>
    %c0_137 = arith.constant 0 : index
    %c28_138 = arith.constant 28 : index
    %100 = vector.load %arg14[%c0_137, %c28_138] : memref<48x32xf32, #tpu.memory_space<vmem>>, vector<40x4xf32>
    tpu.vector_store %arg14[%c0_137, %c28_138], %99 {strides = array<i32>} : memref<48x32xf32, #tpu.memory_space<vmem>>, vector<40x4xf32>,
    %c40_139 = arith.constant 40 : index
    %c28_140 = arith.constant 28 : index
    %101 = vector.load %arg14[%c40_139, %c28_140] : memref<48x32xf32, #tpu.memory_space<vmem>>, vector<8x4xf32>
    %c0_141 = arith.constant 0 : index
    %c28_142 = arith.constant 28 : index
    %102 = vector.load %arg2[%c0_141, %c28_142] : memref<24x32xbf16, #tpu.memory_space<vmem>>, vector<8x4xbf16>
    %cst_143 = arith.constant dense<0.000000e+00> : vector<8x4xf32>
    %103 = tpu.matmul %102, %25, %cst_143 {dimension_numbers = #tpu.dot_dimension_numbers<[1], [0], [0], [1], [0, 0, 1, 1], [], []>} : vector<8x4xbf16>, vector<4x4xbf16>, vector<8x4xf32> -> vector<8x4xf32>
    %104 = arith.addf %101, %103 : vector<8x4xf32>
    %c40_144 = arith.constant 40 : index
    %c28_145 = arith.constant 28 : index
    %105 = vector.load %arg14[%c40_144, %c28_145] : memref<48x32xf32, #tpu.memory_space<vmem>>, vector<8x4xf32>
    tpu.vector_store %arg14[%c40_144, %c28_145], %104 {strides = array<i32>} : memref<48x32xf32, #tpu.memory_space<vmem>>, vector<8x4xf32>,
    %c8_146 = arith.constant 8 : index
    %c0_147 = arith.constant 0 : index
    %106 = vector.load %arg3[%c8_146, %c0_147] : memref<16x4xbf16, #tpu.memory_space<vmem>>, vector<4x4xbf16>
    %c0_148 = arith.constant 0 : index
    %c0_149 = arith.constant 0 : index
    %107 = vector.load %arg14[%c0_148, %c0_149] : memref<48x32xf32, #tpu.memory_space<vmem>>, vector<32x4xf32>
    %c16_150 = arith.constant 16 : index
    %c0_151 = arith.constant 0 : index
    %108 = vector.load %arg1[%c16_150, %c0_151] : memref<48x32xbf16, #tpu.memory_space<vmem>>, vector<32x4xbf16>
    %cst_152 = arith.constant dense<0.000000e+00> : vector<32x4xf32>
    %109 = tpu.matmul %108, %106, %cst_152 {dimension_numbers = #tpu.dot_dimension_numbers<[1], [0], [0], [1], [0, 0, 1, 1], [], []>} : vector<32x4xbf16>, vector<4x4xbf16>, vector<32x4xf32> -> vector<32x4xf32>
    %110 = arith.addf %107, %109 : vector<32x4xf32>
    %c0_153 = arith.constant 0 : index
    %c0_154 = arith.constant 0 : index
    %111 = vector.load %arg14[%c0_153, %c0_154] : memref<48x32xf32, #tpu.memory_space<vmem>>, vector<32x4xf32>
    tpu.vector_store %arg14[%c0_153, %c0_154], %110 {strides = array<i32>} : memref<48x32xf32, #tpu.memory_space<vmem>>, vector<32x4xf32>,
    %c32 = arith.constant 32 : index
    %c0_155 = arith.constant 0 : index
    %112 = vector.load %arg14[%c32, %c0_155] : memref<48x32xf32, #tpu.memory_space<vmem>>, vector<16x4xf32>
    %c0_156 = arith.constant 0 : index
    %c0_157 = arith.constant 0 : index
    %113 = vector.load %arg2[%c0_156, %c0_157] : memref<24x32xbf16, #tpu.memory_space<vmem>>, vector<16x4xbf16>
    %cst_158 = arith.constant dense<0.000000e+00> : vector<16x4xf32>
    %114 = tpu.matmul %113, %106, %cst_158 {dimension_numbers = #tpu.dot_dimension_numbers<[1], [0], [0], [1], [0, 0, 1, 1], [], []>} : vector<16x4xbf16>, vector<4x4xbf16>, vector<16x4xf32> -> vector<16x4xf32>
    %115 = arith.addf %112, %114 : vector<16x4xf32>
    %c32_159 = arith.constant 32 : index
    %c0_160 = arith.constant 0 : index
    %116 = vector.load %arg14[%c32_159, %c0_160] : memref<48x32xf32, #tpu.memory_space<vmem>>, vector<16x4xf32>
    tpu.vector_store %arg14[%c32_159, %c0_160], %115 {strides = array<i32>} : memref<48x32xf32, #tpu.memory_space<vmem>>, vector<16x4xf32>,
    %c0_161 = arith.constant 0 : index
    %c4_162 = arith.constant 4 : index
    %117 = vector.load %arg14[%c0_161, %c4_162] : memref<48x32xf32, #tpu.memory_space<vmem>>, vector<32x4xf32>
    %c16_163 = arith.constant 16 : index
    %c4_164 = arith.constant 4 : index
    %118 = vector.load %arg1[%c16_163, %c4_164] : memref<48x32xbf16, #tpu.memory_space<vmem>>, vector<32x4xbf16>
    %cst_165 = arith.constant dense<0.000000e+00> : vector<32x4xf32>
    %119 = tpu.matmul %118, %106, %cst_165 {dimension_numbers = #tpu.dot_dimension_numbers<[1], [0], [0], [1], [0, 0, 1, 1], [], []>} : vector<32x4xbf16>, vector<4x4xbf16>, vector<32x4xf32> -> vector<32x4xf32>
    %120 = arith.addf %117, %119 : vector<32x4xf32>
    %c0_166 = arith.constant 0 : index
    %c4_167 = arith.constant 4 : index
    %121 = vector.load %arg14[%c0_166, %c4_167] : memref<48x32xf32, #tpu.memory_space<vmem>>, vector<32x4xf32>
    tpu.vector_store %arg14[%c0_166, %c4_167], %120 {strides = array<i32>} : memref<48x32xf32, #tpu.memory_space<vmem>>, vector<32x4xf32>,
    %c32_168 = arith.constant 32 : index
    %c4_169 = arith.constant 4 : index
    %122 = vector.load %arg14[%c32_168, %c4_169] : memref<48x32xf32, #tpu.memory_space<vmem>>, vector<16x4xf32>
    %c0_170 = arith.constant 0 : index
    %c4_171 = arith.constant 4 : index
    %123 = vector.load %arg2[%c0_170, %c4_171] : memref<24x32xbf16, #tpu.memory_space<vmem>>, vector<16x4xbf16>
    %cst_172 = arith.constant dense<0.000000e+00> : vector<16x4xf32>
    %124 = tpu.matmul %123, %106, %cst_172 {dimension_numbers = #tpu.dot_dimension_numbers<[1], [0], [0], [1], [0, 0, 1, 1], [], []>} : vector<16x4xbf16>, vector<4x4xbf16>, vector<16x4xf32> -> vector<16x4xf32>
    %125 = arith.addf %122, %124 : vector<16x4xf32>
    %c32_173 = arith.constant 32 : index
    %c4_174 = arith.constant 4 : index
    %126 = vector.load %arg14[%c32_173, %c4_174] : memref<48x32xf32, #tpu.memory_space<vmem>>, vector<16x4xf32>
    tpu.vector_store %arg14[%c32_173, %c4_174], %125 {strides = array<i32>} : memref<48x32xf32, #tpu.memory_space<vmem>>, vector<16x4xf32>,
    %c0_175 = arith.constant 0 : index
    %c8_176 = arith.constant 8 : index
    %127 = vector.load %arg14[%c0_175, %c8_176] : memref<48x32xf32, #tpu.memory_space<vmem>>, vector<32x4xf32>
    %c16_177 = arith.constant 16 : index
    %c8_178 = arith.constant 8 : index
    %128 = vector.load %arg1[%c16_177, %c8_178] : memref<48x32xbf16, #tpu.memory_space<vmem>>, vector<32x4xbf16>
    %cst_179 = arith.constant dense<0.000000e+00> : vector<32x4xf32>
    %129 = tpu.matmul %128, %106, %cst_179 {dimension_numbers = #tpu.dot_dimension_numbers<[1], [0], [0], [1], [0, 0, 1, 1], [], []>} : vector<32x4xbf16>, vector<4x4xbf16>, vector<32x4xf32> -> vector<32x4xf32>
    %130 = arith.addf %127, %129 : vector<32x4xf32>
    %c0_180 = arith.constant 0 : index
    %c8_181 = arith.constant 8 : index
    %131 = vector.load %arg14[%c0_180, %c8_181] : memref<48x32xf32, #tpu.memory_space<vmem>>, vector<32x4xf32>
    tpu.vector_store %arg14[%c0_180, %c8_181], %130 {strides = array<i32>} : memref<48x32xf32, #tpu.memory_space<vmem>>, vector<32x4xf32>,
    %c32_182 = arith.constant 32 : index
    %c8_183 = arith.constant 8 : index
    %132 = vector.load %arg14[%c32_182, %c8_183] : memref<48x32xf32, #tpu.memory_space<vmem>>, vector<16x4xf32>
    %c0_184 = arith.constant 0 : index
    %c8_185 = arith.constant 8 : index
    %133 = vector.load %arg2[%c0_184, %c8_185] : memref<24x32xbf16, #tpu.memory_space<vmem>>, vector<16x4xbf16>
    %cst_186 = arith.constant dense<0.000000e+00> : vector<16x4xf32>
    %134 = tpu.matmul %133, %106, %cst_186 {dimension_numbers = #tpu.dot_dimension_numbers<[1], [0], [0], [1], [0, 0, 1, 1], [], []>} : vector<16x4xbf16>, vector<4x4xbf16>, vector<16x4xf32> -> vector<16x4xf32>
    %135 = arith.addf %132, %134 : vector<16x4xf32>
    %c32_187 = arith.constant 32 : index
    %c8_188 = arith.constant 8 : index
    %136 = vector.load %arg14[%c32_187, %c8_188] : memref<48x32xf32, #tpu.memory_space<vmem>>, vector<16x4xf32>
    tpu.vector_store %arg14[%c32_187, %c8_188], %135 {strides = array<i32>} : memref<48x32xf32, #tpu.memory_space<vmem>>, vector<16x4xf32>,
    %c0_189 = arith.constant 0 : index
    %c12_190 = arith.constant 12 : index
    %137 = vector.load %arg14[%c0_189, %c12_190] : memref<48x32xf32, #tpu.memory_space<vmem>>, vector<32x4xf32>
    %c16_191 = arith.constant 16 : index
    %c12_192 = arith.constant 12 : index
    %138 = vector.load %arg1[%c16_191, %c12_192] : memref<48x32xbf16, #tpu.memory_space<vmem>>, vector<32x4xbf16>
    %cst_193 = arith.constant dense<0.000000e+00> : vector<32x4xf32>
    %139 = tpu.matmul %138, %106, %cst_193 {dimension_numbers = #tpu.dot_dimension_numbers<[1], [0], [0], [1], [0, 0, 1, 1], [], []>} : vector<32x4xbf16>, vector<4x4xbf16>, vector<32x4xf32> -> vector<32x4xf32>
    %140 = arith.addf %137, %139 : vector<32x4xf32>
    %c0_194 = arith.constant 0 : index
    %c12_195 = arith.constant 12 : index
    %141 = vector.load %arg14[%c0_194, %c12_195] : memref<48x32xf32, #tpu.memory_space<vmem>>, vector<32x4xf32>
    tpu.vector_store %arg14[%c0_194, %c12_195], %140 {strides = array<i32>} : memref<48x32xf32, #tpu.memory_space<vmem>>, vector<32x4xf32>,
    %c32_196 = arith.constant 32 : index
    %c12_197 = arith.constant 12 : index
    %142 = vector.load %arg14[%c32_196, %c12_197] : memref<48x32xf32, #tpu.memory_space<vmem>>, vector<16x4xf32>
    %c0_198 = arith.constant 0 : index
    %c12_199 = arith.constant 12 : index
    %143 = vector.load %arg2[%c0_198, %c12_199] : memref<24x32xbf16, #tpu.memory_space<vmem>>, vector<16x4xbf16>
    %cst_200 = arith.constant dense<0.000000e+00> : vector<16x4xf32>
    %144 = tpu.matmul %143, %106, %cst_200 {dimension_numbers = #tpu.dot_dimension_numbers<[1], [0], [0], [1], [0, 0, 1, 1], [], []>} : vector<16x4xbf16>, vector<4x4xbf16>, vector<16x4xf32> -> vector<16x4xf32>
    %145 = arith.addf %142, %144 : vector<16x4xf32>
    %c32_201 = arith.constant 32 : index
    %c12_202 = arith.constant 12 : index
    %146 = vector.load %arg14[%c32_201, %c12_202] : memref<48x32xf32, #tpu.memory_space<vmem>>, vector<16x4xf32>
    tpu.vector_store %arg14[%c32_201, %c12_202], %145 {strides = array<i32>} : memref<48x32xf32, #tpu.memory_space<vmem>>, vector<16x4xf32>,
    %c0_203 = arith.constant 0 : index
    %c16_204 = arith.constant 16 : index
    %147 = vector.load %arg14[%c0_203, %c16_204] : memref<48x32xf32, #tpu.memory_space<vmem>>, vector<32x4xf32>
    %c16_205 = arith.constant 16 : index
    %c16_206 = arith.constant 16 : index
    %148 = vector.load %arg1[%c16_205, %c16_206] : memref<48x32xbf16, #tpu.memory_space<vmem>>, vector<32x4xbf16>
    %cst_207 = arith.constant dense<0.000000e+00> : vector<32x4xf32>
    %149 = tpu.matmul %148, %106, %cst_207 {dimension_numbers = #tpu.dot_dimension_numbers<[1], [0], [0], [1], [0, 0, 1, 1], [], []>} : vector<32x4xbf16>, vector<4x4xbf16>, vector<32x4xf32> -> vector<32x4xf32>
    %150 = arith.addf %147, %149 : vector<32x4xf32>
    %c0_208 = arith.constant 0 : index
    %c16_209 = arith.constant 16 : index
    %151 = vector.load %arg14[%c0_208, %c16_209] : memref<48x32xf32, #tpu.memory_space<vmem>>, vector<32x4xf32>
    tpu.vector_store %arg14[%c0_208, %c16_209], %150 {strides = array<i32>} : memref<48x32xf32, #tpu.memory_space<vmem>>, vector<32x4xf32>,
    %c32_210 = arith.constant 32 : index
    %c16_211 = arith.constant 16 : index
    %152 = vector.load %arg14[%c32_210, %c16_211] : memref<48x32xf32, #tpu.memory_space<vmem>>, vector<16x4xf32>
    %c0_212 = arith.constant 0 : index
    %c16_213 = arith.constant 16 : index
    %153 = vector.load %arg2[%c0_212, %c16_213] : memref<24x32xbf16, #tpu.memory_space<vmem>>, vector<16x4xbf16>
    %cst_214 = arith.constant dense<0.000000e+00> : vector<16x4xf32>
    %154 = tpu.matmul %153, %106, %cst_214 {dimension_numbers = #tpu.dot_dimension_numbers<[1], [0], [0], [1], [0, 0, 1, 1], [], []>} : vector<16x4xbf16>, vector<4x4xbf16>, vector<16x4xf32> -> vector<16x4xf32>
    %155 = arith.addf %152, %154 : vector<16x4xf32>
    %c32_215 = arith.constant 32 : index
    %c16_216 = arith.constant 16 : index
    %156 = vector.load %arg14[%c32_215, %c16_216] : memref<48x32xf32, #tpu.memory_space<vmem>>, vector<16x4xf32>
    tpu.vector_store %arg14[%c32_215, %c16_216], %155 {strides = array<i32>} : memref<48x32xf32, #tpu.memory_space<vmem>>, vector<16x4xf32>,
    %c0_217 = arith.constant 0 : index
    %c20_218 = arith.constant 20 : index
    %157 = vector.load %arg14[%c0_217, %c20_218] : memref<48x32xf32, #tpu.memory_space<vmem>>, vector<32x4xf32>
    %c16_219 = arith.constant 16 : index
    %c20_220 = arith.constant 20 : index
    %158 = vector.load %arg1[%c16_219, %c20_220] : memref<48x32xbf16, #tpu.memory_space<vmem>>, vector<32x4xbf16>
    %cst_221 = arith.constant dense<0.000000e+00> : vector<32x4xf32>
    %159 = tpu.matmul %158, %106, %cst_221 {dimension_numbers = #tpu.dot_dimension_numbers<[1], [0], [0], [1], [0, 0, 1, 1], [], []>} : vector<32x4xbf16>, vector<4x4xbf16>, vector<32x4xf32> -> vector<32x4xf32>
    %160 = arith.addf %157, %159 : vector<32x4xf32>
    %c0_222 = arith.constant 0 : index
    %c20_223 = arith.constant 20 : index
    %161 = vector.load %arg14[%c0_222, %c20_223] : memref<48x32xf32, #tpu.memory_space<vmem>>, vector<32x4xf32>
    tpu.vector_store %arg14[%c0_222, %c20_223], %160 {strides = array<i32>} : memref<48x32xf32, #tpu.memory_space<vmem>>, vector<32x4xf32>,
    %c32_224 = arith.constant 32 : index
    %c20_225 = arith.constant 20 : index
    %162 = vector.load %arg14[%c32_224, %c20_225] : memref<48x32xf32, #tpu.memory_space<vmem>>, vector<16x4xf32>
    %c0_226 = arith.constant 0 : index
    %c20_227 = arith.constant 20 : index
    %163 = vector.load %arg2[%c0_226, %c20_227] : memref<24x32xbf16, #tpu.memory_space<vmem>>, vector<16x4xbf16>
    %cst_228 = arith.constant dense<0.000000e+00> : vector<16x4xf32>
    %164 = tpu.matmul %163, %106, %cst_228 {dimension_numbers = #tpu.dot_dimension_numbers<[1], [0], [0], [1], [0, 0, 1, 1], [], []>} : vector<16x4xbf16>, vector<4x4xbf16>, vector<16x4xf32> -> vector<16x4xf32>
    %165 = arith.addf %162, %164 : vector<16x4xf32>
    %c32_229 = arith.constant 32 : index
    %c20_230 = arith.constant 20 : index
    %166 = vector.load %arg14[%c32_229, %c20_230] : memref<48x32xf32, #tpu.memory_space<vmem>>, vector<16x4xf32>
    tpu.vector_store %arg14[%c32_229, %c20_230], %165 {strides = array<i32>} : memref<48x32xf32, #tpu.memory_space<vmem>>, vector<16x4xf32>,
    %c0_231 = arith.constant 0 : index
    %c24_232 = arith.constant 24 : index
    %167 = vector.load %arg14[%c0_231, %c24_232] : memref<48x32xf32, #tpu.memory_space<vmem>>, vector<32x4xf32>
    %c16_233 = arith.constant 16 : index
    %c24_234 = arith.constant 24 : index
    %168 = vector.load %arg1[%c16_233, %c24_234] : memref<48x32xbf16, #tpu.memory_space<vmem>>, vector<32x4xbf16>
    %cst_235 = arith.constant dense<0.000000e+00> : vector<32x4xf32>
    %169 = tpu.matmul %168, %106, %cst_235 {dimension_numbers = #tpu.dot_dimension_numbers<[1], [0], [0], [1], [0, 0, 1, 1], [], []>} : vector<32x4xbf16>, vector<4x4xbf16>, vector<32x4xf32> -> vector<32x4xf32>
    %170 = arith.addf %167, %169 : vector<32x4xf32>
    %c0_236 = arith.constant 0 : index
    %c24_237 = arith.constant 24 : index
    %171 = vector.load %arg14[%c0_236, %c24_237] : memref<48x32xf32, #tpu.memory_space<vmem>>, vector<32x4xf32>
    tpu.vector_store %arg14[%c0_236, %c24_237], %170 {strides = array<i32>} : memref<48x32xf32, #tpu.memory_space<vmem>>, vector<32x4xf32>,
    %c32_238 = arith.constant 32 : index
    %c24_239 = arith.constant 24 : index
    %172 = vector.load %arg14[%c32_238, %c24_239] : memref<48x32xf32, #tpu.memory_space<vmem>>, vector<16x4xf32>
    %c0_240 = arith.constant 0 : index
    %c24_241 = arith.constant 24 : index
    %173 = vector.load %arg2[%c0_240, %c24_241] : memref<24x32xbf16, #tpu.memory_space<vmem>>, vector<16x4xbf16>
    %cst_242 = arith.constant dense<0.000000e+00> : vector<16x4xf32>
    %174 = tpu.matmul %173, %106, %cst_242 {dimension_numbers = #tpu.dot_dimension_numbers<[1], [0], [0], [1], [0, 0, 1, 1], [], []>} : vector<16x4xbf16>, vector<4x4xbf16>, vector<16x4xf32> -> vector<16x4xf32>
    %175 = arith.addf %172, %174 : vector<16x4xf32>
    %c32_243 = arith.constant 32 : index
    %c24_244 = arith.constant 24 : index
    %176 = vector.load %arg14[%c32_243, %c24_244] : memref<48x32xf32, #tpu.memory_space<vmem>>, vector<16x4xf32>
    tpu.vector_store %arg14[%c32_243, %c24_244], %175 {strides = array<i32>} : memref<48x32xf32, #tpu.memory_space<vmem>>, vector<16x4xf32>,
    %c0_245 = arith.constant 0 : index
    %c28_246 = arith.constant 28 : index
    %177 = vector.load %arg14[%c0_245, %c28_246] : memref<48x32xf32, #tpu.memory_space<vmem>>, vector<32x4xf32>
    %c16_247 = arith.constant 16 : index
    %c28_248 = arith.constant 28 : index
    %178 = vector.load %arg1[%c16_247, %c28_248] : memref<48x32xbf16, #tpu.memory_space<vmem>>, vector<32x4xbf16>
    %cst_249 = arith.constant dense<0.000000e+00> : vector<32x4xf32>
    %179 = tpu.matmul %178, %106, %cst_249 {dimension_numbers = #tpu.dot_dimension_numbers<[1], [0], [0], [1], [0, 0, 1, 1], [], []>} : vector<32x4xbf16>, vector<4x4xbf16>, vector<32x4xf32> -> vector<32x4xf32>
    %180 = arith.addf %177, %179 : vector<32x4xf32>
    %c0_250 = arith.constant 0 : index
    %c28_251 = arith.constant 28 : index
    %181 = vector.load %arg14[%c0_250, %c28_251] : memref<48x32xf32, #tpu.memory_space<vmem>>, vector<32x4xf32>
    tpu.vector_store %arg14[%c0_250, %c28_251], %180 {strides = array<i32>} : memref<48x32xf32, #tpu.memory_space<vmem>>, vector<32x4xf32>,
    %c32_252 = arith.constant 32 : index
    %c28_253 = arith.constant 28 : index
    %182 = vector.load %arg14[%c32_252, %c28_253] : memref<48x32xf32, #tpu.memory_space<vmem>>, vector<16x4xf32>
    %c0_254 = arith.constant 0 : index
    %c28_255 = arith.constant 28 : index
    %183 = vector.load %arg2[%c0_254, %c28_255] : memref<24x32xbf16, #tpu.memory_space<vmem>>, vector<16x4xbf16>
    %cst_256 = arith.constant dense<0.000000e+00> : vector<16x4xf32>
    %184 = tpu.matmul %183, %106, %cst_256 {dimension_numbers = #tpu.dot_dimension_numbers<[1], [0], [0], [1], [0, 0, 1, 1], [], []>} : vector<16x4xbf16>, vector<4x4xbf16>, vector<16x4xf32> -> vector<16x4xf32>
    %185 = arith.addf %182, %184 : vector<16x4xf32>
    %c32_257 = arith.constant 32 : index
    %c28_258 = arith.constant 28 : index
    %186 = vector.load %arg14[%c32_257, %c28_258] : memref<48x32xf32, #tpu.memory_space<vmem>>, vector<16x4xf32>
    tpu.vector_store %arg14[%c32_257, %c28_258], %185 {strides = array<i32>} : memref<48x32xf32, #tpu.memory_space<vmem>>, vector<16x4xf32>,
    %c12_259 = arith.constant 12 : index
    %c0_260 = arith.constant 0 : index
    %187 = vector.load %arg3[%c12_259, %c0_260] : memref<16x4xbf16, #tpu.memory_space<vmem>>, vector<4x4xbf16>
    %c0_261 = arith.constant 0 : index
    %c0_262 = arith.constant 0 : index
    %188 = vector.load %arg14[%c0_261, %c0_262] : memref<48x32xf32, #tpu.memory_space<vmem>>, vector<24x4xf32>
    %c24_263 = arith.constant 24 : index
    %c0_264 = arith.constant 0 : index
    %189 = vector.load %arg1[%c24_263, %c0_264] : memref<48x32xbf16, #tpu.memory_space<vmem>>, vector<24x4xbf16>
    %cst_265 = arith.constant dense<0.000000e+00> : vector<24x4xf32>
    %190 = tpu.matmul %189, %187, %cst_265 {dimension_numbers = #tpu.dot_dimension_numbers<[1], [0], [0], [1], [0, 0, 1, 1], [], []>} : vector<24x4xbf16>, vector<4x4xbf16>, vector<24x4xf32> -> vector<24x4xf32>
    %191 = arith.addf %188, %190 : vector<24x4xf32>
    %c0_266 = arith.constant 0 : index
    %c0_267 = arith.constant 0 : index
    %192 = vector.load %arg14[%c0_266, %c0_267] : memref<48x32xf32, #tpu.memory_space<vmem>>, vector<24x4xf32>
    tpu.vector_store %arg14[%c0_266, %c0_267], %191 {strides = array<i32>} : memref<48x32xf32, #tpu.memory_space<vmem>>, vector<24x4xf32>,
    %c24_268 = arith.constant 24 : index
    %c0_269 = arith.constant 0 : index
    %193 = vector.load %arg14[%c24_268, %c0_269] : memref<48x32xf32, #tpu.memory_space<vmem>>, vector<24x4xf32>
    %c0_270 = arith.constant 0 : index
    %c0_271 = arith.constant 0 : index
    %194 = vector.load %arg2[%c0_270, %c0_271] : memref<24x32xbf16, #tpu.memory_space<vmem>>, vector<24x4xbf16>
    %cst_272 = arith.constant dense<0.000000e+00> : vector<24x4xf32>
    %195 = tpu.matmul %194, %187, %cst_272 {dimension_numbers = #tpu.dot_dimension_numbers<[1], [0], [0], [1], [0, 0, 1, 1], [], []>} : vector<24x4xbf16>, vector<4x4xbf16>, vector<24x4xf32> -> vector<24x4xf32>
    %196 = arith.addf %193, %195 : vector<24x4xf32>
    %c24_273 = arith.constant 24 : index
    %c0_274 = arith.constant 0 : index
    %197 = vector.load %arg14[%c24_273, %c0_274] : memref<48x32xf32, #tpu.memory_space<vmem>>, vector<24x4xf32>
    tpu.vector_store %arg14[%c24_273, %c0_274], %196 {strides = array<i32>} : memref<48x32xf32, #tpu.memory_space<vmem>>, vector<24x4xf32>,
    %c0_275 = arith.constant 0 : index
    %c4_276 = arith.constant 4 : index
    %198 = vector.load %arg14[%c0_275, %c4_276] : memref<48x32xf32, #tpu.memory_space<vmem>>, vector<24x4xf32>
    %c24_277 = arith.constant 24 : index
    %c4_278 = arith.constant 4 : index
    %199 = vector.load %arg1[%c24_277, %c4_278] : memref<48x32xbf16, #tpu.memory_space<vmem>>, vector<24x4xbf16>
    %cst_279 = arith.constant dense<0.000000e+00> : vector<24x4xf32>
    %200 = tpu.matmul %199, %187, %cst_279 {dimension_numbers = #tpu.dot_dimension_numbers<[1], [0], [0], [1], [0, 0, 1, 1], [], []>} : vector<24x4xbf16>, vector<4x4xbf16>, vector<24x4xf32> -> vector<24x4xf32>
    %201 = arith.addf %198, %200 : vector<24x4xf32>
    %c0_280 = arith.constant 0 : index
    %c4_281 = arith.constant 4 : index
    %202 = vector.load %arg14[%c0_280, %c4_281] : memref<48x32xf32, #tpu.memory_space<vmem>>, vector<24x4xf32>
    tpu.vector_store %arg14[%c0_280, %c4_281], %201 {strides = array<i32>} : memref<48x32xf32, #tpu.memory_space<vmem>>, vector<24x4xf32>,
    %c24_282 = arith.constant 24 : index
    %c4_283 = arith.constant 4 : index
    %203 = vector.load %arg14[%c24_282, %c4_283] : memref<48x32xf32, #tpu.memory_space<vmem>>, vector<24x4xf32>
    %c0_284 = arith.constant 0 : index
    %c4_285 = arith.constant 4 : index
    %204 = vector.load %arg2[%c0_284, %c4_285] : memref<24x32xbf16, #tpu.memory_space<vmem>>, vector<24x4xbf16>
    %cst_286 = arith.constant dense<0.000000e+00> : vector<24x4xf32>
    %205 = tpu.matmul %204, %187, %cst_286 {dimension_numbers = #tpu.dot_dimension_numbers<[1], [0], [0], [1], [0, 0, 1, 1], [], []>} : vector<24x4xbf16>, vector<4x4xbf16>, vector<24x4xf32> -> vector<24x4xf32>
    %206 = arith.addf %203, %205 : vector<24x4xf32>
    %c24_287 = arith.constant 24 : index
    %c4_288 = arith.constant 4 : index
    %207 = vector.load %arg14[%c24_287, %c4_288] : memref<48x32xf32, #tpu.memory_space<vmem>>, vector<24x4xf32>
    tpu.vector_store %arg14[%c24_287, %c4_288], %206 {strides = array<i32>} : memref<48x32xf32, #tpu.memory_space<vmem>>, vector<24x4xf32>,
    %c0_289 = arith.constant 0 : index
    %c8_290 = arith.constant 8 : index
    %208 = vector.load %arg14[%c0_289, %c8_290] : memref<48x32xf32, #tpu.memory_space<vmem>>, vector<24x4xf32>
    %c24_291 = arith.constant 24 : index
    %c8_292 = arith.constant 8 : index
    %209 = vector.load %arg1[%c24_291, %c8_292] : memref<48x32xbf16, #tpu.memory_space<vmem>>, vector<24x4xbf16>
    %cst_293 = arith.constant dense<0.000000e+00> : vector<24x4xf32>
    %210 = tpu.matmul %209, %187, %cst_293 {dimension_numbers = #tpu.dot_dimension_numbers<[1], [0], [0], [1], [0, 0, 1, 1], [], []>} : vector<24x4xbf16>, vector<4x4xbf16>, vector<24x4xf32> -> vector<24x4xf32>
    %211 = arith.addf %208, %210 : vector<24x4xf32>
    %c0_294 = arith.constant 0 : index
    %c8_295 = arith.constant 8 : index
    %212 = vector.load %arg14[%c0_294, %c8_295] : memref<48x32xf32, #tpu.memory_space<vmem>>, vector<24x4xf32>
    tpu.vector_store %arg14[%c0_294, %c8_295], %211 {strides = array<i32>} : memref<48x32xf32, #tpu.memory_space<vmem>>, vector<24x4xf32>,
    %c24_296 = arith.constant 24 : index
    %c8_297 = arith.constant 8 : index
    %213 = vector.load %arg14[%c24_296, %c8_297] : memref<48x32xf32, #tpu.memory_space<vmem>>, vector<24x4xf32>
    %c0_298 = arith.constant 0 : index
    %c8_299 = arith.constant 8 : index
    %214 = vector.load %arg2[%c0_298, %c8_299] : memref<24x32xbf16, #tpu.memory_space<vmem>>, vector<24x4xbf16>
    %cst_300 = arith.constant dense<0.000000e+00> : vector<24x4xf32>
    %215 = tpu.matmul %214, %187, %cst_300 {dimension_numbers = #tpu.dot_dimension_numbers<[1], [0], [0], [1], [0, 0, 1, 1], [], []>} : vector<24x4xbf16>, vector<4x4xbf16>, vector<24x4xf32> -> vector<24x4xf32>
    %216 = arith.addf %213, %215 : vector<24x4xf32>
    %c24_301 = arith.constant 24 : index
    %c8_302 = arith.constant 8 : index
    %217 = vector.load %arg14[%c24_301, %c8_302] : memref<48x32xf32, #tpu.memory_space<vmem>>, vector<24x4xf32>
    tpu.vector_store %arg14[%c24_301, %c8_302], %216 {strides = array<i32>} : memref<48x32xf32, #tpu.memory_space<vmem>>, vector<24x4xf32>,
    %c0_303 = arith.constant 0 : index
    %c12_304 = arith.constant 12 : index
    %218 = vector.load %arg14[%c0_303, %c12_304] : memref<48x32xf32, #tpu.memory_space<vmem>>, vector<24x4xf32>
    %c24_305 = arith.constant 24 : index
    %c12_306 = arith.constant 12 : index
    %219 = vector.load %arg1[%c24_305, %c12_306] : memref<48x32xbf16, #tpu.memory_space<vmem>>, vector<24x4xbf16>
    %cst_307 = arith.constant dense<0.000000e+00> : vector<24x4xf32>
    %220 = tpu.matmul %219, %187, %cst_307 {dimension_numbers = #tpu.dot_dimension_numbers<[1], [0], [0], [1], [0, 0, 1, 1], [], []>} : vector<24x4xbf16>, vector<4x4xbf16>, vector<24x4xf32> -> vector<24x4xf32>
    %221 = arith.addf %218, %220 : vector<24x4xf32>
    %c0_308 = arith.constant 0 : index
    %c12_309 = arith.constant 12 : index
    %222 = vector.load %arg14[%c0_308, %c12_309] : memref<48x32xf32, #tpu.memory_space<vmem>>, vector<24x4xf32>
    tpu.vector_store %arg14[%c0_308, %c12_309], %221 {strides = array<i32>} : memref<48x32xf32, #tpu.memory_space<vmem>>, vector<24x4xf32>,
    %c24_310 = arith.constant 24 : index
    %c12_311 = arith.constant 12 : index
    %223 = vector.load %arg14[%c24_310, %c12_311] : memref<48x32xf32, #tpu.memory_space<vmem>>, vector<24x4xf32>
    %c0_312 = arith.constant 0 : index
    %c12_313 = arith.constant 12 : index
    %224 = vector.load %arg2[%c0_312, %c12_313] : memref<24x32xbf16, #tpu.memory_space<vmem>>, vector<24x4xbf16>
    %cst_314 = arith.constant dense<0.000000e+00> : vector<24x4xf32>
    %225 = tpu.matmul %224, %187, %cst_314 {dimension_numbers = #tpu.dot_dimension_numbers<[1], [0], [0], [1], [0, 0, 1, 1], [], []>} : vector<24x4xbf16>, vector<4x4xbf16>, vector<24x4xf32> -> vector<24x4xf32>
    %226 = arith.addf %223, %225 : vector<24x4xf32>
    %c24_315 = arith.constant 24 : index
    %c12_316 = arith.constant 12 : index
    %227 = vector.load %arg14[%c24_315, %c12_316] : memref<48x32xf32, #tpu.memory_space<vmem>>, vector<24x4xf32>
    tpu.vector_store %arg14[%c24_315, %c12_316], %226 {strides = array<i32>} : memref<48x32xf32, #tpu.memory_space<vmem>>, vector<24x4xf32>,
    %c0_317 = arith.constant 0 : index
    %c16_318 = arith.constant 16 : index
    %228 = vector.load %arg14[%c0_317, %c16_318] : memref<48x32xf32, #tpu.memory_space<vmem>>, vector<24x4xf32>
    %c24_319 = arith.constant 24 : index
    %c16_320 = arith.constant 16 : index
    %229 = vector.load %arg1[%c24_319, %c16_320] : memref<48x32xbf16, #tpu.memory_space<vmem>>, vector<24x4xbf16>
    %cst_321 = arith.constant dense<0.000000e+00> : vector<24x4xf32>
    %230 = tpu.matmul %229, %187, %cst_321 {dimension_numbers = #tpu.dot_dimension_numbers<[1], [0], [0], [1], [0, 0, 1, 1], [], []>} : vector<24x4xbf16>, vector<4x4xbf16>, vector<24x4xf32> -> vector<24x4xf32>
    %231 = arith.addf %228, %230 : vector<24x4xf32>
    %c0_322 = arith.constant 0 : index
    %c16_323 = arith.constant 16 : index
    %232 = vector.load %arg14[%c0_322, %c16_323] : memref<48x32xf32, #tpu.memory_space<vmem>>, vector<24x4xf32>
    tpu.vector_store %arg14[%c0_322, %c16_323], %231 {strides = array<i32>} : memref<48x32xf32, #tpu.memory_space<vmem>>, vector<24x4xf32>,
    %c24_324 = arith.constant 24 : index
    %c16_325 = arith.constant 16 : index
    %233 = vector.load %arg14[%c24_324, %c16_325] : memref<48x32xf32, #tpu.memory_space<vmem>>, vector<24x4xf32>
    %c0_326 = arith.constant 0 : index
    %c16_327 = arith.constant 16 : index
    %234 = vector.load %arg2[%c0_326, %c16_327] : memref<24x32xbf16, #tpu.memory_space<vmem>>, vector<24x4xbf16>
    %cst_328 = arith.constant dense<0.000000e+00> : vector<24x4xf32>
    %235 = tpu.matmul %234, %187, %cst_328 {dimension_numbers = #tpu.dot_dimension_numbers<[1], [0], [0], [1], [0, 0, 1, 1], [], []>} : vector<24x4xbf16>, vector<4x4xbf16>, vector<24x4xf32> -> vector<24x4xf32>
    %236 = arith.addf %233, %235 : vector<24x4xf32>
    %c24_329 = arith.constant 24 : index
    %c16_330 = arith.constant 16 : index
    %237 = vector.load %arg14[%c24_329, %c16_330] : memref<48x32xf32, #tpu.memory_space<vmem>>, vector<24x4xf32>
    tpu.vector_store %arg14[%c24_329, %c16_330], %236 {strides = array<i32>} : memref<48x32xf32, #tpu.memory_space<vmem>>, vector<24x4xf32>,
    %c0_331 = arith.constant 0 : index
    %c20_332 = arith.constant 20 : index
    %238 = vector.load %arg14[%c0_331, %c20_332] : memref<48x32xf32, #tpu.memory_space<vmem>>, vector<24x4xf32>
    %c24_333 = arith.constant 24 : index
    %c20_334 = arith.constant 20 : index
    %239 = vector.load %arg1[%c24_333, %c20_334] : memref<48x32xbf16, #tpu.memory_space<vmem>>, vector<24x4xbf16>
    %cst_335 = arith.constant dense<0.000000e+00> : vector<24x4xf32>
    %240 = tpu.matmul %239, %187, %cst_335 {dimension_numbers = #tpu.dot_dimension_numbers<[1], [0], [0], [1], [0, 0, 1, 1], [], []>} : vector<24x4xbf16>, vector<4x4xbf16>, vector<24x4xf32> -> vector<24x4xf32>
    %241 = arith.addf %238, %240 : vector<24x4xf32>
    %c0_336 = arith.constant 0 : index
    %c20_337 = arith.constant 20 : index
    %242 = vector.load %arg14[%c0_336, %c20_337] : memref<48x32xf32, #tpu.memory_space<vmem>>, vector<24x4xf32>
    tpu.vector_store %arg14[%c0_336, %c20_337], %241 {strides = array<i32>} : memref<48x32xf32, #tpu.memory_space<vmem>>, vector<24x4xf32>,
    %c24_338 = arith.constant 24 : index
    %c20_339 = arith.constant 20 : index
    %243 = vector.load %arg14[%c24_338, %c20_339] : memref<48x32xf32, #tpu.memory_space<vmem>>, vector<24x4xf32>
    %c0_340 = arith.constant 0 : index
    %c20_341 = arith.constant 20 : index
    %244 = vector.load %arg2[%c0_340, %c20_341] : memref<24x32xbf16, #tpu.memory_space<vmem>>, vector<24x4xbf16>
    %cst_342 = arith.constant dense<0.000000e+00> : vector<24x4xf32>
    %245 = tpu.matmul %244, %187, %cst_342 {dimension_numbers = #tpu.dot_dimension_numbers<[1], [0], [0], [1], [0, 0, 1, 1], [], []>} : vector<24x4xbf16>, vector<4x4xbf16>, vector<24x4xf32> -> vector<24x4xf32>
    %246 = arith.addf %243, %245 : vector<24x4xf32>
    %c24_343 = arith.constant 24 : index
    %c20_344 = arith.constant 20 : index
    %247 = vector.load %arg14[%c24_343, %c20_344] : memref<48x32xf32, #tpu.memory_space<vmem>>, vector<24x4xf32>
    tpu.vector_store %arg14[%c24_343, %c20_344], %246 {strides = array<i32>} : memref<48x32xf32, #tpu.memory_space<vmem>>, vector<24x4xf32>,
    %c0_345 = arith.constant 0 : index
    %c24_346 = arith.constant 24 : index
    %248 = vector.load %arg14[%c0_345, %c24_346] : memref<48x32xf32, #tpu.memory_space<vmem>>, vector<24x4xf32>
    %c24_347 = arith.constant 24 : index
    %c24_348 = arith.constant 24 : index
    %249 = vector.load %arg1[%c24_347, %c24_348] : memref<48x32xbf16, #tpu.memory_space<vmem>>, vector<24x4xbf16>
    %cst_349 = arith.constant dense<0.000000e+00> : vector<24x4xf32>
    %250 = tpu.matmul %249, %187, %cst_349 {dimension_numbers = #tpu.dot_dimension_numbers<[1], [0], [0], [1], [0, 0, 1, 1], [], []>} : vector<24x4xbf16>, vector<4x4xbf16>, vector<24x4xf32> -> vector<24x4xf32>
    %251 = arith.addf %248, %250 : vector<24x4xf32>
    %c0_350 = arith.constant 0 : index
    %c24_351 = arith.constant 24 : index
    %252 = vector.load %arg14[%c0_350, %c24_351] : memref<48x32xf32, #tpu.memory_space<vmem>>, vector<24x4xf32>
    tpu.vector_store %arg14[%c0_350, %c24_351], %251 {strides = array<i32>} : memref<48x32xf32, #tpu.memory_space<vmem>>, vector<24x4xf32>,
    %c24_352 = arith.constant 24 : index
    %c24_353 = arith.constant 24 : index
    %253 = vector.load %arg14[%c24_352, %c24_353] : memref<48x32xf32, #tpu.memory_space<vmem>>, vector<24x4xf32>
    %c0_354 = arith.constant 0 : index
    %c24_355 = arith.constant 24 : index
    %254 = vector.load %arg2[%c0_354, %c24_355] : memref<24x32xbf16, #tpu.memory_space<vmem>>, vector<24x4xbf16>
    %cst_356 = arith.constant dense<0.000000e+00> : vector<24x4xf32>
    %255 = tpu.matmul %254, %187, %cst_356 {dimension_numbers = #tpu.dot_dimension_numbers<[1], [0], [0], [1], [0, 0, 1, 1], [], []>} : vector<24x4xbf16>, vector<4x4xbf16>, vector<24x4xf32> -> vector<24x4xf32>
    %256 = arith.addf %253, %255 : vector<24x4xf32>
    %c24_357 = arith.constant 24 : index
    %c24_358 = arith.constant 24 : index
    %257 = vector.load %arg14[%c24_357, %c24_358] : memref<48x32xf32, #tpu.memory_space<vmem>>, vector<24x4xf32>
    tpu.vector_store %arg14[%c24_357, %c24_358], %256 {strides = array<i32>} : memref<48x32xf32, #tpu.memory_space<vmem>>, vector<24x4xf32>,
    %c0_359 = arith.constant 0 : index
    %c28_360 = arith.constant 28 : index
    %258 = vector.load %arg14[%c0_359, %c28_360] : memref<48x32xf32, #tpu.memory_space<vmem>>, vector<24x4xf32>
    %c24_361 = arith.constant 24 : index
    %c28_362 = arith.constant 28 : index
    %259 = vector.load %arg1[%c24_361, %c28_362] : memref<48x32xbf16, #tpu.memory_space<vmem>>, vector<24x4xbf16>
    %cst_363 = arith.constant dense<0.000000e+00> : vector<24x4xf32>
    %260 = tpu.matmul %259, %187, %cst_363 {dimension_numbers = #tpu.dot_dimension_numbers<[1], [0], [0], [1], [0, 0, 1, 1], [], []>} : vector<24x4xbf16>, vector<4x4xbf16>, vector<24x4xf32> -> vector<24x4xf32>
    %261 = arith.addf %258, %260 : vector<24x4xf32>
    %c0_364 = arith.constant 0 : index
    %c28_365 = arith.constant 28 : index
    %262 = vector.load %arg14[%c0_364, %c28_365] : memref<48x32xf32, #tpu.memory_space<vmem>>, vector<24x4xf32>
    tpu.vector_store %arg14[%c0_364, %c28_365], %261 {strides = array<i32>} : memref<48x32xf32, #tpu.memory_space<vmem>>, vector<24x4xf32>,
    %c24_366 = arith.constant 24 : index
    %c28_367 = arith.constant 28 : index
    %263 = vector.load %arg14[%c24_366, %c28_367] : memref<48x32xf32, #tpu.memory_space<vmem>>, vector<24x4xf32>
    %c0_368 = arith.constant 0 : index
    %c28_369 = arith.constant 28 : index
    %264 = vector.load %arg2[%c0_368, %c28_369] : memref<24x32xbf16, #tpu.memory_space<vmem>>, vector<24x4xbf16>
    %cst_370 = arith.constant dense<0.000000e+00> : vector<24x4xf32>
    %265 = tpu.matmul %264, %187, %cst_370 {dimension_numbers = #tpu.dot_dimension_numbers<[1], [0], [0], [1], [0, 0, 1, 1], [], []>} : vector<24x4xbf16>, vector<4x4xbf16>, vector<24x4xf32> -> vector<24x4xf32>
    %266 = arith.addf %263, %265 : vector<24x4xf32>
    %c24_371 = arith.constant 24 : index
    %c28_372 = arith.constant 28 : index
    %267 = vector.load %arg14[%c24_371, %c28_372] : memref<48x32xf32, #tpu.memory_space<vmem>>, vector<24x4xf32>
    tpu.vector_store %arg14[%c24_371, %c28_372], %266 {strides = array<i32>} : memref<48x32xf32, #tpu.memory_space<vmem>>, vector<24x4xf32>,
    %c0_373 = arith.constant 0 : index
    %c0_374 = arith.constant 0 : index
    %268 = vector.load %arg4[%c0_373, %c0_374] : memref<1x32xf32, #tpu.memory_space<vmem>>, vector<1x32xf32>
    %269 = vector.shape_cast %268 : vector<1x32xf32> to vector<32xf32>
    %c0_375 = arith.constant 0 : index
    %c0_376 = arith.constant 0 : index
    %270 = vector.load %arg14[%c0_375, %c0_376] : memref<48x32xf32, #tpu.memory_space<vmem>>, vector<24x32xf32>
    %271 = vector.shape_cast %269 : vector<32xf32> to vector<1x32xf32>
    %272 = vector.broadcast %271 : vector<1x32xf32> to vector<24x32xf32>
    %273 = arith.addf %270, %272 : vector<24x32xf32>
    %cst_377 = arith.constant 0.000000e+00 : f32
    %274 = vector.broadcast %cst_377 : f32 to vector<24x32xf32>
    %275 = arith.maximumf %273, %274 : vector<24x32xf32>
    %c24_378 = arith.constant 24 : index
    %c0_379 = arith.constant 0 : index
    %276 = vector.load %arg1[%c24_378, %c0_379] : memref<48x32xbf16, #tpu.memory_space<vmem>>, vector<24x32xbf16>
    %277 = arith.extf %276 : vector<24x32xbf16> to vector<24x32xf32>
    %278 = arith.addf %275, %277 : vector<24x32xf32>
    %c0_380 = arith.constant 0 : index
    %c0_381 = arith.constant 0 : index
    %279 = vector.load %arg14[%c0_380, %c0_381] : memref<48x32xf32, #tpu.memory_space<vmem>>, vector<24x32xf32>
    tpu.vector_store %arg14[%c0_380, %c0_381], %278 {strides = array<i32>} : memref<48x32xf32, #tpu.memory_space<vmem>>, vector<24x32xf32>,
    %c24_382 = arith.constant 24 : index
    %c0_383 = arith.constant 0 : index
    %280 = vector.load %arg14[%c24_382, %c0_383] : memref<48x32xf32, #tpu.memory_space<vmem>>, vector<24x32xf32>
    %281 = vector.shape_cast %269 : vector<32xf32> to vector<1x32xf32>
    %282 = vector.broadcast %281 : vector<1x32xf32> to vector<24x32xf32>
    %283 = arith.addf %280, %282 : vector<24x32xf32>
    %cst_384 = arith.constant 0.000000e+00 : f32
    %284 = vector.broadcast %cst_384 : f32 to vector<24x32xf32>
    %285 = arith.maximumf %283, %284 : vector<24x32xf32>
    %c0_385 = arith.constant 0 : index
    %c0_386 = arith.constant 0 : index
    %286 = vector.load %arg2[%c0_385, %c0_386] : memref<24x32xbf16, #tpu.memory_space<vmem>>, vector<24x32xbf16>
    %287 = arith.extf %286 : vector<24x32xbf16> to vector<24x32xf32>
    %288 = arith.addf %285, %287 : vector<24x32xf32>
    %c24_387 = arith.constant 24 : index
    %c0_388 = arith.constant 0 : index
    %289 = vector.load %arg14[%c24_387, %c0_388] : memref<48x32xf32, #tpu.memory_space<vmem>>, vector<24x32xf32>
    tpu.vector_store %arg14[%c24_387, %c0_388], %288 {strides = array<i32>} : memref<48x32xf32, #tpu.memory_space<vmem>>, vector<24x32xf32>,
    %c0_389 = arith.constant 0 : index
    %c0_390 = arith.constant 0 : index
    %290 = vector.load %arg14[%c0_389, %c0_390] : memref<48x32xf32, #tpu.memory_space<vmem>>, vector<48x32xf32>
    %c0_391 = arith.constant 0 : index
    %c0_392 = arith.constant 0 : index
    %291 = vector.load %arg5[%c0_391, %c0_392] : memref<1x32xf32, #tpu.memory_space<vmem>>, vector<1x32xf32>
    %292 = vector.shape_cast %291 : vector<1x32xf32> to vector<32xf32>
    %c0_393 = arith.constant 0 : index
    %c0_394 = arith.constant 0 : index
    %293 = vector.load %arg6[%c0_393, %c0_394] : memref<1x32xf32, #tpu.memory_space<vmem>>, vector<1x32xf32>
    %294 = vector.shape_cast %293 : vector<1x32xf32> to vector<32xf32>
    %cst_395 = arith.constant dense<0.000000e+00> : vector<48xf32>
    %295 = vector.multi_reduction <add>, %290, %cst_395 [1] : vector<48x32xf32> to vector<48xf32>
    %296 = vector.shape_cast %295 : vector<48xf32> to vector<48x1xf32>
    %cst_396 = arith.constant 3.200000e+01 : f32
    %297 = vector.broadcast %cst_396 : f32 to vector<48x1xf32>
    %298 = arith.divf %296, %297 : vector<48x1xf32>
    %299 = vector.broadcast %298 : vector<48x1xf32> to vector<48x32xf32>
    %300 = arith.subf %290, %299 : vector<48x32xf32>
    %301 = arith.mulf %300, %300 : vector<48x32xf32>
    %cst_397 = arith.constant dense<0.000000e+00> : vector<48xf32>
    %302 = vector.multi_reduction <add>, %301, %cst_397 [1] : vector<48x32xf32> to vector<48xf32>
    %303 = vector.shape_cast %302 : vector<48xf32> to vector<48x1xf32>
    %cst_398 = arith.constant 3.200000e+01 : f32
    %304 = vector.broadcast %cst_398 : f32 to vector<48x1xf32>
    %305 = arith.divf %303, %304 : vector<48x1xf32>
    %306 = vector.broadcast %298 : vector<48x1xf32> to vector<48x32xf32>
    %307 = arith.subf %290, %306 : vector<48x32xf32>
    %cst_399 = arith.constant 9.99999974E-6 : f32
    %308 = vector.broadcast %cst_399 : f32 to vector<48x1xf32>
    %309 = arith.addf %305, %308 : vector<48x1xf32>
    %310 = math.rsqrt %309 : vector<48x1xf32>
    %311 = vector.broadcast %310 : vector<48x1xf32> to vector<48x32xf32>
    %312 = arith.mulf %307, %311 : vector<48x32xf32>
    %313 = vector.shape_cast %292 : vector<32xf32> to vector<1x32xf32>
    %314 = vector.broadcast %313 : vector<1x32xf32> to vector<48x32xf32>
    %315 = arith.mulf %312, %314 : vector<48x32xf32>
    %316 = vector.shape_cast %294 : vector<32xf32> to vector<1x32xf32>
    %317 = vector.broadcast %316 : vector<1x32xf32> to vector<48x32xf32>
    %318 = arith.addf %315, %317 : vector<48x32xf32>
    %319 = arith.truncf %318 : vector<48x32xf32> to vector<48x32xbf16>
    %c0_400 = arith.constant 0 : index
    %c0_401 = arith.constant 0 : index
    %320 = vector.load %arg7[%c0_400, %c0_401] : memref<32x32xbf16, #tpu.memory_space<vmem>>, vector<32x32xbf16>
    %cst_402 = arith.constant dense<0.000000e+00> : vector<48x32xf32>
    %321 = tpu.matmul %319, %320, %cst_402 {dimension_numbers = #tpu.dot_dimension_numbers<[1], [0], [0], [1], [0, 0, 1, 1], [], []>} : vector<48x32xbf16>, vector<32x32xbf16>, vector<48x32xf32> -> vector<48x32xf32>
    %c0_403 = arith.constant 0 : index
    %c0_404 = arith.constant 0 : index
    %322 = vector.load %arg8[%c0_403, %c0_404] : memref<1x32xf32, #tpu.memory_space<vmem>>, vector<1x32xf32>
    %323 = vector.shape_cast %322 : vector<1x32xf32> to vector<32xf32>
    %324 = vector.shape_cast %323 : vector<32xf32> to vector<1x32xf32>
    %325 = vector.broadcast %324 : vector<1x32xf32> to vector<48x32xf32>
    %326 = arith.addf %321, %325 : vector<48x32xf32>
    %cst_405 = arith.constant 0.000000e+00 : f32
    %327 = vector.broadcast %cst_405 : f32 to vector<48x32xf32>
    %328 = arith.maximumf %326, %327 : vector<48x32xf32>
    %329 = arith.truncf %328 : vector<48x32xf32> to vector<48x32xbf16>
    %c0_406 = arith.constant 0 : index
    %c0_407 = arith.constant 0 : index
    %330 = vector.load %arg9[%c0_406, %c0_407] : memref<32x32xbf16, #tpu.memory_space<vmem>>, vector<32x32xbf16>
    %cst_408 = arith.constant dense<0.000000e+00> : vector<48x32xf32>
    %331 = tpu.matmul %329, %330, %cst_408 {dimension_numbers = #tpu.dot_dimension_numbers<[1], [0], [0], [1], [0, 0, 1, 1], [], []>} : vector<48x32xbf16>, vector<32x32xbf16>, vector<48x32xf32> -> vector<48x32xf32>
    %c0_409 = arith.constant 0 : index
    %c0_410 = arith.constant 0 : index
    %332 = vector.load %arg10[%c0_409, %c0_410] : memref<1x32xf32, #tpu.memory_space<vmem>>, vector<1x32xf32>
    %333 = vector.shape_cast %332 : vector<1x32xf32> to vector<32xf32>
    %334 = vector.shape_cast %333 : vector<32xf32> to vector<1x32xf32>
    %335 = vector.broadcast %334 : vector<1x32xf32> to vector<48x32xf32>
    %336 = arith.addf %331, %335 : vector<48x32xf32>
    %337 = arith.addf %336, %318 : vector<48x32xf32>
    %c0_411 = arith.constant 0 : index
    %c0_412 = arith.constant 0 : index
    %338 = vector.load %arg11[%c0_411, %c0_412] : memref<1x32xf32, #tpu.memory_space<vmem>>, vector<1x32xf32>
    %339 = vector.shape_cast %338 : vector<1x32xf32> to vector<32xf32>
    %c0_413 = arith.constant 0 : index
    %c0_414 = arith.constant 0 : index
    %340 = vector.load %arg12[%c0_413, %c0_414] : memref<1x32xf32, #tpu.memory_space<vmem>>, vector<1x32xf32>
    %341 = vector.shape_cast %340 : vector<1x32xf32> to vector<32xf32>
    %cst_415 = arith.constant dense<0.000000e+00> : vector<48xf32>
    %342 = vector.multi_reduction <add>, %337, %cst_415 [1] : vector<48x32xf32> to vector<48xf32>
    %343 = vector.shape_cast %342 : vector<48xf32> to vector<48x1xf32>
    %cst_416 = arith.constant 3.200000e+01 : f32
    %344 = vector.broadcast %cst_416 : f32 to vector<48x1xf32>
    %345 = arith.divf %343, %344 : vector<48x1xf32>
    %346 = vector.broadcast %345 : vector<48x1xf32> to vector<48x32xf32>
    %347 = arith.subf %337, %346 : vector<48x32xf32>
    %348 = arith.mulf %347, %347 : vector<48x32xf32>
    %cst_417 = arith.constant dense<0.000000e+00> : vector<48xf32>
    %349 = vector.multi_reduction <add>, %348, %cst_417 [1] : vector<48x32xf32> to vector<48xf32>
    %350 = vector.shape_cast %349 : vector<48xf32> to vector<48x1xf32>
    %cst_418 = arith.constant 3.200000e+01 : f32
    %351 = vector.broadcast %cst_418 : f32 to vector<48x1xf32>
    %352 = arith.divf %350, %351 : vector<48x1xf32>
    %353 = vector.broadcast %345 : vector<48x1xf32> to vector<48x32xf32>
    %354 = arith.subf %337, %353 : vector<48x32xf32>
    %cst_419 = arith.constant 9.99999974E-6 : f32
    %355 = vector.broadcast %cst_419 : f32 to vector<48x1xf32>
    %356 = arith.addf %352, %355 : vector<48x1xf32>
    %357 = math.rsqrt %356 : vector<48x1xf32>
    %358 = vector.broadcast %357 : vector<48x1xf32> to vector<48x32xf32>
    %359 = arith.mulf %354, %358 : vector<48x32xf32>
    %360 = vector.shape_cast %339 : vector<32xf32> to vector<1x32xf32>
    %361 = vector.broadcast %360 : vector<1x32xf32> to vector<48x32xf32>
    %362 = arith.mulf %359, %361 : vector<48x32xf32>
    %363 = vector.shape_cast %341 : vector<32xf32> to vector<1x32xf32>
    %364 = vector.broadcast %363 : vector<1x32xf32> to vector<48x32xf32>
    %365 = arith.addf %362, %364 : vector<48x32xf32>
    %366 = arith.truncf %365 : vector<48x32xf32> to vector<48x32xbf16>
    %c0_420 = arith.constant 0 : index
    %c0_421 = arith.constant 0 : index
    %367 = vector.load %arg13[%c0_420, %c0_421] : memref<48x32xbf16, #tpu.memory_space<vmem>>, vector<48x32xbf16>
    tpu.vector_store %arg13[%c0_420, %c0_421], %366 {strides = array<i32>} : memref<48x32xbf16, #tpu.memory_space<vmem>>, vector<48x32xbf16>,
    return
  }
  func.func @transform_0(%arg0: i32) -> (i32, i32) {
    %c0_i32 = arith.constant 0 : i32
    %c0_i32_0 = arith.constant 0 : i32
    return %arg0, %c0_i32 : i32, i32
  }
  func.func @transform_1(%arg0: i32) -> (i32, i32) {
    %c1_i32 = arith.constant 1 : i32
    %0 = arith.addi %arg0, %c1_i32 : i32
    %c2_i32 = arith.constant 2 : i32
    %1 = arith.muli %0, %c2_i32 : i32
    %c11_i32 = arith.constant 11 : i32
    %2 = arith.minsi %1, %c11_i32 : i32
    %c0_i32 = arith.constant 0 : i32
    %c0_i32_0 = arith.constant 0 : i32
    return %2, %c0_i32 : i32, i32
  }
  func.func @transform_2(%arg0: i32) -> (i32, i32) {
    %c0_i32 = arith.constant 0 : i32
    %c0_i32_0 = arith.constant 0 : i32
    %c0_i32_1 = arith.constant 0 : i32
    return %c0_i32, %c0_i32_0 : i32, i32
  }
  func.func @transform_3(%arg0: i32) -> (i32, i32) {
    %c0_i32 = arith.constant 0 : i32
    %c0_i32_0 = arith.constant 0 : i32
    %c0_i32_1 = arith.constant 0 : i32
    return %c0_i32, %c0_i32_0 : i32, i32
  }
  func.func @transform_4(%arg0: i32) -> (i32, i32) {
    %c0_i32 = arith.constant 0 : i32
    %c0_i32_0 = arith.constant 0 : i32
    %c0_i32_1 = arith.constant 0 : i32
    return %c0_i32, %c0_i32_0 : i32, i32
  }
  func.func @transform_5(%arg0: i32) -> (i32, i32) {
    %c0_i32 = arith.constant 0 : i32
    %c0_i32_0 = arith.constant 0 : i32
    %c0_i32_1 = arith.constant 0 : i32
    return %c0_i32, %c0_i32_0 : i32, i32
  }
  func.func @transform_6(%arg0: i32) -> (i32, i32) {
    %c0_i32 = arith.constant 0 : i32
    %c0_i32_0 = arith.constant 0 : i32
    %c0_i32_1 = arith.constant 0 : i32
    return %c0_i32, %c0_i32_0 : i32, i32
  }
  func.func @transform_7(%arg0: i32) -> (i32, i32) {
    %c0_i32 = arith.constant 0 : i32
    %c0_i32_0 = arith.constant 0 : i32
    %c0_i32_1 = arith.constant 0 : i32
    return %c0_i32, %c0_i32_0 : i32, i32
  }
  func.func @transform_8(%arg0: i32) -> (i32, i32) {
    %c0_i32 = arith.constant 0 : i32
    %c0_i32_0 = arith.constant 0 : i32
    %c0_i32_1 = arith.constant 0 : i32
    return %c0_i32, %c0_i32_0 : i32, i32
  }
  func.func @transform_9(%arg0: i32) -> (i32, i32) {
    %c0_i32 = arith.constant 0 : i32
    %c0_i32_0 = arith.constant 0 : i32
    %c0_i32_1 = arith.constant 0 : i32
    return %c0_i32, %c0_i32_0 : i32, i32
  }
  func.func @transform_10(%arg0: i32) -> (i32, i32) {
    %c0_i32 = arith.constant 0 : i32
    %c0_i32_0 = arith.constant 0 : i32
    %c0_i32_1 = arith.constant 0 : i32
    return %c0_i32, %c0_i32_0 : i32, i32
  }
  func.func @transform_11(%arg0: i32) -> (i32, i32) {
    %c0_i32 = arith.constant 0 : i32
    %c0_i32_0 = arith.constant 0 : i32
    %c0_i32_1 = arith.constant 0 : i32
    return %c0_i32, %c0_i32_0 : i32, i32
  }
  func.func @transform_12(%arg0: i32) -> (i32, i32) {
    %c0_i32 = arith.constant 0 : i32
    %c0_i32_0 = arith.constant 0 : i32
    return %arg0, %c0_i32 : i32, i32
  }
}

</mosaic_0001>

<bundles_post_ra>
// kernel: tpu_custom_call.1
= control target key start
LH: loop header
LB: loop body
LE: loop exit
PB: predicated region body
PF: predicated region fallthrough
CT: control target
= control target key end

     0   :  { %s7376_s21 = smov 0   ;;  %s8865_s0 = inlined_call_operand.vmem [shape: bf16[288,32], index: 0, kind: input, shape index: {}]   ;;  %s8866_s1 = inlined_call_operand.vmem [shape: bf16[288,32], index: 1, kind: input, shape index: {}]   ;;  %s8867_s2 = inlined_call_operand.vmem [shape: bf16[16,4], index: 2, kind: input, shape index: {}]   ;;  %s8868_s3 = inlined_call_operand.vmem [shape: f32[1,32], index: 3, kind: input, shape index: {}]   ;;  %s8869_s4 = inlined_call_operand.vmem [shape: f32[1,32], index: 4, kind: input, shape index: {}]   ;;  %s8870_s5 = inlined_call_operand.vmem [shape: f32[1,32], index: 5, kind: input, shape index: {}]   ;;  %s8871_s6 = inlined_call_operand.vmem [shape: bf16[32,32], index: 6, kind: input, shape index: {}]   ;;  %s8872_s7 = inlined_call_operand.vmem [shape: f32[1,32], index: 7, kind: input, shape index: {}]   ;;  %s8873_s8 = inlined_call_operand.vmem [shape: bf16[32,32], index: 8, kind: input, shape index: {}]   ;;  %s8874_s9 = inlined_call_operand.vmem [shape: f32[1,32], index: 9, kind: input, shape index: {}]   ;;  %s8875_s10 = inlined_call_operand.vmem [shape: f32[1,32], index: 10, kind: input, shape index: {}]   ;;  %s8876_s11 = inlined_call_operand.vmem [shape: f32[1,32], index: 11, kind: input, shape index: {}]   ;;  %s8877_s12 = inlined_call_operand.vmem [shape: bf16[240,32], index: 12, kind: output, shape index: {}]  }
   0x1 LB: > { %s6142_s22 = sadd.s32 4294967295, %s7293_s21   ;;  %p6148_p0 = scmp.ge.s32.totalorder %s7293_s21, 1  ;;  %s7293_s21 = sphi %s7376_s21, %s22_s21  }
   0x2   : > { %p390_p1 = scmp.lt.s32.totalorder %s7293_s21, 6 }
   0x4   : > { %p391_p2 = pnand %p6148_p0, %p390_p1 }
   0x5   : > { %s7384_s23 = smul.u32 (!%p391_p2), 6, %s6142_s22  ;;  %s6407_s27 = sshll.u32 (!%p391_p2), %s6142_s22, 1 }
   0x6   : > { %394 = sbr.rel (%p391_p2) target bundleno = 1877 (0x755), region = 68  ;;  %s6408_s29 = sadd.s32 (!%p391_p2), 2, %s6407_s27 }
   0x7   : > { %p442_p3 = scmp.lt.s32.totalorder (!%p391_p2), %s7384_s23, 35  ;;  %p449_p4 = scmp.lt.s32.totalorder (!%p391_p2), %s6408_s29, 11 }
   0x8   : > { %s7297_s15 = smov (!%p391_p2), 120   ;;  %s7298_s16 = smov (!%p391_p2), 124  }
   0x9   : > { %s7299_s18 = smov (!%p391_p2), 116   ;;  %s7300_s20 = smov (!%p391_p2), 112  }
   0xa   : > { %s7302_s27 = smov (!%p391_p2), 104   ;;  %p462_p6 = scmp.lt.s32.totalorder (!%p391_p2), %s7384_s23, 29 }
   0xb   : > { %v468_v0 = vld [vmem:[%s8867_s2] sm:$0x3]  ;;  %vm500_vm0 = vcmask 1041408   ;;  %v7295_v1 = vmov 0.0   ;;  %vm7296_vm1 = vmmov 0   ;;  %s443_s26 = scalar_select %p442_p3, %s7384_s23, 35 }
   0xc   : > { %6602 = vmatprep.subr.bf16.mxu0 %v7295_v1  ;;  %v7391_v2 = vsel %vm500_vm0, %v468_v0, 0  ;;  %6616 = vmatprep.subr.bf16.mxu1 %v7295_v1  ;;  %s8879_s29 = smov (!%p449_p4, %s6408_s29), 11  ;;  %vm490_vm2 = vcmask 31744   ;;  %vm684_vm3 = vcmask 64544   ;;  %vm808_vm4 = vcmask 97344   ;;  %s8883_s23 = smov (!%p462_p6, %s7384_s23), 29 }
   0xd   : > { %6603 = vmatpush3.bf16.msra.mxu0 %v7391_v2  ;;  %6604 = vmatprep.mubr.msk.bf16.mxu0 %vm7296_vm1, %v7295_v1  ;;  %s6149_s28 = sshll.u32 %s443_s26, 2  ;;  %s451_s17 = smul.u32 3, %s8879_s29  ;;  %vm932_vm5 = vcmask 130144   ;;  %vm1056_vm6 = vcmask 162944   ;;  %vm1180_vm7 = vcmask 195744   ;;  %vm1304_vm8 = vcmask 228544  }
   0xe   : > { %6630 = vmatprep.subr.bf16.mxu0 %v7295_v1  ;;  %6617 = vmatpush3.bf16.msra.mxu1 %v7391_v2  ;;  %s7407_s14 = scalar_lea.vmem %s8865_s0, %s6149_s28  ;;  %s7301_s26 = smov 108   ;;  %vm1428_vm9 = vcmask 261344   ;;  %vm5607_vm10 = vcmask 261120   ;;  %vm6067_vm11 = vcmask 257024  }
   0xf   : > { %6618 = vmatprep.mubr.msk.bf16.mxu1 %vm7296_vm1, %v7295_v1  ;;  %6644 = vmatprep.subr.bf16.mxu1 %v7295_v1  ;;  %v7146_v3 = vld [vmem:[%s7407_s14] sm:$0xff]   ;;  %v7148_v5 = vld [vmem:[%s7407_s14 + $0x8] sm:$0xff]   ;;  %v7150_v6 = vld [vmem:[%s7407_s14 + $0x10] sm:$0xff]   ;;  %p452_p5 = scmp.lt.s32.totalorder %s451_s17, 35  ;;  %s7303_s28 = smov 100  }
  0x10   : > { %v7147_v4 = vld [vmem:[%s7407_s14] sm:$0xff]   ;;  %712 = vrot.lane.b32.xlu1 %v7146_v3, %s7297_s15  ;;  %v7149_v8 = vld [vmem:[%s7407_s14 + $0x8] sm:$0xff]   ;;  %v7151_v10 = vld [vmem:[%s7407_s14 + $0x10] sm:$0xff]  }
  0x11   : > { %588 = vrot.lane.b32.xlu0 %v7147_v4, %s7298_s16  ;;  %v7152_v7 = vld [vmem:[%s7407_s14] sm:$0xff]   ;;  %v7154_v9 = vld [vmem:[%s7407_s14 + $0x8] sm:$0xff]   ;;  %v7156_v11 = vld [vmem:[%s7407_s14 + $0x10] sm:$0xff]   ;;  %s8881_s17 = smov (!%p452_p5, %s451_s17), 35 }
  0x12   : > { %v7153_v12 = vld [vmem:[%s7407_s14] sm:$0xff]   ;;  %s6151_s19 = sshll.u32 %s8881_s17, 2  ;;  %v7155_v14 = vld [vmem:[%s7407_s14 + $0x8] sm:$0xff]   ;;  %v7157_v17 = vld [vmem:[%s7407_s14 + $0x10] sm:$0xff]   ;;  %s7305_s17 = smov 8  }
  0x13   : > { %v7158_v13 = vld [vmem:[%s7407_s14] sm:$0xff]   ;;  %s7435_s25 = scalar_lea.vmem %s8866_s1, %s6151_s19  ;;  %v7160_v16 = vld [vmem:[%s7407_s14 + $0x8] sm:$0xff]   ;;  %v7162_v19 = vld [vmem:[%s7407_s14 + $0x10] sm:$0xff]   ;;  %s7307_s19 = smov 16  }
  0x14   : > { %592 = vrot.lane.b32.xlu1 %v7150_v6, %s7298_s16  ;;  %v7167_v15 = vld [vmem:[%s7407_s14] sm:$0xff]   ;;  %v7169_v20 = vld [vmem:[%s7407_s14 + $0x8] sm:$0xff]   ;;  %v7163_v24 = vld [vmem:[%s7407_s14 + $0x10] sm:$0xff]  }
  0x15   : > { %590 = vrot.lane.b32.xlu0 %v7148_v5, %s7298_s16  ;;  %6605 = vmatmul.mubr.msk.bf16.vlgmr.msra.gmra.mxu0 %vm490_vm2, %v7167_v15  ;;  %v7159_v18 = vld [vmem:[%s7407_s14] sm:$0xff]   ;;  %v7161_v22 = vld [vmem:[%s7407_s14 + $0x8] sm:$0xff]   ;;  %v7172_v25 = vld [vmem:[%s7407_s14 + $0x10] sm:$0xff]  }
  0x16   : > { %6631 = vmatpush3.bf16.msra.mxu0 %v7391_v2  ;;  %6608 = vmatprep.mubr.msk.bf16.mxu0 %vm7296_vm1, %v7295_v1  ;;  %v7164_v21 = vld [vmem:[%s7407_s14] sm:$0xff]   ;;  %v7165_v23 = vld [vmem:[%s7407_s14 + $0x8] sm:$0xff]   ;;  %v7166_v27 = vld [vmem:[%s7407_s14 + $0x10] sm:$0xff]  }
  0x17   : > { %6658 = vmatprep.subr.bf16.mxu0 %v7295_v1  ;;  %v7170_v26 = vld [vmem:[%s7407_s14 + $0x4] sm:$0xff]   ;;  %v7173_v28 = vld [vmem:[%s7407_s14 + $0xc] sm:$0xff]   ;;  %v7168_v29 = vld [vmem:[%s7435_s25] ss:$0 sps:$4 sm:$0xff]  }
  0x18   : > { %836 = vrot.lane.b32.xlu1 %v7152_v7, %s7299_s18  ;;  %v7171_v30 = vld [vmem:[%s7407_s14 + $0x4] sm:$0xff]   ;;  %v7175_v31 = vld [vmem:[%s7407_s14 + $0x14] ss:$0 sps:$4 sm:$0xff]   ;;  %v7177_v32 = vld [vmem:[%s7435_s25] ss:$0 sps:$4 sm:$0xff]  }
  0x19   : > { %714 = vrot.lane.b32.xlu0 %v7149_v8, %s7297_s15  ;;  %v7174_v33 = vld [vmem:[%s7407_s14 + $0xc] sm:$0xff]   ;;  %v7176_v34 = vld [vmem:[%s7407_s14 + $0x14] ss:$0 sps:$4 sm:$0xff]   ;;  %v7179_v35 = vld [vmem:[%s7407_s14 + $0x4] sm:$0xff]  }
  0x1a   : > { %v7181_v36 = vld [vmem:[%s7407_s14 + $0xc] sm:$0xff]   ;;  %v7178_v37 = vld [vmem:[%s7435_s25] ss:$0 sps:$4 sm:$0xff]   ;;  %v7183_v38 = vld [vmem:[%s7407_s14 + $0x14] ss:$0 sps:$4 sm:$0xff]  }
  0x1b   : > { %v7180_v39 = vld [vmem:[%s7407_s14 + $0x4] sm:$0xff]   ;;  %v7185_v40 = vld [vmem:[%s7435_s25] ss:$0 sps:$4 sm:$0xff]   ;;  %v7182_v41 = vld [vmem:[%s7407_s14 + $0xc] sm:$0xff]  }
  0x1c   : > { %838 = vrot.lane.b32.xlu1 %v7154_v9, %s7299_s18  ;;  %v7184_v42 = vld [vmem:[%s7407_s14 + $0x14] ss:$0 sps:$4 sm:$0xff]   ;;  %v7188_v43 = vld [vmem:[%s7407_s14 + $0x4] sm:$0xff]   ;;  %v7190_v44 = vld [vmem:[%s7407_s14 + $0xc] sm:$0xff]  }
  0x1d   : > { %716 = vrot.lane.b32.xlu0 %v7151_v10, %s7297_s15  ;;  %6609 = vmatmul.mubr.msk.bf16.gmra.mxu0 %vm490_vm2, %v7169_v20  ;;  %v7186_v45 = vld [vmem:[%s7435_s25] ss:$0 sps:$4 sm:$0xff]   ;;  %v7192_v46 = vld [vmem:[%s7407_s14 + $0x14] ss:$0 sps:$4 sm:$0xff]   ;;  %v7189_v47 = vld [vmem:[%s7407_s14 + $0x4] sm:$0xff]  }
  0x1e   : > { %6612 = vmatprep.mubr.msk.bf16.mxu0 %vm7296_vm1, %v7295_v1  ;;  %v7195_v48 = vld [vmem:[%s7435_s25] ss:$0 sps:$4 sm:$0xff]   ;;  %v7191_v49 = vld [vmem:[%s7407_s14 + $0xc] sm:$0xff]   ;;  %v7198_v50 = vld [vmem:[%s7407_s14 + $0x4] sm:$0xff]  }
  0x1f   : > { %v7193_v51 = vld [vmem:[%s7407_s14 + $0x14] ss:$0 sps:$4 sm:$0xff]   ;;  %v7200_v52 = vld [vmem:[%s7407_s14 + $0xc] sm:$0xff]   ;;  %v7196_v53 = vld [vmem:[%s7435_s25] ss:$0 sps:$4 sm:$0xff]  }
  0x20   : > { %840 = vrot.lane.b32.xlu1 %v7156_v11, %s7299_s18  ;;  %v7202_v54 = vld [vmem:[%s7407_s14 + $0x10] sm:$0xff]   ;;  %v7201_v55 = vld [vmem:[%s7407_s14 + $0x8] sm:$0xff]   ;;  %v7206_v58 = vld [vmem:[%s7435_s25] sm:$0xff]  }
  0x21   : > { %960 = vrot.lane.b32.xlu0 %v7153_v12, %s7300_s20  ;;  %v7204_v56 = vld [vmem:[%s7407_s14 + $0x8] sm:$0xff]   ;;  %v7203_v57 = vld [vmem:[%s7407_s14 + $0x14] ss:$0 sps:$4 sm:$0xff]   ;;  %v7209_v63 = vld [vmem:[%s7435_s25] sm:$0xff]  }
  0x22   : > { %v7205_v59 = vld [vmem:[%s7407_s14 + $0x10] sm:$0xff]   ;;  %v7207_v61 = vld [vmem:[%s7407_s14 + $0x8] sm:$0xff]   ;;  %v7212_v5 = vld [vmem:[%s7435_s25] sm:$0xff]  }
  0x23   : > { %v7208_v60 = vld [vmem:[%s7407_s14 + $0x10] sm:$0xff]   ;;  %v7210_v62 = vld [vmem:[%s7407_s14 + $0x8] sm:$0xff]   ;;  %v7215_v10 = vld [vmem:[%s7435_s25] sm:$0xff]  }
  0x24   : > { %1084 = vrot.lane.b32.xlu1 %v7158_v13, %s7301_s26  ;;  %v7211_v4 = vld [vmem:[%s7407_s14 + $0x10] sm:$0xff]   ;;  %v7213_v7 = vld [vmem:[%s7407_s14 + $0x8] sm:$0xff]   ;;  %v7218_v15 = vld [vmem:[%s7435_s25] sm:$0xff]  }
  0x25   : > { %962 = vrot.lane.b32.xlu0 %v7155_v14, %s7300_s20  ;;  %6613 = vmatmul.mubr.msk.bf16.gmra.mxu0 %vm490_vm2, %v7172_v25  ;;  %v7214_v8 = vld [vmem:[%s7407_s14 + $0x10] sm:$0xff]   ;;  %v7216_v11 = vld [vmem:[%s7407_s14 + $0x8] sm:$0xff]  }
  0x26   : > { %6632 = vmatprep.mubr.msk.bf16.mxu0 %vm7296_vm1, %v7295_v1  ;;  %v7217_v12 = vld [vmem:[%s7407_s14 + $0x10] sm:$0xff]  }
  0x27   : > { %v7224_v25 = vld [vmem:[%s7407_s14 + $0x14] ss:$0 sps:$4 sm:$0xff]  }
  0x28   : > { %1086 = vrot.lane.b32.xlu1 %v7160_v16, %s7301_s26  ;;  %v7219_v16 = vld [vmem:[%s7407_s14 + $0x8] sm:$0xff]  }
  0x29   : > { %964 = vrot.lane.b32.xlu0 %v7157_v17, %s7300_s20  ;;  %v7220_v17 = vld [vmem:[%s7407_s14 + $0x10] sm:$0xff]  }
  0x2c   : > { %1088 = vrot.lane.b32.xlu1 %v7162_v19, %s7301_s26 }
  0x2d   : > { %1208 = vrot.lane.b32.xlu0 %v7159_v18, %s7302_s27  ;;  %v7221_v18 = vld [vmem:[%s7435_s25] sm:$0xff]  }
  0x30   : > { %1332 = vrot.lane.b32.xlu1 %v7164_v21, %s7303_s28  ;;  %v7222_v21 = vld [vmem:[%s7435_s25] sm:$0xff]  }
  0x31   : > { %1210 = vrot.lane.b32.xlu0 %v7161_v22, %s7302_s27  ;;  %v7223_v22 = vld [vmem:[%s7407_s14 + $0xc] sm:$0xff]  }
  0x34   : > { %1334 = vrot.lane.b32.xlu1 %v7165_v23, %s7303_s28 }
  0x35   : > { %1212 = vrot.lane.b32.xlu0 %v7163_v24, %s7302_s27 }
  0x38   : > { %1611 = vrot.lane.b32.xlu1 %v7170_v26, %s7298_s16  ;;  %v7225_v26 = vld [vmem:[%s7407_s14 + $0xc] sm:$0xff]  }
  0x39   : > { %1336 = vrot.lane.b32.xlu0 %v7166_v27, %s7303_s28  ;;  %v7226_v27 = vld [vmem:[%s7407_s14 + $0x14] ss:$0 sps:$4 sm:$0xff]  }
  0x3c   : > { %1613 = vrot.lane.b32.xlu1 %v7173_v28, %s7298_s16  ;;  %v7227_v28 = vld [vmem:[%s7435_s25] sm:$0xff]  }
  0x3d   : > { %1717 = vrot.lane.b32.xlu0 %v7168_v29, %s7298_s16 }
  0x40   : > { %1615 = vrot.lane.b32.xlu1 %v7175_v31, %s7298_s16  ;;  %v7187_v31 = vld [vmem:[%s8867_s2] ss:$0 sps:$4 sm:$0xcc]  }
  0x41   : > { %1791 = vrot.lane.b32.xlu0 %v7171_v30, %s7297_s15 }
  0x44   : > { %1897 = vrot.lane.b32.xlu1 %v7177_v32, %s7297_s15  ;;  %v7228_v32 = vld [vmem:[%s7435_s25 + $0x8] ss:$0 sps:$4 sm:$0xff]  }
  0x45   : > { %1793 = vrot.lane.b32.xlu0 %v7174_v33, %s7297_s15  ;;  %v7229_v33 = vld [vmem:[%s7407_s14 + $0xc] sm:$0xff]  }
  0x48   : > { %1971 = vrot.lane.b32.xlu1 %v7179_v35, %s7299_s18  ;;  %v7230_v35 = vld [vmem:[%s7407_s14 + $0x14] ss:$0 sps:$4 sm:$0xff]  }
  0x49   : > { %1795 = vrot.lane.b32.xlu0 %v7176_v34, %s7297_s15  ;;  %v1462_v34 = vrot.slane %v7187_v31, 2 }
  0x4c   : > { %1973 = vrot.lane.b32.xlu1 %v7181_v36, %s7299_s18  ;;  %v7231_v36 = vld [vmem:[%s7435_s25] sm:$0xff]  }
  0x4d   : > { %2077 = vrot.lane.b32.xlu0 %v7178_v37, %s7299_s18 }
  0x50   : > { %1975 = vrot.lane.b32.xlu1 %v7183_v38, %s7299_s18 }
  0x51   : > { %2151 = vrot.lane.b32.xlu0 %v7180_v39, %s7300_s20  ;;  %v7632_v39 = vsel %vm500_vm0, %v1462_v34, 0 }
  0x54   : > { %2257 = vrot.lane.b32.xlu1 %v7185_v40, %s7300_s20  ;;  %v7232_v40 = vld [vmem:[%s7435_s25 + $0x8] ss:$0 sps:$4 sm:$0xff]  }
  0x55   : > { %2153 = vrot.lane.b32.xlu0 %v7182_v41, %s7300_s20  ;;  %v7233_v41 = vld [vmem:[%s7407_s14 + $0xc] sm:$0xff]  }
  0x58   : > { %2331 = vrot.lane.b32.xlu1 %v7188_v43, %s7301_s26  ;;  %v7234_v43 = vld [vmem:[%s7407_s14 + $0x14] ss:$0 sps:$4 sm:$0xff]  }
  0x59   : > { %2155 = vrot.lane.b32.xlu0 %v7184_v42, %s7300_s20 }
  0x5c   : > { %2333 = vrot.lane.b32.xlu1 %v7190_v44, %s7301_s26  ;;  %v7235_v44 = vld [vmem:[%s7435_s25] sm:$0xff]  }
  0x5d   : > { %2437 = vrot.lane.b32.xlu0 %v7186_v45, %s7301_s26  ;;  %v7236_v45 = vld [vmem:[%s7435_s25 + $0x8] ss:$0 sps:$4 sm:$0xff]  }
  0x60   : > { %2335 = vrot.lane.b32.xlu1 %v7192_v46, %s7301_s26  ;;  %v7237_v46 = vld [vmem:[%s7407_s14 + $0xc] sm:$0xff]  }
  0x61   : > { %2511 = vrot.lane.b32.xlu0 %v7189_v47, %s7302_s27 }
  0x64   : > { %2617 = vrot.lane.b32.xlu1 %v7195_v48, %s7302_s27 }
  0x65   : > { %2513 = vrot.lane.b32.xlu0 %v7191_v49, %s7302_s27  ;;  %v7238_v49 = vld [vmem:[%s7407_s14 + $0x14] ss:$0 sps:$4 sm:$0xff]  }
  0x68   : > { %2691 = vrot.lane.b32.xlu1 %v7198_v50, %s7303_s28  ;;  %v7239_v50 = vld [vmem:[%s7435_s25] sm:$0xff]  }
  0x69   : > { %2515 = vrot.lane.b32.xlu0 %v7193_v51, %s7302_s27  ;;  %v7240_v51 = vld [vmem:[%s7435_s25 + $0x8] ss:$0 sps:$4 sm:$0xff]  }
  0x6c   : > { %2693 = vrot.lane.b32.xlu1 %v7200_v52, %s7303_s28  ;;  %v7241_v52 = vld [vmem:[%s7407_s14 + $0xc] sm:$0xff]  }
  0x6d   : > { %2797 = vrot.lane.b32.xlu0 %v7196_v53, %s7303_s28  ;;  %v7194_v53 = vld [vmem:[%s7407_s14 + $0x4] sm:$0xff]  }
  0x70   : > { %3010 = vrot.lane.b32.xlu1 %v7202_v54, %s7298_s16 }
  0x71   : > { %3008 = vrot.lane.b32.xlu0 %v7201_v55, %s7298_s16  ;;  %v7242_v55 = vld [vmem:[%s7407_s14 + $0x14] ss:$0 sps:$4 sm:$0xff]  }
  0x74   : > { %3176 = vrot.lane.b32.xlu1 %v7204_v56, %s7297_s15  ;;  %v7243_v56 = vld [vmem:[%s7435_s25] sm:$0xff]  }
  0x75   : > { %2695 = vrot.lane.b32.xlu0 %v7203_v57, %s7303_s28  ;;  %v7197_v57 = vld [vmem:[%s7407_s14 + $0xc] sm:$0xff]  }
  0x78   : > { %3100 = vrot.lane.b32.xlu1 %v7206_v58, %s7298_s16 }
  0x79   : > { %3178 = vrot.lane.b32.xlu0 %v7205_v59, %s7297_s15  ;;  %v7244_v59 = vld [vmem:[%s7435_s25 + $0x8] ss:$0 sps:$4 sm:$0xff]  }
  0x7c   : > { %3346 = vrot.lane.b32.xlu1 %v7208_v60, %s7299_s18  ;;  %v7245_v60 = vld [vmem:[%s7407_s14 + $0xc] sm:$0xff]  }
  0x7d   : > { %3344 = vrot.lane.b32.xlu0 %v7207_v61, %s7299_s18  ;;  %v7246_v61 = vld [vmem:[%s7407_s14 + $0x14] ss:$0 sps:$4 sm:$0xff]  }
  0x80   : > { %3512 = vrot.lane.b32.xlu1 %v7210_v62, %s7300_s20  ;;  %v7247_v62 = vld [vmem:[%s7435_s25] sm:$0xff]  }
  0x81   : > { %3268 = vrot.lane.b32.xlu0 %v7209_v63, %s7297_s15  ;;  %v7199_v63 = vld [vmem:[%s7407_s14 + $0x14] ss:$0 sps:$4 sm:$0xff]  }
  0x82   : > { %v713_v0 = vpop.permute.xlu1 %712 }
  0x83   : > { %v589_v3 = vpop.permute.xlu0 %588  ;;  %6633 = vmatmul.mubr.msk.bf16.vlgmr.msra.gmra.mxu0 %vm490_vm2, %v713_v0 }
  0x84   : > { %6619 = vmatmul.mubr.msk.bf16.vlgmr.msra.gmra.mxu1 %vm490_vm2, %v589_v3  ;;  %6659 = vmatpush3.bf16.msra.mxu0 %v7391_v2  ;;  %v7248_v3 = vld [vmem:[%s7435_s25 + $0x8] ss:$0 sps:$4 sm:$0xff]  }
  0x85   : > { %6645 = vmatpush3.bf16.msra.mxu1 %v7391_v2  ;;  %6622 = vmatprep.mubr.msk.bf16.mxu1 %vm7296_vm1, %v7295_v1 }
  0x86   : > { %6636 = vmatprep.mubr.msk.bf16.mxu0 %vm7296_vm1, %v7295_v1  ;;  %6672 = vmatprep.subr.bf16.mxu1 %v7295_v1  ;;  %v593_v13 = vpop.permute.xlu1 %592 }
  0x87   : > { %v591_v6 = vpop.permute.xlu0 %590  ;;  %6686 = vmatprep.subr.bf16.mxu0 %v7295_v1  ;;  %3514 = vrot.lane.b32.xlu0 %v7211_v4, %s7300_s20  ;;  %v7249_v4 = vld [vmem:[%s7435_s25] sm:$0xff]  }
  0x88   : > { %3436 = vrot.lane.b32.xlu1 %v7212_v5, %s7299_s18  ;;  %v7250_v5 = vld [vmem:[%s7435_s25 + $0x8] ss:$0 sps:$4 sm:$0xff]  }
  0x8a   : > { %v837_v19 = vpop.permute.xlu1 %836 }
  0x8b   : > { %v715_v9 = vpop.permute.xlu0 %714  ;;  %3680 = vrot.lane.b32.xlu0 %v7213_v7, %s7301_s26  ;;  %v1542_v7 = vld [vmem:[%s7435_s25] sm:$0xf] }
  0x8c   : > { %6623 = vmatmul.mubr.msk.bf16.gmra.mxu1 %vm490_vm2, %v591_v6  ;;  %6637 = vmatmul.mubr.msk.bf16.gmra.mxu0 %vm490_vm2, %v715_v9 }
  0x8d   : > { %6626 = vmatprep.mubr.msk.bf16.mxu1 %vm7296_vm1, %v7295_v1  ;;  %6640 = vmatprep.mubr.msk.bf16.mxu0 %vm7296_vm1, %v7295_v1 }
  0x8e   : > { %3682 = vrot.lane.b32.xlu1 %v7214_v8, %s7301_s26  ;;  %v839_v23 = vpop.permute.xlu1 %838 }
  0x8f   : > { %3604 = vrot.lane.b32.xlu0 %v7215_v10, %s7300_s20  ;;  %v717_v14 = vpop.permute.xlu0 %716 }
  0x92   : > { %3848 = vrot.lane.b32.xlu1 %v7216_v11, %s7302_s27  ;;  %v841_v29 = vpop.permute.xlu1 %840 }
  0x93   : > { %3850 = vrot.lane.b32.xlu0 %v7217_v12, %s7302_s27  ;;  %v961_v20 = vpop.permute.xlu0 %960 }
  0x94   : > { %6627 = vmatmul.mubr.msk.bf16.gmra.mxu1 %vm490_vm2, %v593_v13  ;;  %6641 = vmatmul.mubr.msk.bf16.gmra.mxu0 %vm490_vm2, %v717_v14 }
  0x95   : > { %6646 = vmatprep.mubr.msk.bf16.mxu1 %vm7296_vm1, %v7295_v1  ;;  %6660 = vmatprep.mubr.msk.bf16.mxu0 %vm7296_vm1, %v7295_v1 }
  0x96   : > { %3772 = vrot.lane.b32.xlu1 %v7218_v15, %s7301_s26  ;;  %v1085_v37 = vpop.permute.xlu1 %1084 }
  0x97   : > { %4016 = vrot.lane.b32.xlu0 %v7219_v16, %s7303_s28  ;;  %v963_v24 = vpop.permute.xlu0 %962 }
  0x9a   : > { %4018 = vrot.lane.b32.xlu1 %v7220_v17, %s7303_s28  ;;  %v1087_v42 = vpop.permute.xlu1 %1086 }
  0x9b   : > { %3940 = vrot.lane.b32.xlu0 %v7221_v18, %s7302_s27  ;;  %v965_v30 = vpop.permute.xlu0 %964 }
  0x9c   : > { %6647 = vmatmul.mubr.msk.bf16.vlgmr.msra.gmra.mxu1 %vm490_vm2, %v837_v19  ;;  %6661 = vmatmul.mubr.msk.bf16.vlgmr.msra.gmra.mxu0 %vm490_vm2, %v961_v20 }
  0x9d   : > { %6673 = vmatpush3.bf16.msra.mxu1 %v7391_v2  ;;  %6687 = vmatpush3.bf16.msra.mxu0 %v7391_v2 }
  0x9e   : > { %6650 = vmatprep.mubr.msk.bf16.mxu1 %vm7296_vm1, %v7295_v1  ;;  %6664 = vmatprep.mubr.msk.bf16.mxu0 %vm7296_vm1, %v7295_v1  ;;  %v1089_v47 = vpop.permute.xlu1 %1088 }
  0x9f   : > { %6700 = vmatprep.subr.bf16.mxu1 %v7295_v1  ;;  %6714 = vmatprep.subr.bf16.mxu0 %v7295_v1  ;;  %v1209_v38 = vpop.permute.xlu0 %1208 }
  0xa0   : > { %4108 = vrot.lane.b32.xlu1 %v7222_v21, %s7303_s28  ;;  %4336 = vrot.lane.b32.xlu0 %v7223_v22, %s7298_s16 }
  0xa2   : > { %v1333_v54 = vpop.permute.xlu1 %1332 }
  0xa4   : > { %6651 = vmatmul.mubr.msk.bf16.gmra.mxu1 %vm490_vm2, %v839_v23  ;;  %6665 = vmatmul.mubr.msk.bf16.gmra.mxu0 %vm490_vm2, %v963_v24 }
  0xa5   : > { %6654 = vmatprep.mubr.msk.bf16.mxu1 %vm7296_vm1, %v7295_v1  ;;  %6668 = vmatprep.mubr.msk.bf16.mxu0 %vm7296_vm1, %v7295_v1 }
  0xa6   : > { %4338 = vrot.lane.b32.xlu1 %v7224_v25, %s7298_s16  ;;  %4516 = vrot.lane.b32.xlu0 %v7225_v26, %s7297_s15  ;;  %v1335_v58 = vpop.permute.xlu1 %1334 }
  0xaa   : > { %4518 = vrot.lane.b32.xlu1 %v7226_v27, %s7297_s15  ;;  %4426 = vrot.lane.b32.xlu0 %v7227_v28, %s7298_s16  ;;  %v1612_v10 = vpop.permute.xlu1 %1611 }
  0xac   : > { %6655 = vmatmul.mubr.msk.bf16.gmra.mxu1 %vm490_vm2, %v841_v29  ;;  %6669 = vmatmul.mubr.msk.bf16.gmra.mxu0 %vm490_vm2, %v965_v30 }
  0xad   : > { %6674 = vmatprep.mubr.msk.bf16.mxu1 %vm7296_vm1, %v7295_v1  ;;  %6688 = vmatprep.mubr.msk.bf16.mxu0 %vm7296_vm1, %v7295_v1 }
  0xae   : > { %4428 = vrot.lane.b32.xlu1 %v7228_v32, %s7298_s16  ;;  %4696 = vrot.lane.b32.xlu0 %v7229_v33, %s7299_s18  ;;  %v1614_v15 = vpop.permute.xlu1 %1613  ;;  %s7304_s16 = smov 4  }
  0xb2   : > { %4698 = vrot.lane.b32.xlu1 %v7230_v35, %s7299_s18  ;;  %4606 = vrot.lane.b32.xlu0 %v7231_v36, %s7297_s15  ;;  %v1616_v19 = vpop.permute.xlu1 %1615 }
  0xb4   : > { %6675 = vmatmul.mubr.msk.bf16.vlgmr.msra.gmra.mxu1 %vm490_vm2, %v1085_v37  ;;  %6689 = vmatmul.mubr.msk.bf16.vlgmr.msra.gmra.mxu0 %vm490_vm2, %v1209_v38 }
  0xb5   : > { %6701 = vmatpush3.bf16.msra.mxu1 %v7391_v2  ;;  %6715 = vmatpush3.bf16.msra.mxu0 %v7632_v39  ;;  %v1211_v2 = vpop.permute.xlu0 %1210 }
  0xb6   : > { %6678 = vmatprep.mubr.msk.bf16.mxu1 %vm7296_vm1, %v7295_v1  ;;  %6692 = vmatprep.mubr.msk.bf16.mxu0 %vm7296_vm1, %v7295_v1  ;;  %v1898_v22 = vpop.permute.xlu1 %1897 }
  0xb7   : > { %6728 = vmatprep.subr.bf16.mxu1 %v7295_v1  ;;  %6748 = vmatprep.subr.bf16.mxu0 %v7295_v1 }
  0xb8   : > { %4608 = vrot.lane.b32.xlu1 %v7232_v40, %s7297_s15  ;;  %4876 = vrot.lane.b32.xlu0 %v7233_v41, %s7300_s20  ;;  %s6152_s15 = sshll.u32 %s8883_s23, 2 }
  0xb9   : > { %v1213_v48 = vpop.permute.xlu0 %1212 }
  0xba   : > { %v1972_v26 = vpop.permute.xlu1 %1971 }
  0xbc   : > { %6679 = vmatmul.mubr.msk.bf16.gmra.mxu1 %vm490_vm2, %v1087_v42  ;;  %6693 = vmatmul.mubr.msk.bf16.gmra.mxu0 %vm490_vm2, %v1211_v2 }
  0xbd   : > { %6682 = vmatprep.mubr.msk.bf16.mxu1 %vm7296_vm1, %v7295_v1  ;;  %6696 = vmatprep.mubr.msk.bf16.mxu0 %vm7296_vm1, %v7295_v1  ;;  %v1337_v0 = vpop.permute.xlu0 %1336 }
  0xbe   : > { %4878 = vrot.lane.b32.xlu1 %v7234_v43, %s7300_s20  ;;  %4786 = vrot.lane.b32.xlu0 %v7235_v44, %s7299_s18  ;;  %v1974_v29 = vpop.permute.xlu1 %1973 }
  0xc1   : > { %v1718_v6 = vpop.permute.xlu0 %1717 }
  0xc2   : > { %4788 = vrot.lane.b32.xlu1 %v7236_v45, %s7299_s18  ;;  %5056 = vrot.lane.b32.xlu0 %v7237_v46, %s7301_s26  ;;  %v1976_v31 = vpop.permute.xlu1 %1975  ;;  %s7306_s18 = smov 12  }
  0xc4   : > { %6683 = vmatmul.mubr.msk.bf16.gmra.mxu1 %vm490_vm2, %v1089_v47  ;;  %6697 = vmatmul.mubr.msk.bf16.gmra.mxu0 %vm490_vm2, %v1213_v48 }
  0xc5   : > { %6702 = vmatprep.mubr.msk.bf16.mxu1 %vm7296_vm1, %v7295_v1  ;;  %6716 = vmatprep.mubr.msk.bf16.mxu0 %vm7296_vm1, %v7295_v1  ;;  %v1792_v11 = vpop.permute.xlu0 %1791 }
  0xc6   : > { %5058 = vrot.lane.b32.xlu1 %v7238_v49, %s7301_s26  ;;  %4966 = vrot.lane.b32.xlu0 %v7239_v50, %s7300_s20  ;;  %v2258_v33 = vpop.permute.xlu1 %2257  ;;  %v7819_v50 = vld [vmem:[%s8867_s2 + $0x4] sm:$0x3] }
  0xc9   : > { %v1794_v17 = vpop.permute.xlu0 %1793 }
  0xca   : > { %4968 = vrot.lane.b32.xlu1 %v7240_v51, %s7300_s20  ;;  %5236 = vrot.lane.b32.xlu0 %v7241_v52, %s7302_s27  ;;  %v2332_v35 = vpop.permute.xlu1 %2331  ;;  %s7308_s20 = smov 20  }
  0xcc   : > { %6703 = vmatmul.mubr.msk.bf16.vlgmr.msra.gmra.mxu1 %vm490_vm2, %v1333_v54  ;;  %6717 = vmatmul.mubr.msk.bf16.vlgmr.msra.gmra.mxu0 %vm490_vm2, %v7194_v53 }
  0xcd   : > { %6729 = vmatpush3.bf16.msra.mxu1 %v7632_v39  ;;  %6749 = vmatpush3.bf16.msra.mxu0 %v7632_v39  ;;  %v1796_v24 = vpop.permute.xlu0 %1795 }
  0xce   : > { %6706 = vmatprep.mubr.msk.bf16.mxu1 %vm7296_vm1, %v7295_v1  ;;  %6720 = vmatprep.mubr.msk.bf16.mxu0 %vm7296_vm1, %v7295_v1  ;;  %v2334_v37 = vpop.permute.xlu1 %2333 }
  0xcf   : > { %6734 = vmatprep.subr.bf16.mxu1 %v7295_v1  ;;  %6754 = vmatprep.subr.bf16.mxu0 %v7295_v1 }
  0xd0   : > { %5238 = vrot.lane.b32.xlu1 %v7242_v55, %s7302_s27  ;;  %5146 = vrot.lane.b32.xlu0 %v7243_v56, %s7301_s26 }
  0xd1   : > { %v2078_v28 = vpop.permute.xlu0 %2077 }
  0xd2   : > { %v2336_v40 = vpop.permute.xlu1 %2335 }
  0xd4   : > { %6707 = vmatmul.mubr.msk.bf16.gmra.mxu1 %vm490_vm2, %v1335_v58  ;;  %6721 = vmatmul.mubr.msk.bf16.gmra.mxu0 %vm490_vm2, %v7197_v57 }
  0xd5   : > { %6710 = vmatprep.mubr.msk.bf16.mxu1 %vm7296_vm1, %v7295_v1  ;;  %6724 = vmatprep.mubr.msk.bf16.mxu0 %vm7296_vm1, %v7295_v1  ;;  %v538_v8 = vpop.f32.mrf.mxu0  ;;  %v2152_v30 = vpop.permute.xlu0 %2151 }
  0xd6   : > { %5148 = vrot.lane.b32.xlu1 %v7244_v59, %s7301_s26  ;;  %5416 = vrot.lane.b32.xlu0 %v7245_v60, %s7303_s28  ;;  %561 = vst.msk [vmem:[#allocation2] sm:$0xff] %vm490_vm2, %v538_v8  ;;  %v2618_v42 = vpop.permute.xlu1 %2617  ;;  %v7858_v59 = vsel %vm500_vm0, %v7819_v50, 0  ;;  %v7251_v60 = vld [vmem:[%s7407_s14 + $0x8] sm:$0xff]   ;;  %s7309_s26 = smov 24  }
  0xd7   : > { %v6606_v9 = vpop.f32.mrf.mxu0 }
  0xd9   : > { %v541_v12 = vpop.f32.mrf.mxu0  ;;  %v2154_v32 = vpop.permute.xlu0 %2153 }
  0xda   : > { %5418 = vrot.lane.b32.xlu1 %v7246_v61, %s7303_s28  ;;  %5326 = vrot.lane.b32.xlu0 %v7247_v62, %s7302_s27  ;;  %562 = vst.msk [vmem:[#allocation2 + $0x8] sm:$0xff] %vm490_vm2, %v541_v12  ;;  %v7786_v43 = vpop.permute.xlu1 %2691 }
  0xdb   : > { %v6607_v13 = vpop.f32.mrf.mxu0 }
  0xdc   : > { %6711 = vmatmul.mubr.msk.bf16.gmra.mxu1 %vm490_vm2, %v1337_v0  ;;  %6725 = vmatmul.mubr.msk.bf16.gmra.mxu0 %vm490_vm2, %v7199_v63 }
  0xdd   : > { %6730 = vmatprep.mubr.msk.bf16.mxu1 %vm7296_vm1, %v7295_v1  ;;  %6750 = vmatprep.mubr.msk.bf16.mxu0 %vm7296_vm1, %v7295_v1  ;;  %v546_v14 = vpop.f32.mrf.mxu0  ;;  %v2156_v34 = vpop.permute.xlu0 %2155 }
  0xde   : > { %5328 = vrot.lane.b32.xlu1 %v7248_v3, %s7302_s27  ;;  %5506 = vrot.lane.b32.xlu0 %v7249_v4, %s7303_s28  ;;  %563 = vst.msk [vmem:[#allocation2 + $0x10] sm:$0xff] %vm490_vm2, %v546_v14  ;;  %v7794_v45 = vpop.permute.xlu1 %2693  ;;  %s7310_s27 = smov 28  }
  0xdf   : > { %v6610_v16 = vpop.f32.mrf.mxu0 }
  0xe1   : > { %v549_v18 = vpop.f32.mrf.mxu0  ;;  %v2438_v36 = vpop.permute.xlu0 %2437 }
  0xe2   : > { %5508 = vrot.lane.b32.xlu1 %v7250_v5, %s7303_s28  ;;  %564 = vst.msk [vmem:[#allocation2 + $0x18] sm:$0xff] %vm490_vm2, %v549_v18  ;;  %v7808_v47 = vpop.permute.xlu1 %3010 }
  0xe3   : > { %v6611_v20 = vpop.f32.mrf.mxu0 }
  0xe4   : > { %6731 = vmatmul.mubr.msk.bf16.vlgmr.msra.gmra.mxu1 %vm490_vm2, %v1542_v7  ;;  %6751 = vmatmul.mubr.msk.bf16.vlgmr.msra.gmra.mxu0 %vm490_vm2, %v1718_v6 }
  0xe5   : > { %6735 = vmatpush3.bf16.msra.mxu1 %v7632_v39  ;;  %6755 = vmatpush3.bf16.msra.mxu0 %v7632_v39  ;;  %v554_v21 = vpop.f32.mrf.mxu0  ;;  %v2512_v38 = vpop.permute.xlu0 %2511 }
  0xe6   : > { %6736 = vmatprep.mubr.msk.bf16.mxu1 %vm7296_vm1, %v7295_v1  ;;  %6768 = vmatprep.subr.bf16.mxu1 %v7295_v1  ;;  %565 = vst.msk [vmem:[#allocation2 + $0x20] sm:$0xff] %vm490_vm2, %v554_v21  ;;  %v7812_v49 = vpop.permute.xlu1 %3176 }
  0xe7   : > { %6756 = vmatprep.mubr.msk.bf16.mxu0 %vm7296_vm1, %v7295_v1  ;;  %6788 = vmatprep.subr.bf16.mxu0 %v7295_v1  ;;  %v6614_v23 = vpop.f32.mrf.mxu0 }
  0xe9   : > { %v557_v25 = vpop.f32.mrf.mxu0  ;;  %v2514_v41 = vpop.permute.xlu0 %2513 }
  0xea   : > { %566 = vst.msk [vmem:[#allocation2 + $0x28] sm:$0xff] %vm490_vm2, %v557_v25  ;;  %v7832_v52 = vpop.permute.xlu1 %3100 }
  0xeb   : > { %v6615_v27 = vpop.f32.mrf.mxu0 }
  0xec   : > { %6737 = vmatmul.mubr.msk.bf16.vlgmr.msra.gmra.mxu1 %vm490_vm2, %v1612_v10  ;;  %6757 = vmatmul.mubr.msk.bf16.vlgmr.msra.gmra.mxu0 %vm490_vm2, %v1792_v11 }
  0xed   : > { %6769 = vmatpush3.bf16.msra.mxu1 %v7632_v39  ;;  %6789 = vmatpush3.bf16.msra.mxu0 %v7632_v39  ;;  %v2516_v2 = vpop.permute.xlu0 %2515 }
  0xee   : > { %6740 = vmatprep.mubr.msk.bf16.mxu1 %vm7296_vm1, %v7295_v1  ;;  %6760 = vmatprep.mubr.msk.bf16.mxu0 %vm7296_vm1, %v7295_v1  ;;  %v7842_v54 = vpop.permute.xlu1 %3346 }
  0xef   : > { %6774 = vmatprep.subr.bf16.mxu1 %v7295_v1  ;;  %6794 = vmatprep.subr.bf16.mxu0 %v7295_v1 }
  0xf1   : > { %v2798_v44 = vpop.permute.xlu0 %2797 }
  0xf2   : > { %v7852_v56 = vpop.permute.xlu1 %3512 }
  0xf4   : > { %6741 = vmatmul.mubr.msk.bf16.gmra.mxu1 %vm490_vm2, %v1614_v15  ;;  %6761 = vmatmul.mubr.msk.bf16.gmra.mxu0 %vm490_vm2, %v1794_v17 }
  0xf5   : > { %6744 = vmatprep.mubr.msk.bf16.mxu1 %vm7296_vm1, %v7295_v1  ;;  %6764 = vmatprep.mubr.msk.bf16.mxu0 %vm7296_vm1, %v7295_v1  ;;  %v7796_v46 = vpop.permute.xlu0 %3008 }
  0xf9   : > { %v7810_v48 = vpop.permute.xlu0 %2695 }
  0xfa   : > { %v7861_v61 = vpop.permute.xlu1 %3436 }
  0xfc   : > { %6745 = vmatmul.mubr.msk.bf16.gmra.mxu1 %vm490_vm2, %v1616_v19  ;;  %6765 = vmatmul.mubr.msk.bf16.gmra.mxu0 %vm490_vm2, %v1796_v24 }
  0xfd   : > { %6770 = vmatprep.mubr.msk.bf16.mxu1 %vm7296_vm1, %v7295_v1  ;;  %6790 = vmatprep.mubr.msk.bf16.mxu0 %vm7296_vm1, %v7295_v1  ;;  %v7823_v51 = vpop.permute.xlu0 %3178 }
 0x100   : > { %v7879_v7 = vpop.permute.xlu1 %3682 }
 0x101   : > { %v7834_v53 = vpop.permute.xlu0 %3344 }
 0x104   : > { %6771 = vmatmul.mubr.msk.bf16.vlgmr.msra.gmra.mxu1 %vm490_vm2, %v1898_v22  ;;  %6791 = vmatmul.mubr.msk.bf16.vlgmr.msra.gmra.mxu0 %vm490_vm2, %v2078_v28  ;;  %v7894_v14 = vpop.permute.xlu1 %3848 }
 0x105   : > { %6775 = vmatpush3.bf16.msra.mxu1 %v7632_v39  ;;  %6795 = vmatpush3.bf16.msra.mxu0 %v7632_v39  ;;  %v7844_v55 = vpop.permute.xlu0 %3268 }
 0x106   : > { %6776 = vmatprep.mubr.msk.bf16.mxu1 %vm7296_vm1, %v7295_v1  ;;  %6808 = vmatprep.subr.bf16.mxu1 %v7295_v1 }
 0x107   : > { %6796 = vmatprep.mubr.msk.bf16.mxu0 %vm7296_vm1, %v7295_v1  ;;  %6828 = vmatprep.subr.bf16.mxu0 %v7295_v1 }
 0x108   : > { %v7909_v22 = vpop.permute.xlu1 %3772 }
 0x109   : > { %v7854_v57 = vpop.permute.xlu0 %3514 }
 0x10c   : > { %6777 = vmatmul.mubr.msk.bf16.vlgmr.msra.gmra.mxu1 %vm490_vm2, %v1972_v26  ;;  %6797 = vmatmul.mubr.msk.bf16.vlgmr.msra.gmra.mxu0 %vm490_vm2, %v2152_v30  ;;  %v7922_v30 = vpop.permute.xlu1 %4018 }
 0x10d   : > { %6809 = vmatpush3.bf16.msra.mxu1 %v7632_v39  ;;  %6829 = vmatpush3.bf16.msra.mxu0 %v7632_v39  ;;  %v7867_v0 = vpop.permute.xlu0 %3680 }
 0x10e   : > { %6780 = vmatprep.mubr.msk.bf16.mxu1 %vm7296_vm1, %v7295_v1  ;;  %6800 = vmatprep.mubr.msk.bf16.mxu0 %vm7296_vm1, %v7295_v1 }
 0x10f   : > { %6814 = vmatprep.subr.bf16.mxu1 %v7295_v1  ;;  %6834 = vmatprep.subr.bf16.mxu0 %v7295_v1 }
 0x111   : > { %v7881_v9 = vpop.permute.xlu0 %3604 }
 0x114   : > { %6781 = vmatmul.mubr.msk.bf16.gmra.mxu1 %vm490_vm2, %v1974_v29  ;;  %6801 = vmatmul.mubr.msk.bf16.gmra.mxu0 %vm490_vm2, %v2154_v32 }
 0x115   : > { %6784 = vmatprep.mubr.msk.bf16.mxu1 %vm7296_vm1, %v7295_v1  ;;  %6804 = vmatprep.mubr.msk.bf16.mxu0 %vm7296_vm1, %v7295_v1  ;;  %v7901_v17 = vpop.permute.xlu0 %3850 }
 0x119   : > { %v7918_v25 = vpop.permute.xlu0 %4016 }
 0x11c   : > { %6785 = vmatmul.mubr.msk.bf16.gmra.mxu1 %vm490_vm2, %v1976_v31  ;;  %6805 = vmatmul.mubr.msk.bf16.gmra.mxu0 %vm490_vm2, %v2156_v34 }
 0x11d   : > { %6810 = vmatprep.mubr.msk.bf16.mxu1 %vm7296_vm1, %v7295_v1  ;;  %6830 = vmatprep.mubr.msk.bf16.mxu0 %vm7296_vm1, %v7295_v1 }
 0x124   : > { %6811 = vmatmul.mubr.msk.bf16.vlgmr.msra.gmra.mxu1 %vm490_vm2, %v2258_v33  ;;  %6831 = vmatmul.mubr.msk.bf16.vlgmr.msra.gmra.mxu0 %vm490_vm2, %v2438_v36  ;;  %v7930_v33 = vpop.permute.xlu0 %3940 }
 0x125   : > { %6815 = vmatpush3.bf16.msra.mxu1 %v7632_v39  ;;  %6835 = vmatpush3.bf16.msra.mxu0 %v7632_v39 }
 0x126   : > { %6816 = vmatprep.mubr.msk.bf16.mxu1 %vm7296_vm1, %v7295_v1  ;;  %6848 = vmatprep.subr.bf16.mxu1 %v7295_v1 }
 0x127   : > { %6836 = vmatprep.mubr.msk.bf16.mxu0 %vm7296_vm1, %v7295_v1  ;;  %6868 = vmatprep.subr.bf16.mxu0 %v7295_v1 }
 0x12c   : > { %6817 = vmatmul.mubr.msk.bf16.vlgmr.msra.gmra.mxu1 %vm490_vm2, %v2332_v35  ;;  %6837 = vmatmul.mubr.msk.bf16.vlgmr.msra.gmra.mxu0 %vm490_vm2, %v2512_v38  ;;  %v7253_v38 = vld [vmem:[%s7435_s25] sm:$0xff]  }
 0x12d   : > { %6849 = vmatpush3.bf16.msra.mxu1 %v7632_v39  ;;  %6869 = vmatpush3.bf16.msra.mxu0 %v7632_v39 }
 0x12e   : > { %6820 = vmatprep.mubr.msk.bf16.mxu1 %vm7296_vm1, %v7295_v1  ;;  %6840 = vmatprep.mubr.msk.bf16.mxu0 %vm7296_vm1, %v7295_v1 }
 0x12f   : > { %6854 = vmatprep.subr.bf16.mxu1 %v7295_v1  ;;  %7098 = vmatprep.subr.msk.bf16.mxu0 %vm500_vm0, %v7819_v50 }
 0x134   : > { %6821 = vmatmul.mubr.msk.bf16.gmra.mxu1 %vm490_vm2, %v2334_v37  ;;  %6841 = vmatmul.mubr.msk.bf16.gmra.mxu0 %vm490_vm2, %v2514_v41 }
 0x135   : > { %6824 = vmatprep.mubr.msk.bf16.mxu1 %vm7296_vm1, %v7295_v1  ;;  %6844 = vmatprep.mubr.msk.bf16.mxu0 %vm7296_vm1, %v7295_v1 }
 0x13c   : > { %6825 = vmatmul.mubr.msk.bf16.gmra.mxu1 %vm490_vm2, %v2336_v40  ;;  %6845 = vmatmul.mubr.msk.bf16.gmra.mxu0 %vm490_vm2, %v2516_v2  ;;  %v7942_v40 = vpop.permute.xlu1 %4108  ;;  %v7944_v2 = vpop.permute.xlu0 %4336 }
 0x13d   : > { %6850 = vmatprep.mubr.msk.bf16.mxu1 %vm7296_vm1, %v7295_v1  ;;  %6870 = vmatprep.mubr.msk.bf16.mxu0 %vm7296_vm1, %v7295_v1 }
 0x143   : > { %v761_v58 = vpop.f32.mrf.mxu0 }
 0x144   : > { %v637_v62 = vpop.f32.mrf.mxu1  ;;  %6851 = vmatmul.mubr.msk.bf16.vlgmr.msra.gmra.mxu1 %vm490_vm2, %v2618_v42  ;;  %6871 = vmatmul.mubr.msk.bf16.vlgmr.msra.gmra.mxu0 %vm490_vm2, %v2798_v44 }
 0x145   : > { %6855 = vmatpush3.bf16.msra.mxu1 %v7632_v39  ;;  %666 = vrot.lane.b32.xlu0 %v637_v62, %s7304_s16  ;;  %v6634_v63 = vpop.f32.mrf.mxu0  ;;  %v7252_v39 = vld [vmem:[%s7407_s14 + $0x10] sm:$0xff]  }
 0x146   : > { %v6620_v3 = vpop.f32.mrf.mxu1  ;;  %6875 = vmatpush3.bf16.msra.mxu0 %v7858_v59  ;;  %6856 = vmatprep.mubr.msk.bf16.mxu1 %vm7296_vm1, %v7295_v1 }
 0x147   : > { %v764_v4 = vpop.f32.mrf.mxu0  ;;  %6876 = vmatprep.mubr.msk.bf16.mxu0 %vm490_vm2, %v7251_v60  ;;  %7099 = vmatprep.subr.msk.bf16.mxu0 %vm500_vm0, %v7819_v50 }
 0x148   : > { %v640_v5 = vpop.f32.mrf.mxu1  ;;  %6880 = vmatprep.subr.bf16.mxu1 %v7295_v1 }
 0x149   : > { %668 = vrot.lane.b32.xlu1 %v640_v5, %s7304_s16  ;;  %790 = vrot.lane.b32.xlu0 %v761_v58, %s7305_s17  ;;  %v6635_v6 = vpop.f32.mrf.mxu0 }
 0x14a   : > { %v6621_v8 = vpop.f32.mrf.mxu1 }
 0x14c   : > { %v645_v10 = vpop.f32.mrf.mxu1  ;;  %v769_v11 = vpop.f32.mrf.mxu0  ;;  %6857 = vmatmul.mubr.msk.bf16.vlgmr.msra.gmra.mxu1 %vm490_vm2, %v7786_v43  ;;  %6877 = vmatmul.mubr.msk.bf16.vlgmr.msra.gmra.mxu0 %vm490_vm2, %v7252_v39 }
 0x14d   : > { %670 = vrot.lane.b32.xlu0 %v645_v10, %s7304_s16  ;;  %792 = vrot.lane.b32.xlu1 %v764_v4, %s7305_s17 }
 0x14e   : > { %v6624_v12 = vpop.f32.mrf.mxu1  ;;  %v6638_v13 = vpop.f32.mrf.mxu0  ;;  %6887 = vmatpush3.bf16.msra.mxu0 %v7858_v59  ;;  %6860 = vmatprep.mubr.msk.bf16.mxu1 %vm7296_vm1, %v7295_v1 }
 0x14f   : > { %6888 = vmatprep.mubr.msk.bf16.mxu0 %vm490_vm2, %v7796_v46  ;;  %6881 = vmatpush3.bf16.msra.mxu1 %v7858_v59  ;;  %v7254_v12 = vld [vmem:[%s8867_s2 + $0x4] ss:$0 sps:$4 sm:$0xcc]  }
 0x150   : > { %v648_v15 = vpop.f32.mrf.mxu1  ;;  %v772_v16 = vpop.f32.mrf.mxu0  ;;  %7100 = vmatprep.subr.msk.bf16.mxu0 %vm500_vm0, %v7819_v50  ;;  %6892 = vmatprep.subr.bf16.mxu1 %v7295_v1 }
 0x151   : > { %672 = vrot.lane.b32.xlu1 %v648_v15, %s7304_s16  ;;  %794 = vrot.lane.b32.xlu0 %v769_v11, %s7305_s17 }
 0x152   : > { %v6625_v18 = vpop.f32.mrf.mxu1  ;;  %v6639_v19 = vpop.f32.mrf.mxu0 }
 0x154   : > { %v653_v20 = vpop.f32.mrf.mxu1  ;;  %v777_v21 = vpop.f32.mrf.mxu0  ;;  %6861 = vmatmul.mubr.msk.bf16.gmra.mxu1 %vm490_vm2, %v7794_v45  ;;  %6889 = vmatmul.mubr.msk.bf16.vlgmr.msra.gmra.mxu0 %vm490_vm2, %v7808_v47 }
 0x155   : > { %674 = vrot.lane.b32.xlu0 %v653_v20, %s7304_s16  ;;  %796 = vrot.lane.b32.xlu1 %v772_v16, %s7305_s17  ;;  %v7956_v47 = vpop.permute.xlu1 %4338 }
 0x156   : > { %v6628_v23 = vpop.f32.mrf.mxu1  ;;  %v6642_v24 = vpop.f32.mrf.mxu0  ;;  %6864 = vmatprep.mubr.msk.bf16.mxu1 %vm7296_vm1, %v7295_v1  ;;  %6899 = vmatpush3.bf16.msra.mxu0 %v7858_v59 }
 0x157   : > { %6900 = vmatprep.mubr.msk.bf16.mxu0 %vm490_vm2, %v7812_v49  ;;  %7101 = vmatprep.subr.msk.bf16.mxu0 %vm500_vm0, %v7819_v50 }
 0x158   : > { %v656_v26 = vpop.f32.mrf.mxu1  ;;  %v780_v27 = vpop.f32.mrf.mxu0 }
 0x159   : > { %676 = vrot.lane.b32.xlu1 %v656_v26, %s7304_s16  ;;  %798 = vrot.lane.b32.xlu0 %v777_v21, %s7305_s17 }
 0x15a   : > { %v6629_v28 = vpop.f32.mrf.mxu1  ;;  %v6643_v29 = vpop.f32.mrf.mxu0 }
 0x15c   : > { %v885_v31 = vpop.f32.mrf.mxu1  ;;  %v1009_v32 = vpop.f32.mrf.mxu0  ;;  %6865 = vmatmul.mubr.msk.bf16.gmra.mxu1 %vm490_vm2, %v7810_v48  ;;  %6901 = vmatmul.mubr.msk.bf16.vlgmr.msra.gmra.mxu0 %vm490_vm2, %v7823_v51 }
 0x15d   : > { %914 = vrot.lane.b32.xlu0 %v885_v31, %s7306_s18  ;;  %800 = vrot.lane.b32.xlu1 %v780_v27, %s7305_s17  ;;  %v7964_v51 = vpop.permute.xlu0 %4516  ;;  %v7255_v31 = vld [vmem:[%s7407_s14 + $0xc] sm:$0xff]  }
 0x15e   : > { %v6648_v34 = vpop.f32.mrf.mxu1  ;;  %v6662_v35 = vpop.f32.mrf.mxu0  ;;  %6882 = vmatprep.mubr.msk.bf16.mxu1 %vm7296_vm1, %v7295_v1  ;;  %6911 = vmatpush3.bf16.msra.mxu0 %v7858_v59 }
 0x15f   : > { %6912 = vmatprep.mubr.msk.bf16.mxu0 %vm490_vm2, %v7834_v53  ;;  %7102 = vmatprep.subr.msk.bf16.mxu0 %vm500_vm0, %v7819_v50 }
 0x160   : > { %v888_v36 = vpop.f32.mrf.mxu1  ;;  %v1012_v37 = vpop.f32.mrf.mxu0 }
 0x161   : > { %916 = vrot.lane.b32.xlu1 %v888_v36, %s7306_s18  ;;  %1038 = vrot.lane.b32.xlu0 %v1009_v32, %s7307_s19 }
 0x162   : > { %v6649_v41 = vpop.f32.mrf.mxu1  ;;  %v6663_v42 = vpop.f32.mrf.mxu0 }
 0x164   : > { %v893_v43 = vpop.f32.mrf.mxu1  ;;  %v1017_v44 = vpop.f32.mrf.mxu0  ;;  %6883 = vmatmul.mubr.msk.bf16.vlgmr.msra.gmra.mxu1 %vm490_vm2, %v7253_v38  ;;  %6913 = vmatmul.mubr.msk.bf16.vlgmr.msra.gmra.mxu0 %vm490_vm2, %v7842_v54 }
 0x165   : > { %918 = vrot.lane.b32.xlu0 %v893_v43, %s7306_s18  ;;  %1040 = vrot.lane.b32.xlu1 %v1012_v37, %s7307_s19  ;;  %v7256_v37 = vld [vmem:[%s7407_s14 + $0x14] ss:$0 sps:$4 sm:$0xff]  }
 0x166   : > { %v6652_v45 = vpop.f32.mrf.mxu1  ;;  %v6666_v46 = vpop.f32.mrf.mxu0  ;;  %6893 = vmatpush3.bf16.msra.mxu1 %v7858_v59  ;;  %6894 = vmatprep.mubr.msk.bf16.mxu1 %vm7296_vm1, %v7295_v1 }
 0x167   : > { %6923 = vmatpush3.bf16.msra.mxu0 %v7858_v59  ;;  %6904 = vmatprep.subr.bf16.mxu1 %v7295_v1 }
 0x168   : > { %v896_v48 = vpop.f32.mrf.mxu1  ;;  %v1020_v49 = vpop.f32.mrf.mxu0  ;;  %6924 = vmatprep.mubr.msk.bf16.mxu0 %vm490_vm2, %v7852_v56  ;;  %7103 = vmatprep.subr.msk.bf16.mxu0 %vm500_vm0, %v7819_v50 }
 0x169   : > { %920 = vrot.lane.b32.xlu1 %v896_v48, %s7306_s18  ;;  %1042 = vrot.lane.b32.xlu0 %v1017_v44, %s7307_s19  ;;  %v7972_v56 = vpop.permute.xlu1 %4518 }
 0x16a   : > { %v6653_v53 = vpop.f32.mrf.mxu1  ;;  %v6667_v54 = vpop.f32.mrf.mxu0 }
 0x16c   : > { %v901_v58 = vpop.f32.mrf.mxu1  ;;  %v1025_v60 = vpop.f32.mrf.mxu0  ;;  %6895 = vmatmul.mubr.msk.bf16.vlgmr.msra.gmra.mxu1 %vm490_vm2, %v7832_v52  ;;  %6925 = vmatmul.mubr.msk.bf16.vlgmr.msra.gmra.mxu0 %vm490_vm2, %v7854_v57 }
 0x16d   : > { %922 = vrot.lane.b32.xlu0 %v901_v58, %s7306_s18  ;;  %1044 = vrot.lane.b32.xlu1 %v1020_v49, %s7307_s19  ;;  %v7979_v52 = vpop.permute.xlu0 %4426  ;;  %v7987_v39 = vpop.permute.xlu1 %4428 }
 0x16e   : > { %v6656_v62 = vpop.f32.mrf.mxu1  ;;  %v6670_v63 = vpop.f32.mrf.mxu0  ;;  %6905 = vmatpush3.bf16.msra.mxu1 %v7858_v59  ;;  %6906 = vmatprep.mubr.msk.bf16.mxu1 %vm7296_vm1, %v7295_v1 }
 0x16f   : > { %6916 = vmatprep.subr.bf16.mxu1 %v7295_v1  ;;  %6935 = vmatpush3.bf16.msra.mxu0 %v7858_v59 }
 0x170   : > { %v904_v57 = vpop.f32.mrf.mxu1  ;;  %v1028_v3 = vpop.f32.mrf.mxu0  ;;  %6936 = vmatprep.mubr.msk.bf16.mxu0 %vm490_vm2, %v7867_v0  ;;  %7104 = vmatprep.subr.msk.bf16.mxu0 %vm500_vm0, %v7819_v50 }
 0x171   : > { %924 = vrot.lane.b32.xlu1 %v904_v57, %s7306_s18  ;;  %1046 = vrot.lane.b32.xlu0 %v1025_v60, %s7307_s19  ;;  %v7995_v0 = vpop.permute.xlu0 %4696  ;;  %v8011_v13 = vpop.permute.xlu1 %4698 }
 0x172   : > { %v6657_v4 = vpop.f32.mrf.mxu1  ;;  %v6671_v5 = vpop.f32.mrf.mxu0 }
 0x174   : > { %v1133_v6 = vpop.f32.mrf.mxu1  ;;  %v1257_v8 = vpop.f32.mrf.mxu0  ;;  %6907 = vmatmul.mubr.msk.bf16.vlgmr.msra.gmra.mxu1 %vm490_vm2, %v7844_v55  ;;  %6937 = vmatmul.mubr.msk.bf16.vlgmr.msra.gmra.mxu0 %vm490_vm2, %v7879_v7 }
 0x175   : > { %1162 = vrot.lane.b32.xlu0 %v1133_v6, %s7308_s20  ;;  %1048 = vrot.lane.b32.xlu1 %v1028_v3, %s7307_s19  ;;  %v8013_v18 = vpop.permute.xlu0 %4606  ;;  %v7257_v6 = vld [vmem:[%s7435_s25] sm:$0xff]  }
 0x176   : > { %v6676_v10 = vpop.f32.mrf.mxu1  ;;  %v6690_v11 = vpop.f32.mrf.mxu0  ;;  %6917 = vmatpush3.bf16.msra.mxu1 %v7858_v59  ;;  %6918 = vmatprep.mubr.msk.bf16.mxu1 %vm7296_vm1, %v7295_v1 }
 0x177   : > { %6928 = vmatprep.subr.bf16.mxu1 %v7295_v1  ;;  %6947 = vmatpush3.bf16.msra.mxu0 %v7858_v59 }
 0x178   : > { %v1136_v55 = vpop.f32.mrf.mxu1  ;;  %v1260_v7 = vpop.f32.mrf.mxu0  ;;  %6948 = vmatprep.mubr.msk.bf16.mxu0 %vm490_vm2, %v7894_v14  ;;  %7105 = vmatprep.subr.msk.bf16.mxu0 %vm500_vm0, %v7819_v50  ;;  %v8019_v50 = vrot.slane %v7254_v12, 2  ;;  %v7258_v12 = vld [vmem:[%s7435_s25 + $0x8] ss:$0 sps:$4 sm:$0xff]  }
 0x179   : > { %1164 = vrot.lane.b32.xlu1 %v1136_v55, %s7308_s20  ;;  %1286 = vrot.lane.b32.xlu0 %v1257_v8, %s7309_s26  ;;  %v8036_v24 = vpop.permute.xlu0 %4876 }
 0x17a   : > { %v6677_v15 = vpop.f32.mrf.mxu1  ;;  %v6691_v16 = vpop.f32.mrf.mxu0 }
 0x17c   : > { %v1141_v19 = vpop.f32.mrf.mxu1  ;;  %v1265_v14 = vpop.f32.mrf.mxu0  ;;  %6919 = vmatmul.mubr.msk.bf16.vlgmr.msra.gmra.mxu1 %vm490_vm2, %v7861_v61  ;;  %6949 = vmatmul.mubr.msk.bf16.vlgmr.msra.gmra.mxu0 %vm490_vm2, %v7901_v17 }
 0x17d   : > { %1166 = vrot.lane.b32.xlu0 %v1141_v19, %s7308_s20  ;;  %1288 = vrot.lane.b32.xlu1 %v1260_v7, %s7309_s26  ;;  %v8028_v61 = vpop.permute.xlu1 %4608 }
 0x17e   : > { %v6680_v20 = vpop.f32.mrf.mxu1  ;;  %v6694_v21 = vpop.f32.mrf.mxu0  ;;  %6929 = vmatpush3.bf16.msra.mxu1 %v7858_v59  ;;  %6930 = vmatprep.mubr.msk.bf16.mxu1 %vm7296_vm1, %v7295_v1 }
 0x17f   : > { %6940 = vmatprep.subr.bf16.mxu1 %v7295_v1  ;;  %6959 = vmatpush3.bf16.msra.mxu0 %v7858_v59 }
 0x180   : > { %v1144_v17 = vpop.f32.mrf.mxu1  ;;  %v1268_v23 = vpop.f32.mrf.mxu0  ;;  %6960 = vmatprep.mubr.msk.bf16.mxu0 %vm490_vm2, %v7918_v25  ;;  %7106 = vmatprep.subr.msk.bf16.mxu0 %vm500_vm0, %v8019_v50  ;;  %v8044_v25 = vsel %vm500_vm0, %v8019_v50, 0 }
 0x181   : > { %1168 = vrot.lane.b32.xlu1 %v1144_v17, %s7308_s20  ;;  %1290 = vrot.lane.b32.xlu0 %v1265_v14, %s7309_s26  ;;  %v8049_v32 = vpop.permute.xlu1 %4878 }
 0x182   : > { %v6681_v26 = vpop.f32.mrf.mxu1  ;;  %v6695_v27 = vpop.f32.mrf.mxu0 }
 0x184   : > { %v1149_v28 = vpop.f32.mrf.mxu1  ;;  %v1273_v29 = vpop.f32.mrf.mxu0  ;;  %6931 = vmatmul.mubr.msk.bf16.vlgmr.msra.gmra.mxu1 %vm490_vm2, %v7881_v9  ;;  %6961 = vmatmul.mubr.msk.bf16.vlgmr.msra.gmra.mxu0 %vm490_vm2, %v7922_v30 }
 0x185   : > { %1170 = vrot.lane.b32.xlu0 %v1149_v28, %s7308_s20  ;;  %1292 = vrot.lane.b32.xlu1 %v1268_v23, %s7309_s26  ;;  %v8056_v9 = vpop.permute.xlu0 %4786  ;;  %v8064_v42 = vpop.permute.xlu1 %4788 }
 0x186   : > { %v6684_v34 = vpop.f32.mrf.mxu1  ;;  %v6698_v35 = vpop.f32.mrf.mxu0  ;;  %6941 = vmatpush3.bf16.msra.mxu1 %v7858_v59  ;;  %6942 = vmatprep.mubr.msk.bf16.mxu1 %vm7296_vm1, %v7295_v1 }
 0x187   : > { %6952 = vmatprep.subr.bf16.mxu1 %v7295_v1  ;;  %6971 = vmatpush3.bf16.msra.mxu0 %v8044_v25 }
 0x188   : > { %v1152_v30 = vpop.f32.mrf.mxu1  ;;  %v1276_v36 = vpop.f32.mrf.mxu0  ;;  %6972 = vmatprep.mubr.msk.bf16.mxu0 %vm490_vm2, %v7255_v31  ;;  %7108 = vmatprep.subr.msk.bf16.mxu0 %vm500_vm0, %v8019_v50 }
 0x189   : > { %1172 = vrot.lane.b32.xlu1 %v1152_v30, %s7308_s20  ;;  %1294 = vrot.lane.b32.xlu0 %v1273_v29, %s7309_s26  ;;  %v8073_v45 = vpop.permute.xlu0 %5056  ;;  %v8087_v53 = vpop.permute.xlu1 %5058 }
 0x18a   : > { %v6685_v38 = vpop.f32.mrf.mxu1  ;;  %v6699_v41 = vpop.f32.mrf.mxu0 }
 0x18c   : > { %v1381_v43 = vpop.f32.mrf.mxu1  ;;  %v8066_v44 = vpop.f32.mrf.mxu0  ;;  %6943 = vmatmul.mubr.msk.bf16.vlgmr.msra.gmra.mxu1 %vm490_vm2, %v7909_v22  ;;  %6973 = vmatmul.mubr.msk.bf16.vlgmr.msra.gmra.mxu0 %vm490_vm2, %v7256_v37 }
 0x18d   : > { %1410 = vrot.lane.b32.xlu0 %v1381_v43, %s7310_s27  ;;  %1296 = vrot.lane.b32.xlu1 %v1276_v36, %s7309_s26  ;;  %v8089_v60 = vpop.permute.xlu0 %4966  ;;  %v8103_v3 = vpop.permute.xlu1 %4968 }
 0x18e   : > { %v6704_v46 = vpop.f32.mrf.mxu1  ;;  %v6718_v48 = vpop.f32.mrf.mxu0  ;;  %6953 = vmatpush3.bf16.msra.mxu1 %v7858_v59  ;;  %6954 = vmatprep.mubr.msk.bf16.mxu1 %vm7296_vm1, %v7295_v1 }
 0x18f   : > { %6964 = vmatprep.subr.bf16.mxu1 %v7295_v1  ;;  %6983 = vmatpush3.bf16.msra.mxu0 %v8044_v25 }
 0x190   : > { %v1384_v22 = vpop.f32.mrf.mxu1  ;;  %v8080_v49 = vpop.f32.mrf.mxu0  ;;  %6984 = vmatprep.mubr.msk.bf16.mxu0 %vm490_vm2, %v7944_v2  ;;  %7110 = vmatprep.subr.msk.bf16.mxu0 %vm500_vm0, %v8019_v50 }
 0x191   : > { %1412 = vrot.lane.b32.xlu1 %v1384_v22, %s7310_s27 }
 0x192   : > { %v6705_v54 = vpop.f32.mrf.mxu1  ;;  %v6719_v58 = vpop.f32.mrf.mxu0 }
 0x194   : > { %v1389_v62 = vpop.f32.mrf.mxu1  ;;  %v8091_v63 = vpop.f32.mrf.mxu0  ;;  %6955 = vmatmul.mubr.msk.bf16.vlgmr.msra.gmra.mxu1 %vm490_vm2, %v7930_v33  ;;  %6985 = vmatmul.mubr.msk.bf16.vlgmr.msra.gmra.mxu0 %vm490_vm2, %v7956_v47 }
 0x195   : > { %1414 = vrot.lane.b32.xlu0 %v1389_v62, %s7310_s27  ;;  %6965 = vmatpush3.bf16.msra.mxu1 %v7858_v59  ;;  %v8113_v59 = vpop.permute.xlu0 %5236 }
 0x196   : > { %v6708_v2 = vpop.f32.mrf.mxu1  ;;  %v6722_v57 = vpop.f32.mrf.mxu0  ;;  %6966 = vmatprep.mubr.msk.bf16.mxu1 %vm7296_vm1, %v7295_v1  ;;  %7107 = vmatprep.subr.msk.bf16.mxu1 %vm500_vm0, %v8019_v50 }
 0x197   : > { %6995 = vmatpush3.bf16.msra.mxu0 %v8044_v25  ;;  %6996 = vmatprep.mubr.msk.bf16.mxu0 %vm490_vm2, %v7964_v51  ;;  %v8124_v51 = vpop.permute.xlu1 %5238 }
 0x198   : > { %v1392_v33 = vpop.f32.mrf.mxu1  ;;  %v8108_v47 = vpop.f32.mrf.mxu0  ;;  %7112 = vmatprep.subr.msk.bf16.mxu0 %vm500_vm0, %v8019_v50 }
 0x199   : > { %1416 = vrot.lane.b32.xlu1 %v1392_v33, %s7310_s27  ;;  %v8129_v7 = vpop.permute.xlu0 %5146 }
 0x19a   : > { %v6709_v4 = vpop.f32.mrf.mxu1  ;;  %v6723_v5 = vpop.f32.mrf.mxu0 }
 0x19b   : > { %v8138_v19 = vpop.permute.xlu1 %5148 }
 0x19c   : > { %v1397_v8 = vpop.f32.mrf.mxu1  ;;  %v8116_v10 = vpop.f32.mrf.mxu0  ;;  %6967 = vmatmul.mubr.msk.bf16.vlgmr.msra.gmra.mxu1 %vm490_vm2, %v7942_v40  ;;  %6997 = vmatmul.mubr.msk.bf16.vlgmr.msra.gmra.mxu0 %vm490_vm2, %v7972_v56 }
 0x19d   : > { %1418 = vrot.lane.b32.xlu0 %v1397_v8, %s7310_s27  ;;  %6977 = vmatpush3.bf16.msra.mxu1 %v8044_v25 }
 0x19e   : > { %v6712_v11 = vpop.f32.mrf.mxu1  ;;  %v6726_v55 = vpop.f32.mrf.mxu0  ;;  %6978 = vmatprep.mubr.msk.bf16.mxu1 %vm490_vm2, %v7257_v6  ;;  %7109 = vmatprep.subr.msk.bf16.mxu1 %vm500_vm0, %v8019_v50 }
 0x19f   : > { %7007 = vmatpush3.bf16.msra.mxu0 %v8044_v25  ;;  %7008 = vmatprep.mubr.msk.bf16.mxu0 %vm490_vm2, %v7995_v0  ;;  %v8147_v0 = vpop.permute.xlu0 %5416  ;;  %v8158_v26 = vpop.permute.xlu1 %5418 }
 0x1a0   : > { %v1400_v40 = vpop.f32.mrf.mxu1  ;;  %v1528_v56 = vpop.f32.mrf.mxu0  ;;  %7114 = vmatprep.subr.msk.bf16.mxu0 %vm500_vm0, %v8019_v50 }
 0x1a1   : > { %1420 = vrot.lane.b32.xlu1 %v1400_v40, %s7310_s27 }
 0x1a2   : > { %v6713_v15 = vpop.f32.mrf.mxu1  ;;  %v6727_v16 = vpop.f32.mrf.mxu0 }
 0x1a3   : > { %v8160_v29 = vpop.permute.xlu0 %5326  ;;  %v8172_v35 = vpop.permute.xlu1 %5328 }
 0x1a4   : > { %v8140_v14 = vpop.f32.mrf.mxu1  ;;  %v1756_v20 = vpop.f32.mrf.mxu0  ;;  %6979 = vmatmul.mubr.msk.bf16.vlgmr.msra.gmra.mxu1 %vm490_vm2, %v7258_v12  ;;  %7009 = vmatmul.mubr.msk.bf16.vlgmr.msra.gmra.mxu0 %vm490_vm2, %v8011_v13 }
 0x1a5   : > { %6989 = vmatpush3.bf16.msra.mxu1 %v8044_v25  ;;  %1763 = vrot.lane.b32.xlu1 %v1756_v20, %s7304_s16 }
 0x1a6   : > { %v6732_v21 = vpop.f32.mrf.mxu1  ;;  %v6752_v17 = vpop.f32.mrf.mxu0  ;;  %6990 = vmatprep.mubr.msk.bf16.mxu1 %vm490_vm2, %v7979_v52  ;;  %7111 = vmatprep.subr.msk.bf16.mxu1 %vm500_vm0, %v8019_v50 }
 0x1a7   : > { %7019 = vmatpush3.bf16.msra.mxu0 %v8044_v25  ;;  %7020 = vmatprep.mubr.msk.bf16.mxu0 %vm490_vm2, %v8036_v24  ;;  %v8189_v41 = vpop.permute.xlu1 %5508 }
 0x1a8   : > { %v1583_v13 = vpop.f32.mrf.mxu1  ;;  %v1759_v23 = vpop.f32.mrf.mxu0  ;;  %7116 = vmatprep.subr.msk.bf16.mxu0 %vm500_vm0, %v8019_v50 }
 0x1aa   : > { %v6733_v27 = vpop.f32.mrf.mxu1  ;;  %v6753_v28 = vpop.f32.mrf.mxu0 }
 0x1ac   : > { %v1660_v52 = vpop.f32.mrf.mxu1  ;;  %v1840_v31 = vpop.f32.mrf.mxu0  ;;  %6991 = vmatmul.mubr.msk.bf16.vlgmr.msra.gmra.mxu1 %vm490_vm2, %v7987_v39  ;;  %7021 = vmatmul.mubr.msk.bf16.vlgmr.msra.gmra.mxu0 %vm490_vm2, %v8049_v32 }
 0x1ad   : > { %1687 = vrot.lane.b32.xlu0 %v1660_v52, %s7304_s16  ;;  %7001 = vmatpush3.bf16.msra.mxu1 %v8044_v25 }
 0x1ae   : > { %v6738_v24 = vpop.f32.mrf.mxu1  ;;  %v6758_v34 = vpop.f32.mrf.mxu0  ;;  %7002 = vmatprep.mubr.msk.bf16.mxu1 %vm490_vm2, %v8013_v18  ;;  %7113 = vmatprep.subr.msk.bf16.mxu1 %vm500_vm0, %v8019_v50 }
 0x1af   : > { %7031 = vmatpush3.bf16.msra.mxu0 %v8044_v25  ;;  %7032 = vmatprep.mubr.msk.bf16.mxu0 %vm490_vm2, %v8073_v45  ;;  %v8181_v18 = vpop.permute.xlu0 %5506 }
 0x1b0   : > { %v1663_v39 = vpop.f32.mrf.mxu1  ;;  %v1843_v32 = vpop.f32.mrf.mxu0  ;;  %7118 = vmatprep.subr.msk.bf16.mxu0 %vm500_vm0, %v8019_v50 }
 0x1b1   : > { %1689 = vrot.lane.b32.xlu1 %v1663_v39, %s7304_s16  ;;  %1867 = vrot.lane.b32.xlu0 %v1840_v31, %s7305_s17 }
 0x1b2   : > { %v6739_v30 = vpop.f32.mrf.mxu1  ;;  %v6759_v36 = vpop.f32.mrf.mxu0 }
 0x1b4   : > { %v1668_v37 = vpop.f32.mrf.mxu1  ;;  %v1848_v38 = vpop.f32.mrf.mxu0  ;;  %7003 = vmatmul.mubr.msk.bf16.vlgmr.msra.gmra.mxu1 %vm490_vm2, %v8028_v61  ;;  %7033 = vmatmul.mubr.msk.bf16.vlgmr.msra.gmra.mxu0 %vm490_vm2, %v8087_v53 }
 0x1b5   : > { %1691 = vrot.lane.b32.xlu0 %v1668_v37, %s7304_s16  ;;  %1869 = vrot.lane.b32.xlu1 %v1843_v32, %s7305_s17 }
 0x1b6   : > { %v6742_v43 = vpop.f32.mrf.mxu1  ;;  %v6762_v45 = vpop.f32.mrf.mxu0  ;;  %7013 = vmatpush3.bf16.msra.mxu1 %v8044_v25  ;;  %7014 = vmatprep.mubr.msk.bf16.mxu1 %vm490_vm2, %v8056_v9 }
 0x1b7   : > { %v667_v46 = vpop.permute.xlu0 %666  ;;  %7115 = vmatprep.subr.msk.bf16.mxu1 %vm500_vm0, %v8019_v50  ;;  %7043 = vmatpush3.bf16.msra.mxu0 %v8044_v25 }
 0x1b8   : > { %685 = vst.msk [vmem:[#allocation2] sm:$0xff] %vm684_vm3, %v667_v46  ;;  %v1671_v61 = vpop.f32.mrf.mxu1  ;;  %v1851_v48 = vpop.f32.mrf.mxu0  ;;  %7044 = vmatprep.mubr.msk.bf16.mxu0 %vm490_vm2, %v8113_v59  ;;  %7120 = vmatprep.subr.msk.bf16.mxu0 %vm500_vm0, %v8019_v50 }
 0x1b9   : > { %1693 = vrot.lane.b32.xlu1 %v1671_v61, %s7304_s16  ;;  %1871 = vrot.lane.b32.xlu0 %v1848_v38, %s7305_s17 }
 0x1ba   : > { %v6743_v9 = vpop.f32.mrf.mxu1  ;;  %v6763_v22 = vpop.f32.mrf.mxu0 }
 0x1bb   : > { %v669_v53 = vpop.permute.xlu1 %668  ;;  %v791_v54 = vpop.permute.xlu0 %790 }
 0x1bc   : > { %686 = vst.msk [vmem:[#allocation2 + $0x8] sm:$0xff] %vm684_vm3, %v669_v53  ;;  %v1676_v58 = vpop.f32.mrf.mxu1  ;;  %v1856_v62 = vpop.f32.mrf.mxu0  ;;  %7015 = vmatmul.mubr.msk.bf16.vlgmr.msra.gmra.mxu1 %vm490_vm2, %v8064_v42  ;;  %7045 = vmatmul.mubr.msk.bf16.vlgmr.msra.gmra.mxu0 %vm490_vm2, %v8124_v51 }
 0x1bd   : > { %809 = vst.msk [vmem:[#allocation2] sm:$0xff] %vm808_vm4, %v791_v54  ;;  %1695 = vrot.lane.b32.xlu0 %v1676_v58, %s7304_s16  ;;  %1873 = vrot.lane.b32.xlu1 %v1851_v48, %s7305_s17 }
 0x1be   : > { %v6746_v2 = vpop.f32.mrf.mxu1  ;;  %v6766_v57 = vpop.f32.mrf.mxu0  ;;  %7025 = vmatpush3.bf16.msra.mxu1 %v8044_v25  ;;  %7026 = vmatprep.mubr.msk.bf16.mxu1 %vm490_vm2, %v8089_v60 }
 0x1bf   : > { %v671_v33 = vpop.permute.xlu0 %670  ;;  %v793_v59 = vpop.permute.xlu1 %792  ;;  %7117 = vmatprep.subr.msk.bf16.mxu1 %vm500_vm0, %v8019_v50  ;;  %7055 = vmatpush3.bf16.msra.mxu0 %v8044_v25 }
 0x1c0   : > { %687 = vst.msk [vmem:[#allocation2 + $0x10] sm:$0xff] %vm684_vm3, %v671_v33  ;;  %v1679_v42 = vpop.f32.mrf.mxu1  ;;  %v1859_v4 = vpop.f32.mrf.mxu0  ;;  %7056 = vmatprep.mubr.msk.bf16.mxu0 %vm490_vm2, %v8147_v0  ;;  %7066 = vmatprep.subr.bf16.mxu0 %v7295_v1 }
 0x1c1   : > { %810 = vst.msk [vmem:[#allocation2 + $0x8] sm:$0xff] %vm808_vm4, %v793_v59  ;;  %1875 = vrot.lane.b32.xlu0 %v1856_v62, %s7305_s17 }
 0x1c2   : > { %v6747_v60 = vpop.f32.mrf.mxu1  ;;  %v6767_v5 = vpop.f32.mrf.mxu0 }
 0x1c3   : > { %v673_v6 = vpop.permute.xlu1 %672  ;;  %v795_v8 = vpop.permute.xlu0 %794 }
 0x1c4   : > { %688 = vst.msk [vmem:[#allocation2 + $0x18] sm:$0xff] %vm684_vm3, %v673_v6  ;;  %v1936_v51 = vpop.f32.mrf.mxu1  ;;  %v2116_v11 = vpop.f32.mrf.mxu0  ;;  %7027 = vmatmul.mubr.msk.bf16.vlgmr.msra.gmra.mxu1 %vm490_vm2, %v8103_v3  ;;  %7057 = vmatmul.mubr.msk.bf16.vlgmr.msra.gmra.mxu0 %vm490_vm2, %v8158_v26 }
 0x1c5   : > { %811 = vst.msk [vmem:[#allocation2 + $0x10] sm:$0xff] %vm808_vm4, %v795_v8  ;;  %1943 = vrot.lane.b32.xlu1 %v1936_v51, %s7305_s17  ;;  %7037 = vmatpush3.bf16.msra.mxu1 %v8044_v25 }
 0x1c6   : > { %v6772_v55 = vpop.f32.mrf.mxu1  ;;  %v6792_v40 = vpop.f32.mrf.mxu0  ;;  %7038 = vmatprep.mubr.msk.bf16.mxu1 %vm490_vm2, %v8129_v7  ;;  %7119 = vmatprep.subr.msk.bf16.mxu1 %vm500_vm0, %v8019_v50 }
 0x1c7   : > { %v675_v56 = vpop.permute.xlu0 %674  ;;  %v797_v12 = vpop.permute.xlu1 %796  ;;  %7070 = vmatprep.mubr.msk.bf16.mxu0 %vm7296_vm1, %v7295_v1 }
 0x1c8   : > { %689 = vst.msk [vmem:[#allocation2 + $0x20] sm:$0xff] %vm684_vm3, %v675_v56  ;;  %v1939_v3 = vpop.f32.mrf.mxu1  ;;  %v2119_v15 = vpop.f32.mrf.mxu0 }
 0x1c9   : > { %812 = vst.msk [vmem:[#allocation2 + $0x18] sm:$0xff] %vm808_vm4, %v797_v12  ;;  %2123 = vrot.lane.b32.xlu1 %v2116_v11, %s7306_s18 }
 0x1ca   : > { %v6773_v16 = vpop.f32.mrf.mxu1  ;;  %v6793_v20 = vpop.f32.mrf.mxu0 }
 0x1cb   : > { %v677_v0 = vpop.permute.xlu1 %676  ;;  %v799_v7 = vpop.permute.xlu0 %798 }
 0x1cc   : > { %690 = vst.msk [vmem:[#allocation2 + $0x28] sm:$0xff] %vm684_vm3, %v677_v0  ;;  %v2020_v21 = vpop.f32.mrf.mxu1  ;;  %v2200_v17 = vpop.f32.mrf.mxu0  ;;  %7039 = vmatmul.mubr.msk.bf16.vlgmr.msra.gmra.mxu1 %vm490_vm2, %v8138_v19 }
 0x1cd   : > { %813 = vst.msk [vmem:[#allocation2 + $0x20] sm:$0xff] %vm808_vm4, %v799_v7  ;;  %2047 = vrot.lane.b32.xlu0 %v2020_v21, %s7306_s18  ;;  %7049 = vmatpush3.bf16.msra.mxu1 %v8044_v25 }
 0x1ce   : > { %v6778_v13 = vpop.f32.mrf.mxu1  ;;  %v6798_v23 = vpop.f32.mrf.mxu0  ;;  %7050 = vmatprep.mubr.msk.bf16.mxu1 %vm490_vm2, %v8160_v29  ;;  %7121 = vmatprep.subr.msk.bf16.mxu1 %vm500_vm0, %v8019_v50 }
 0x1cf   : > { %v915_v26 = vpop.permute.xlu0 %914  ;;  %v801_v27 = vpop.permute.xlu1 %800 }
 0x1d0   : > { %933 = vst.msk [vmem:[#allocation2] sm:$0xff] %vm932_vm5, %v915_v26  ;;  %v2023_v19 = vpop.f32.mrf.mxu1  ;;  %v2203_v28 = vpop.f32.mrf.mxu0 }
 0x1d1   : > { %814 = vst.msk [vmem:[#allocation2 + $0x28] sm:$0xff] %vm808_vm4, %v801_v27  ;;  %2049 = vrot.lane.b32.xlu1 %v2023_v19, %s7306_s18  ;;  %2227 = vrot.lane.b32.xlu0 %v2200_v17, %s7307_s19 }
 0x1d2   : > { %v6779_v52 = vpop.f32.mrf.mxu1  ;;  %v6799_v31 = vpop.f32.mrf.mxu0 }
 0x1d3   : > { %v917_v24 = vpop.permute.xlu1 %916  ;;  %v1039_v29 = vpop.permute.xlu0 %1038 }
 0x1d4   : > { %934 = vst.msk [vmem:[#allocation2 + $0x8] sm:$0xff] %vm932_vm5, %v917_v24  ;;  %v2028_v50 = vpop.f32.mrf.mxu1  ;;  %v2208_v34 = vpop.f32.mrf.mxu0  ;;  %7051 = vmatmul.mubr.msk.bf16.vlgmr.msra.gmra.mxu1 %vm490_vm2, %v8172_v35 }
 0x1d5   : > { %1057 = vst.msk [vmem:[#allocation2] sm:$0xff] %vm1056_vm6, %v1039_v29  ;;  %2051 = vrot.lane.b32.xlu0 %v2028_v50, %s7306_s18  ;;  %2229 = vrot.lane.b32.xlu1 %v2203_v28, %s7307_s19 }
 0x1d6   : > { %v6782_v39 = vpop.f32.mrf.mxu1  ;;  %v6802_v32 = vpop.f32.mrf.mxu0  ;;  %7061 = vmatpush3.bf16.msra.mxu1 %v8044_v25  ;;  %7062 = vmatprep.mubr.msk.bf16.mxu1 %vm490_vm2, %v8181_v18 }
 0x1d7   : > { %v919_v30 = vpop.permute.xlu0 %918  ;;  %v1041_v36 = vpop.permute.xlu1 %1040  ;;  %7082 = vmatprep.subr.bf16.mxu1 %v7295_v1 }
 0x1d8   : > { %935 = vst.msk [vmem:[#allocation2 + $0x10] sm:$0xff] %vm932_vm5, %v919_v30  ;;  %v2031_v35 = vpop.f32.mrf.mxu1  ;;  %v2211_v37 = vpop.f32.mrf.mxu0 }
 0x1d9   : > { %1058 = vst.msk [vmem:[#allocation2 + $0x8] sm:$0xff] %vm1056_vm6, %v1041_v36  ;;  %2053 = vrot.lane.b32.xlu1 %v2031_v35, %s7306_s18  ;;  %2231 = vrot.lane.b32.xlu0 %v2208_v34, %s7307_s19 }
 0x1da   : > { %v6783_v38 = vpop.f32.mrf.mxu1  ;;  %v6803_v43 = vpop.f32.mrf.mxu0 }
 0x1db   : > { %v921_v25 = vpop.permute.xlu1 %920  ;;  %v1043_v45 = vpop.permute.xlu0 %1042 }
 0x1dc   : > { %936 = vst.msk [vmem:[#allocation2 + $0x18] sm:$0xff] %vm932_vm5, %v921_v25  ;;  %v2036_v18 = vpop.f32.mrf.mxu1  ;;  %v2216_v46 = vpop.f32.mrf.mxu0  ;;  %7063 = vmatmul.mubr.msk.bf16.vlgmr.msra.gmra.mxu1 %vm490_vm2, %v8189_v41 }
 0x1dd   : > { %1059 = vst.msk [vmem:[#allocation2 + $0x10] sm:$0xff] %vm1056_vm6, %v1043_v45  ;;  %2055 = vrot.lane.b32.xlu0 %v2036_v18, %s7306_s18  ;;  %2233 = vrot.lane.b32.xlu1 %v2211_v37, %s7307_s19 }
 0x1de   : > { %v6786_v61 = vpop.f32.mrf.mxu1  ;;  %v6806_v48 = vpop.f32.mrf.mxu0  ;;  %7086 = vmatprep.mubr.msk.bf16.mxu1 %vm7296_vm1, %v7295_v1 }
 0x1df   : > { %v923_v9 = vpop.permute.xlu0 %922  ;;  %v1045_v22 = vpop.permute.xlu1 %1044 }
 0x1e0   : > { %937 = vst.msk [vmem:[#allocation2 + $0x20] sm:$0xff] %vm932_vm5, %v923_v9  ;;  %v2039_v53 = vpop.f32.mrf.mxu1  ;;  %v2219_v54 = vpop.f32.mrf.mxu0 }
 0x1e1   : > { %1060 = vst.msk [vmem:[#allocation2 + $0x18] sm:$0xff] %vm1056_vm6, %v1045_v22  ;;  %2235 = vrot.lane.b32.xlu0 %v2216_v46, %s7307_s19 }
 0x1e2   : > { %v6787_v41 = vpop.f32.mrf.mxu1  ;;  %v6807_v58 = vpop.f32.mrf.mxu0 }
 0x1e3   : > { %v925_v62 = vpop.permute.xlu1 %924  ;;  %v1047_v2 = vpop.permute.xlu0 %1046 }
 0x1e4   : > { %938 = vst.msk [vmem:[#allocation2 + $0x28] sm:$0xff] %vm932_vm5, %v925_v62  ;;  %v2296_v57 = vpop.f32.mrf.mxu1  ;;  %v2476_v33 = vpop.f32.mrf.mxu0 }
 0x1e5   : > { %1061 = vst.msk [vmem:[#allocation2 + $0x20] sm:$0xff] %vm1056_vm6, %v1047_v2  ;;  %2303 = vrot.lane.b32.xlu1 %v2296_v57, %s7307_s19 }
 0x1e6   : > { %v6812_v59 = vpop.f32.mrf.mxu1  ;;  %v6832_v42 = vpop.f32.mrf.mxu0 }
 0x1e7   : > { %v1163_v4 = vpop.permute.xlu0 %1162  ;;  %v1049_v60 = vpop.permute.xlu1 %1048 }
 0x1e8   : > { %1181 = vst.msk [vmem:[#allocation2] sm:$0xff] %vm1180_vm7, %v1163_v4  ;;  %v2299_v5 = vpop.f32.mrf.mxu1  ;;  %v2479_v6 = vpop.f32.mrf.mxu0 }
 0x1e9   : > { %1062 = vst.msk [vmem:[#allocation2 + $0x28] sm:$0xff] %vm1056_vm6, %v1049_v60  ;;  %2483 = vrot.lane.b32.xlu1 %v2476_v33, %s7308_s20 }
 0x1ea   : > { %v6813_v8 = vpop.f32.mrf.mxu1  ;;  %v6833_v51 = vpop.f32.mrf.mxu0 }
 0x1eb   : > { %v1165_v11 = vpop.permute.xlu1 %1164  ;;  %v1287_v55 = vpop.permute.xlu0 %1286 }
 0x1ec   : > { %1182 = vst.msk [vmem:[#allocation2 + $0x8] sm:$0xff] %vm1180_vm7, %v1165_v11  ;;  %v2380_v40 = vpop.f32.mrf.mxu1  ;;  %v2560_v56 = vpop.f32.mrf.mxu0 }
 0x1ed   : > { %1305 = vst.msk [vmem:[#allocation2] sm:$0xff] %vm1304_vm8, %v1287_v55  ;;  %2407 = vrot.lane.b32.xlu0 %v2380_v40, %s7308_s20 }
 0x1ee   : > { %v6818_v12 = vpop.f32.mrf.mxu1  ;;  %v6838_v3 = vpop.f32.mrf.mxu0 }
 0x1ef   : > { %v1167_v15 = vpop.permute.xlu0 %1166  ;;  %v1289_v16 = vpop.permute.xlu1 %1288 }
 0x1f0   : > { %1183 = vst.msk [vmem:[#allocation2 + $0x10] sm:$0xff] %vm1180_vm7, %v1167_v15  ;;  %v2383_v20 = vpop.f32.mrf.mxu1  ;;  %v2563_v0 = vpop.f32.mrf.mxu0 }
 0x1f1   : > { %1306 = vst.msk [vmem:[#allocation2 + $0x8] sm:$0xff] %vm1304_vm8, %v1289_v16  ;;  %2409 = vrot.lane.b32.xlu1 %v2383_v20, %s7308_s20  ;;  %2587 = vrot.lane.b32.xlu0 %v2560_v56, %s7309_s26 }
 0x1f2   : > { %v6819_v7 = vpop.f32.mrf.mxu1  ;;  %v6839_v21 = vpop.f32.mrf.mxu0 }
 0x1f3   : > { %v1169_v17 = vpop.permute.xlu1 %1168  ;;  %v1291_v13 = vpop.permute.xlu0 %1290 }
 0x1f4   : > { %1184 = vst.msk [vmem:[#allocation2 + $0x18] sm:$0xff] %vm1180_vm7, %v1169_v17  ;;  %v2388_v23 = vpop.f32.mrf.mxu1  ;;  %v2568_v26 = vpop.f32.mrf.mxu0 }
 0x1f5   : > { %1307 = vst.msk [vmem:[#allocation2 + $0x10] sm:$0xff] %vm1304_vm8, %v1291_v13  ;;  %2411 = vrot.lane.b32.xlu0 %v2388_v23, %s7308_s20  ;;  %2589 = vrot.lane.b32.xlu1 %v2563_v0, %s7309_s26 }
 0x1f6   : > { %v6822_v27 = vpop.f32.mrf.mxu1  ;;  %v6842_v19 = vpop.f32.mrf.mxu0 }
 0x1f7   : > { %v1171_v28 = vpop.permute.xlu0 %1170  ;;  %v1293_v52 = vpop.permute.xlu1 %1292 }
 0x1f8   : > { %1185 = vst.msk [vmem:[#allocation2 + $0x20] sm:$0xff] %vm1180_vm7, %v1171_v28  ;;  %v2391_v31 = vpop.f32.mrf.mxu1  ;;  %v2571_v24 = vpop.f32.mrf.mxu0 }
 0x1f9   : > { %1308 = vst.msk [vmem:[#allocation2 + $0x18] sm:$0xff] %vm1304_vm8, %v1293_v52  ;;  %2413 = vrot.lane.b32.xlu1 %v2391_v31, %s7308_s20  ;;  %2591 = vrot.lane.b32.xlu0 %v2568_v26, %s7309_s26 }
 0x1fa   : > { %v6823_v29 = vpop.f32.mrf.mxu1  ;;  %v6843_v50 = vpop.f32.mrf.mxu0 }
 0x1fb   : > { %v1173_v34 = vpop.permute.xlu1 %1172  ;;  %v1295_v39 = vpop.permute.xlu0 %1294 }
 0x1fc   : > { %1186 = vst.msk [vmem:[#allocation2 + $0x28] sm:$0xff] %vm1180_vm7, %v1173_v34  ;;  %v2396_v32 = vpop.f32.mrf.mxu1  ;;  %v2576_v30 = vpop.f32.mrf.mxu0 }
 0x1fd   : > { %1309 = vst.msk [vmem:[#allocation2 + $0x20] sm:$0xff] %vm1304_vm8, %v1295_v39  ;;  %2415 = vrot.lane.b32.xlu0 %v2396_v32, %s7308_s20  ;;  %2593 = vrot.lane.b32.xlu1 %v2571_v24, %s7309_s26 }
 0x1fe   : > { %v6826_v36 = vpop.f32.mrf.mxu1  ;;  %v6846_v35 = vpop.f32.mrf.mxu0 }
 0x1ff   : > { %v1411_v37 = vpop.permute.xlu0 %1410  ;;  %v1297_v38 = vpop.permute.xlu1 %1296 }
 0x200   : > { %1429 = vst.msk [vmem:[#allocation2] sm:$0xff] %vm1428_vm9, %v1411_v37  ;;  %v2399_v43 = vpop.f32.mrf.mxu1  ;;  %v2579_v25 = vpop.f32.mrf.mxu0 }
 0x201   : > { %1310 = vst.msk [vmem:[#allocation2 + $0x28] sm:$0xff] %vm1304_vm8, %v1297_v38  ;;  %2595 = vrot.lane.b32.xlu0 %v2576_v30, %s7309_s26 }
 0x202   : > { %v6827_v45 = vpop.f32.mrf.mxu1  ;;  %v6847_v18 = vpop.f32.mrf.mxu0 }
 0x203   : > { %v1413_v46 = vpop.permute.xlu1 %1412 }
 0x204   : > { %1430 = vst.msk [vmem:[#allocation2 + $0x8] sm:$0xff] %vm1428_vm9, %v1413_v46  ;;  %v2656_v61 = vpop.f32.mrf.mxu1  ;;  %v2836_v48 = vpop.f32.mrf.mxu0 }
 0x205   : > { %2663 = vrot.lane.b32.xlu1 %v2656_v61, %s7309_s26 }
 0x206   : > { %v6852_v9 = vpop.f32.mrf.mxu1  ;;  %v6872_v22 = vpop.f32.mrf.mxu0 }
 0x207   : > { %v1436_v53 = vld [vmem:[#allocation2] sm:$0xff]  ;;  %v1415_v54 = vpop.permute.xlu0 %1414 }
 0x208   : > { %v1531_v41 = vadd.f32 %v8066_v44, %v1436_v53  ;;  %1431 = vst.msk [vmem:[#allocation2 + $0x10] sm:$0xff] %vm1428_vm9, %v1415_v54  ;;  %v2659_v58 = vpop.f32.mrf.mxu1  ;;  %v2839_v62 = vpop.f32.mrf.mxu0 }
 0x209   : > { %2843 = vrot.lane.b32.xlu1 %v2836_v48, %s7310_s27 }
 0x20a   : > { %1536 = vst.msk [vmem:[#allocation2] sm:$0xff] %vm490_vm2, %v1531_v41  ;;  %v6853_v2 = vpop.f32.mrf.mxu1  ;;  %v6873_v57 = vpop.f32.mrf.mxu0 }
 0x20b   : > { %v1437_v33 = vld [vmem:[#allocation2 + $0x8] sm:$0xff]  ;;  %v1417_v59 = vpop.permute.xlu1 %1416 }
 0x20c   : > { %v1532_v42 = vadd.f32 %v8080_v49, %v1437_v33  ;;  %1432 = vst.msk [vmem:[#allocation2 + $0x18] sm:$0xff] %vm1428_vm9, %v1417_v59  ;;  %v2740_v4 = vpop.f32.mrf.mxu1  ;;  %v8316_v60 = vpop.f32.mrf.mxu0 }
 0x20d   : > { %2767 = vrot.lane.b32.xlu0 %v2740_v4, %s7310_s27 }
 0x20e   : > { %1537 = vst.msk [vmem:[#allocation2 + $0x8] sm:$0xff] %vm490_vm2, %v1532_v42  ;;  %v6858_v44 = vpop.f32.mrf.mxu1  ;;  %v8320_v5 = vpop.f32.mrf.mxu0 }
 0x20f   : > { %v1438_v6 = vld [vmem:[#allocation2 + $0x10] sm:$0xff]  ;;  %v1419_v8 = vpop.permute.xlu0 %1418 }
 0x210   : > { %v1533_v51 = vadd.f32 %v8091_v63, %v1438_v6  ;;  %1433 = vst.msk [vmem:[#allocation2 + $0x20] sm:$0xff] %vm1428_vm9, %v1419_v8  ;;  %v2743_v11 = vpop.f32.mrf.mxu1  ;;  %v8324_v49 = vpop.f32.mrf.mxu0 }
 0x211   : > { %2769 = vrot.lane.b32.xlu1 %v2743_v11, %s7310_s27  ;;  %v1588_v24 = vld [vmem:[#allocation2] sm:$0xff] }
 0x212   : > { %1538 = vst.msk [vmem:[#allocation2 + $0x10] sm:$0xff] %vm490_vm2, %v1533_v51  ;;  %v6859_v55 = vpop.f32.mrf.mxu1  ;;  %v8328_v40 = vpop.f32.mrf.mxu0 }
 0x213   : > { %v1439_v56 = vld [vmem:[#allocation2 + $0x18] sm:$0xff]  ;;  %v1421_v12 = vpop.permute.xlu1 %1420 }
 0x214   : > { %v1534_v3 = vadd.f32 %v8108_v47, %v1439_v56  ;;  %1434 = vst.msk [vmem:[#allocation2 + $0x28] sm:$0xff] %vm1428_vm9, %v1421_v12  ;;  %v2748_v15 = vpop.f32.mrf.mxu1  ;;  %v6890_v63 = vpop.f32.mrf.mxu0 }
 0x215   : > { %2771 = vrot.lane.b32.xlu0 %v2748_v15, %s7310_s27  ;;  %v1589_v32 = vld [vmem:[#allocation2 + $0x8] sm:$0xff] }
 0x216   : > { %1539 = vst.msk [vmem:[#allocation2 + $0x18] sm:$0xff] %vm490_vm2, %v1534_v3  ;;  %v6862_v16 = vpop.f32.mrf.mxu1  ;;  %v3052_v20 = vpop.f32.mrf.mxu0 }
 0x217   : > { %v1440_v0 = vld [vmem:[#allocation2 + $0x20] sm:$0xff]  ;;  %v1764_v52 = vpop.permute.xlu1 %1763 }
 0x218   : > { %v1535_v7 = vadd.f32 %v8116_v10, %v1440_v0  ;;  %v2751_v21 = vpop.f32.mrf.mxu1  ;;  %v6891_v17 = vpop.f32.mrf.mxu0 }
 0x219   : > { %2773 = vrot.lane.b32.xlu1 %v2751_v21, %s7310_s27  ;;  %3075 = vrot.lane.b32.xlu0 %v6890_v63, %s7304_s16  ;;  %v1590_v46 = vld [vmem:[#allocation2 + $0x10] sm:$0xff] }
 0x21a   : > { %1540 = vst.msk [vmem:[#allocation2 + $0x20] sm:$0xff] %vm490_vm2, %v1535_v7  ;;  %v6863_v47 = vpop.f32.mrf.mxu1  ;;  %v3055_v13 = vpop.f32.mrf.mxu0 }
 0x21b   : > { %v1541_v23 = vld [vmem:[#allocation2 + $0x28] sm:$0xff] }
 0x21c   : > { %v1586_v26 = vadd.f32 %v8140_v14, %v1541_v23  ;;  %v2756_v27 = vpop.f32.mrf.mxu1  ;;  %v6902_v19 = vpop.f32.mrf.mxu0 }
 0x21d   : > { %3071 = vrot.lane.b32.xlu0 %v3052_v20, %s7304_s16  ;;  %3077 = vrot.lane.b32.xlu1 %v6891_v17, %s7304_s16  ;;  %v1591_v2 = vld [vmem:[#allocation2 + $0x18] sm:$0xff] }
 0x21e   : > { %1587 = vst.msk [vmem:[#allocation2 + $0x28] sm:$0xff] %vm490_vm2, %v1586_v26  ;;  %v6866_v10 = vpop.f32.mrf.mxu1  ;;  %v3220_v28 = vpop.f32.mrf.mxu0 }
 0x21f   : > { %v1688_v31 = vpop.permute.xlu0 %1687 }
 0x220   : > { %v1702_v29 = vadd.f32 %v1688_v31, %v1588_v24  ;;  %v2759_v50 = vpop.f32.mrf.mxu1  ;;  %v6903_v34 = vpop.f32.mrf.mxu0 }
 0x221   : > { %2775 = vrot.lane.b32.xlu0 %v2756_v27, %s7310_s27  ;;  %3073 = vrot.lane.b32.xlu1 %v3055_v13, %s7304_s16  ;;  %v1592_v11 = vld [vmem:[#allocation2 + $0x20] sm:$0xff] }
 0x222   : > { %1707 = vst.msk [vmem:[#allocation2] sm:$0xff] %vm684_vm3, %v1702_v29  ;;  %v6867_v14 = vpop.f32.mrf.mxu1  ;;  %v3223_v39 = vpop.f32.mrf.mxu0 }
 0x223   : > { %v1690_v30 = vpop.permute.xlu1 %1689  ;;  %v1868_v36 = vpop.permute.xlu0 %1867 }
 0x224   : > { %v1703_v35 = vadd.f32 %v1690_v30, %v1589_v32  ;;  %v8345_v37 = vpop.f32.mrf.mxu1  ;;  %v6914_v38 = vpop.f32.mrf.mxu0 }
 0x225   : > { %v1712_v43 = vld [vmem:[#allocation2 + $0x28] sm:$0xff]  ;;  %3243 = vrot.lane.b32.xlu0 %v6902_v19, %s7305_s17  ;;  %3245 = vrot.lane.b32.xlu1 %v6903_v34, %s7305_s17 }
 0x226   : > { %v1766_v25 = vadd.f32 %v1764_v52, %v1712_v43  ;;  %1708 = vst.msk [vmem:[#allocation2 + $0x8] sm:$0xff] %vm684_vm3, %v1703_v35  ;;  %v6884_v45 = vpop.f32.mrf.mxu1  ;;  %v3388_v18 = vpop.f32.mrf.mxu0 }
 0x227   : > { %v1692_v61 = vpop.permute.xlu0 %1691  ;;  %v1870_v48 = vpop.permute.xlu1 %1869 }
 0x228   : > { %1767 = vst.msk [vmem:[#allocation2 + $0x28] sm:$0xff] %vm684_vm3, %v1766_v25  ;;  %v1704_v9 = vadd.f32 %v1692_v61, %v1590_v46  ;;  %v8351_v22 = vpop.f32.mrf.mxu1  ;;  %v6915_v53 = vpop.f32.mrf.mxu0 }
 0x229   : > { %v1768_v54 = vld [vmem:[#allocation2] sm:$0xff]  ;;  %3239 = vrot.lane.b32.xlu0 %v3220_v28, %s7305_s17  ;;  %3241 = vrot.lane.b32.xlu1 %v3223_v39, %s7305_s17 }
 0x22a   : > { %v1882_v41 = vadd.f32 %v1868_v36, %v1768_v54  ;;  %1709 = vst.msk [vmem:[#allocation2 + $0x10] sm:$0xff] %vm684_vm3, %v1704_v9  ;;  %v6885_v58 = vpop.f32.mrf.mxu1  ;;  %v3391_v62 = vpop.f32.mrf.mxu0 }
 0x22b   : > { %v1694_v57 = vpop.permute.xlu1 %1693  ;;  %v1872_v33 = vpop.permute.xlu0 %1871 }
 0x22c   : > { %1887 = vst.msk [vmem:[#allocation2] sm:$0xff] %vm808_vm4, %v1882_v41  ;;  %v1705_v59 = vadd.f32 %v1694_v57, %v1591_v2  ;;  %v3139_v42 = vpop.f32.mrf.mxu1  ;;  %v6926_v4 = vpop.f32.mrf.mxu0 }
 0x22d   : > { %v1769_v44 = vld [vmem:[#allocation2 + $0x8] sm:$0xff]  ;;  %3411 = vrot.lane.b32.xlu0 %v6914_v38, %s7306_s18  ;;  %3413 = vrot.lane.b32.xlu1 %v6915_v53, %s7306_s18 }
 0x22e   : > { %v1883_v6 = vadd.f32 %v1870_v48, %v1769_v44  ;;  %1710 = vst.msk [vmem:[#allocation2 + $0x18] sm:$0xff] %vm684_vm3, %v1705_v59  ;;  %v6896_v8 = vpop.f32.mrf.mxu1  ;;  %v3556_v51 = vpop.f32.mrf.mxu0 }
 0x22f   : > { %v1696_v55 = vpop.permute.xlu0 %1695  ;;  %v1874_v0 = vpop.permute.xlu1 %1873  ;;  %v1892_v26 = vld [vmem:[#allocation2 + $0x28] sm:$0xff] }
 0x230   : > { %1888 = vst.msk [vmem:[#allocation2 + $0x8] sm:$0xff] %vm808_vm4, %v1883_v6  ;;  %v1706_v56 = vadd.f32 %v1696_v55, %v1592_v11  ;;  %v3142_v12 = vpop.f32.mrf.mxu1  ;;  %v6927_v3 = vpop.f32.mrf.mxu0 }
 0x231   : > { %v1770_v15 = vld [vmem:[#allocation2 + $0x10] sm:$0xff]  ;;  %3407 = vrot.lane.b32.xlu0 %v3388_v18, %s7306_s18  ;;  %3409 = vrot.lane.b32.xlu1 %v3391_v62, %s7306_s18 }
 0x232   : > { %v1884_v63 = vadd.f32 %v1872_v33, %v1770_v15  ;;  %1711 = vst.msk [vmem:[#allocation2 + $0x20] sm:$0xff] %vm684_vm3, %v1706_v56  ;;  %v6897_v16 = vpop.f32.mrf.mxu1  ;;  %v3559_v20 = vpop.f32.mrf.mxu0 }
 0x233   : > { %v1876_v31 = vpop.permute.xlu0 %1875  ;;  %v1948_v36 = vld [vmem:[#allocation2] sm:$0xff] }
 0x234   : > { %1889 = vst.msk [vmem:[#allocation2 + $0x10] sm:$0xff] %vm808_vm4, %v1884_v63  ;;  %v3307_v7 = vpop.f32.mrf.mxu1  ;;  %v6938_v21 = vpop.f32.mrf.mxu0 }
 0x235   : > { %v1771_v17 = vld [vmem:[#allocation2 + $0x18] sm:$0xff]  ;;  %3148 = vrot.lane.b32.xlu0 %v3139_v42, %s7304_s16  ;;  %3150 = vrot.lane.b32.xlu1 %v3142_v12, %s7304_s16 }
 0x236   : > { %v1885_v47 = vadd.f32 %v1874_v0, %v1771_v17  ;;  %v6908_v13 = vpop.f32.mrf.mxu1  ;;  %v3724_v23 = vpop.f32.mrf.mxu0 }
 0x237   : > { %v1944_v27 = vpop.permute.xlu1 %1943  ;;  %v1949_v48 = vld [vmem:[#allocation2 + $0x8] sm:$0xff] }
 0x238   : > { %1890 = vst.msk [vmem:[#allocation2 + $0x18] sm:$0xff] %vm808_vm4, %v1885_v47  ;;  %v1946_v19 = vadd.f32 %v1944_v27, %v1892_v26  ;;  %v3310_v10 = vpop.f32.mrf.mxu1  ;;  %v6939_v28 = vpop.f32.mrf.mxu0 }
 0x239   : > { %v1772_v52 = vld [vmem:[#allocation2 + $0x20] sm:$0xff]  ;;  %3579 = vrot.lane.b32.xlu0 %v6926_v4, %s7307_s19  ;;  %3581 = vrot.lane.b32.xlu1 %v6927_v3, %s7307_s19 }
 0x23a   : > { %v1886_v24 = vadd.f32 %v1876_v31, %v1772_v52  ;;  %1947 = vst.msk [vmem:[#allocation2 + $0x28] sm:$0xff] %vm808_vm4, %v1946_v19  ;;  %v6909_v29 = vpop.f32.mrf.mxu1  ;;  %v3727_v50 = vpop.f32.mrf.mxu0 }
 0x23b   : > { %v2124_v30 = vpop.permute.xlu1 %2123  ;;  %v1950_v57 = vld [vmem:[#allocation2 + $0x10] sm:$0xff] }
 0x23c   : > { %1891 = vst.msk [vmem:[#allocation2 + $0x20] sm:$0xff] %vm808_vm4, %v1886_v24  ;;  %v3475_v34 = vpop.f32.mrf.mxu1  ;;  %v8372_v14 = vpop.f32.mrf.mxu0 }
 0x23d   : > { %3575 = vrot.lane.b32.xlu0 %v3556_v51, %s7307_s19  ;;  %3577 = vrot.lane.b32.xlu1 %v3559_v20, %s7307_s19 }
 0x23e   : > { %v6920_v39 = vpop.f32.mrf.mxu1  ;;  %v3892_v32 = vpop.f32.mrf.mxu0 }
 0x23f   : > { %v2048_v35 = vpop.permute.xlu0 %2047  ;;  %v1951_v55 = vld [vmem:[#allocation2 + $0x18] sm:$0xff] }
 0x240   : > { %v2062_v38 = vadd.f32 %v2048_v35, %v1948_v36  ;;  %v3478_v43 = vpop.f32.mrf.mxu1  ;;  %v8376_v25 = vpop.f32.mrf.mxu0 }
 0x241   : > { %v2072_v45 = vld [vmem:[#allocation2 + $0x28] sm:$0xff]  ;;  %3316 = vrot.lane.b32.xlu0 %v3307_v7, %s7305_s17  ;;  %3318 = vrot.lane.b32.xlu1 %v3310_v10, %s7305_s17 }
 0x242   : > { %v2126_v18 = vadd.f32 %v2124_v30, %v2072_v45  ;;  %2067 = vst.msk [vmem:[#allocation2] sm:$0xff] %vm932_vm5, %v2062_v38  ;;  %v6921_v46 = vpop.f32.mrf.mxu1  ;;  %v3895_v61 = vpop.f32.mrf.mxu0 }
 0x243   : > { %v2050_v9 = vpop.permute.xlu1 %2049  ;;  %v2228_v53 = vpop.permute.xlu0 %2227 }
 0x244   : > { %2127 = vst.msk [vmem:[#allocation2 + $0x28] sm:$0xff] %vm932_vm5, %v2126_v18  ;;  %v2063_v54 = vadd.f32 %v2050_v9, %v1949_v48  ;;  %v3643_v41 = vpop.f32.mrf.mxu1  ;;  %v8382_v58 = vpop.f32.mrf.mxu0 }
 0x245   : > { %3747 = vrot.lane.b32.xlu0 %v6938_v21, %s7308_s20  ;;  %3749 = vrot.lane.b32.xlu1 %v6939_v28, %s7308_s20  ;;  %v1952_v21 = vld [vmem:[#allocation2 + $0x20] sm:$0xff] }
 0x246   : > { %2068 = vst.msk [vmem:[#allocation2 + $0x8] sm:$0xff] %vm932_vm5, %v2063_v54  ;;  %v6932_v62 = vpop.f32.mrf.mxu1  ;;  %v8387_v2 = vpop.f32.mrf.mxu0 }
 0x247   : > { %v2052_v33 = vpop.permute.xlu0 %2051  ;;  %v2230_v59 = vpop.permute.xlu1 %2229 }
 0x248   : > { %v2064_v42 = vadd.f32 %v2052_v33, %v1950_v57  ;;  %v3646_v4 = vpop.f32.mrf.mxu1  ;;  %v8389_v44 = vpop.f32.mrf.mxu0 }
 0x249   : > { %v2128_v6 = vld [vmem:[#allocation2] sm:$0xff]  ;;  %3743 = vrot.lane.b32.xlu0 %v3724_v23, %s7308_s20  ;;  %3745 = vrot.lane.b32.xlu1 %v3727_v50, %s7308_s20 }
 0x24a   : > { %v2242_v8 = vadd.f32 %v2228_v53, %v2128_v6  ;;  %2069 = vst.msk [vmem:[#allocation2 + $0x10] sm:$0xff] %vm932_vm5, %v2064_v42  ;;  %v6933_v51 = vpop.f32.mrf.mxu1  ;;  %v4063_v11 = vpop.f32.mrf.mxu0 }
 0x24b   : > { %v2054_v56 = vpop.permute.xlu1 %2053  ;;  %v2232_v12 = vpop.permute.xlu0 %2231  ;;  %v2252_v39 = vld [vmem:[#allocation2 + $0x28] sm:$0xff] }
 0x24c   : > { %2247 = vst.msk [vmem:[#allocation2] sm:$0xff] %vm1056_vm6, %v2242_v8  ;;  %v2065_v3 = vadd.f32 %v2054_v56, %v1951_v55  ;;  %v3811_v15 = vpop.f32.mrf.mxu1  ;;  %v8395_v63 = vpop.f32.mrf.mxu0 }
 0x24d   : > { %v2129_v16 = vld [vmem:[#allocation2 + $0x8] sm:$0xff]  ;;  %3484 = vrot.lane.b32.xlu0 %v3475_v34, %s7306_s18  ;;  %3486 = vrot.lane.b32.xlu1 %v3478_v43, %s7306_s18 }
 0x24e   : > { %v2243_v20 = vadd.f32 %v2230_v59, %v2129_v16  ;;  %2070 = vst.msk [vmem:[#allocation2 + $0x18] sm:$0xff] %vm932_vm5, %v2065_v3  ;;  %v6944_v0 = vpop.f32.mrf.mxu1  ;;  %v8400_v7 = vpop.f32.mrf.mxu0 }
 0x24f   : > { %v2056_v17 = vpop.permute.xlu0 %2055  ;;  %v2234_v28 = vpop.permute.xlu1 %2233 }
 0x250   : > { %2248 = vst.msk [vmem:[#allocation2 + $0x8] sm:$0xff] %vm1056_vm6, %v2243_v20  ;;  %v2066_v47 = vadd.f32 %v2056_v17, %v1952_v21  ;;  %v3814_v13 = vpop.f32.mrf.mxu1  ;;  %v6975_v23 = vpop.f32.mrf.mxu0 }
 0x251   : > { %v2130_v26 = vld [vmem:[#allocation2 + $0x10] sm:$0xff]  ;;  %3911 = vrot.lane.b32.xlu0 %v3892_v32, %s7309_s26  ;;  %3913 = vrot.lane.b32.xlu1 %v3895_v61, %s7309_s26 }
 0x252   : > { %v2244_v27 = vadd.f32 %v2232_v12, %v2130_v26  ;;  %2071 = vst.msk [vmem:[#allocation2 + $0x20] sm:$0xff] %vm932_vm5, %v2066_v47  ;;  %v6945_v19 = vpop.f32.mrf.mxu1  ;;  %v8406_v10 = vpop.f32.mrf.mxu0 }
 0x253   : > { %v2236_v43 = vpop.permute.xlu0 %2235  ;;  %v2308_v53 = vld [vmem:[#allocation2] sm:$0xff] }
 0x254   : > { %2249 = vst.msk [vmem:[#allocation2 + $0x10] sm:$0xff] %vm1056_vm6, %v2244_v27  ;;  %v3979_v52 = vpop.f32.mrf.mxu1  ;;  %v8409_v31 = vpop.f32.mrf.mxu0 }
 0x255   : > { %v2131_v24 = vld [vmem:[#allocation2 + $0x18] sm:$0xff]  ;;  %3652 = vrot.lane.b32.xlu0 %v3643_v41, %s7307_s19  ;;  %3654 = vrot.lane.b32.xlu1 %v3646_v4, %s7307_s19 }
 0x256   : > { %v2245_v29 = vadd.f32 %v2234_v28, %v2131_v24  ;;  %v6956_v50 = vpop.f32.mrf.mxu1  ;;  %v8413_v34 = vpop.f32.mrf.mxu0 }
 0x257   : > { %v2304_v32 = vpop.permute.xlu1 %2303  ;;  %v2309_v4 = vld [vmem:[#allocation2 + $0x8] sm:$0xff] }
 0x258   : > { %2250 = vst.msk [vmem:[#allocation2 + $0x18] sm:$0xff] %vm1056_vm6, %v2245_v29  ;;  %v2306_v30 = vadd.f32 %v2304_v32, %v2252_v39  ;;  %v3982_v36 = vpop.f32.mrf.mxu1  ;;  %v6987_v35 = vpop.f32.mrf.mxu0 }
 0x259   : > { %v2132_v38 = vld [vmem:[#allocation2 + $0x20] sm:$0xff]  ;;  %3915 = vrot.lane.b32.xlu0 %v8372_v14, %s7309_s26  ;;  %3917 = vrot.lane.b32.xlu1 %v8376_v25, %s7309_s26 }
 0x25a   : > { %v2246_v45 = vadd.f32 %v2236_v43, %v2132_v38  ;;  %2307 = vst.msk [vmem:[#allocation2 + $0x28] sm:$0xff] %vm1056_vm6, %v2306_v30  ;;  %v6957_v18 = vpop.f32.mrf.mxu1  ;;  %v4383_v46 = vpop.f32.mrf.mxu0 }
 0x25b   : > { %v2484_v25 = vpop.permute.xlu1 %2483  ;;  %v2310_v3 = vld [vmem:[#allocation2 + $0x10] sm:$0xff] }
 0x25c   : > { %2251 = vst.msk [vmem:[#allocation2 + $0x20] sm:$0xff] %vm1056_vm6, %v2246_v45  ;;  %v8422_v61 = vpop.f32.mrf.mxu1  ;;  %v8424_v48 = vpop.f32.mrf.mxu0 }
 0x25d   : > { %4079 = vrot.lane.b32.xlu0 %v8387_v2, %s7310_s27  ;;  %4081 = vrot.lane.b32.xlu1 %v4063_v11, %s7310_s27 }
 0x25e   : > { %v6968_v14 = vpop.f32.mrf.mxu1  ;;  %v8429_v9 = vpop.f32.mrf.mxu0 }
 0x25f   : > { %v2408_v54 = vpop.permute.xlu0 %2407 }
 0x260   : > { %v2422_v41 = vadd.f32 %v2408_v54, %v2308_v53  ;;  %v4150_v62 = vpop.f32.mrf.mxu1  ;;  %v6999_v57 = vpop.f32.mrf.mxu0 }
 0x261   : > { %v2432_v33 = vld [vmem:[#allocation2 + $0x28] sm:$0xff]  ;;  %3820 = vrot.lane.b32.xlu0 %v3811_v15, %s7308_s20  ;;  %3822 = vrot.lane.b32.xlu1 %v3814_v13, %s7308_s20  ;;  %v2311_v13 = vld [vmem:[#allocation2 + $0x18] sm:$0xff] }
 0x262   : > { %v2486_v59 = vadd.f32 %v2484_v25, %v2432_v33  ;;  %2427 = vst.msk [vmem:[#allocation2] sm:$0xff] %vm1180_vm7, %v2422_v41  ;;  %v6969_v2 = vpop.f32.mrf.mxu1  ;;  %v4563_v42 = vpop.f32.mrf.mxu0 }
 0x263   : > { %v2410_v6 = vpop.permute.xlu1 %2409  ;;  %v2588_v8 = vpop.permute.xlu0 %2587  ;;  %v2312_v39 = vld [vmem:[#allocation2 + $0x20] sm:$0xff] }
 0x264   : > { %2487 = vst.msk [vmem:[#allocation2 + $0x28] sm:$0xff] %vm1180_vm7, %v2486_v59  ;;  %v2423_v51 = vadd.f32 %v2410_v6, %v2309_v4  ;;  %v8435_v11 = vpop.f32.mrf.mxu1  ;;  %v8437_v55 = vpop.f32.mrf.mxu0 }
 0x265   : > { %4083 = vrot.lane.b32.xlu0 %v8382_v58, %s7310_s27  ;;  %4085 = vrot.lane.b32.xlu1 %v8389_v44, %s7310_s27 }
 0x266   : > { %2428 = vst.msk [vmem:[#allocation2 + $0x8] sm:$0xff] %vm1180_vm7, %v2423_v51  ;;  %v8444_v56 = vpop.f32.mrf.mxu1  ;;  %v8446_v12 = vpop.f32.mrf.mxu0 }
 0x267   : > { %v2412_v15 = vpop.permute.xlu0 %2411  ;;  %v2590_v16 = vpop.permute.xlu1 %2589 }
 0x268   : > { %v2424_v20 = vadd.f32 %v2412_v15, %v2310_v3  ;;  %v6981_v0 = vpop.f32.mrf.mxu1  ;;  %v7011_v21 = vpop.f32.mrf.mxu0 }
 0x269   : > { %v2488_v17 = vld [vmem:[#allocation2] sm:$0xff]  ;;  %3988 = vrot.lane.b32.xlu0 %v3979_v52, %s7309_s26  ;;  %3990 = vrot.lane.b32.xlu1 %v3982_v36, %s7309_s26 }
 0x26a   : > { %v2602_v58 = vadd.f32 %v2588_v8, %v2488_v17  ;;  %2429 = vst.msk [vmem:[#allocation2 + $0x10] sm:$0xff] %vm1180_vm7, %v2424_v20  ;;  %v8451_v44 = vpop.f32.mrf.mxu1  ;;  %v4743_v47 = vpop.f32.mrf.mxu0 }
 0x26b   : > { %v2414_v23 = vpop.permute.xlu1 %2413  ;;  %v2592_v26 = vpop.permute.xlu0 %2591  ;;  %v2612_v41 = vld [vmem:[#allocation2 + $0x28] sm:$0xff] }
 0x26c   : > { %2607 = vst.msk [vmem:[#allocation2] sm:$0xff] %vm1304_vm8, %v2602_v58  ;;  %v2425_v27 = vadd.f32 %v2414_v23, %v2311_v13  ;;  %v6992_v19 = vpop.f32.mrf.mxu1  ;;  %v8454_v28 = vpop.f32.mrf.mxu0 }
 0x26d   : > { %v2489_v24 = vld [vmem:[#allocation2 + $0x8] sm:$0xff]  ;;  %4401 = vrot.lane.b32.xlu0 %v8409_v31, %s7304_s16  ;;  %4399 = vrot.lane.b32.xlu1 %v4383_v46, %s7304_s16 }
 0x26e   : > { %v2603_v52 = vadd.f32 %v2590_v16, %v2489_v24  ;;  %2430 = vst.msk [vmem:[#allocation2 + $0x18] sm:$0xff] %vm1180_vm7, %v2425_v27  ;;  %v4470_v29 = vpop.f32.mrf.mxu1  ;;  %v8460_v50 = vpop.f32.mrf.mxu0 }
 0x26f   : > { %v2416_v32 = vpop.permute.xlu0 %2415  ;;  %v2594_v18 = vpop.permute.xlu1 %2593 }
 0x270   : > { %2608 = vst.msk [vmem:[#allocation2 + $0x8] sm:$0xff] %vm1304_vm8, %v2603_v52  ;;  %v2426_v30 = vadd.f32 %v2416_v32, %v2312_v39  ;;  %v6993_v36 = vpop.f32.mrf.mxu1  ;;  %v7023_v35 = vpop.f32.mrf.mxu0 }
 0x271   : > { %v2490_v38 = vld [vmem:[#allocation2 + $0x10] sm:$0xff]  ;;  %4397 = vrot.lane.b32.xlu0 %v8413_v34, %s7304_s16  ;;  %4158 = vrot.lane.b32.xlu1 %v4150_v62, %s7310_s27 }
 0x272   : > { %v2604_v31 = vadd.f32 %v2592_v26, %v2490_v38  ;;  %2431 = vst.msk [vmem:[#allocation2 + $0x20] sm:$0xff] %vm1180_vm7, %v2426_v30  ;;  %v4473_v43 = vpop.f32.mrf.mxu1  ;;  %v8467_v45 = vpop.f32.mrf.mxu0 }
 0x273   : > { %v2596_v4 = vpop.permute.xlu0 %2595  ;;  %v2668_v16 = vld [vmem:[#allocation2] sm:$0xff] }
 0x274   : > { %2609 = vst.msk [vmem:[#allocation2 + $0x10] sm:$0xff] %vm1304_vm8, %v2604_v31  ;;  %v7004_v46 = vpop.f32.mrf.mxu1  ;;  %v8470_v14 = vpop.f32.mrf.mxu0 }
 0x275   : > { %v2491_v25 = vld [vmem:[#allocation2 + $0x18] sm:$0xff]  ;;  %4156 = vrot.lane.b32.xlu0 %v8422_v61, %s7310_s27  ;;  %4579 = vrot.lane.b32.xlu1 %v4563_v42, %s7305_s17 }
 0x276   : > { %v2605_v34 = vadd.f32 %v2594_v18, %v2491_v25  ;;  %v4650_v53 = vpop.f32.mrf.mxu1  ;;  %v8475_v54 = vpop.f32.mrf.mxu0 }
 0x277   : > { %v2664_v62 = vpop.permute.xlu1 %2663  ;;  %v2669_v23 = vld [vmem:[#allocation2 + $0x8] sm:$0xff] }
 0x278   : > { %2610 = vst.msk [vmem:[#allocation2 + $0x18] sm:$0xff] %vm1304_vm8, %v2605_v34  ;;  %v2666_v57 = vadd.f32 %v2664_v62, %v2612_v41  ;;  %v7005_v33 = vpop.f32.mrf.mxu1  ;;  %v7035_v59 = vpop.f32.mrf.mxu0 }
 0x279   : > { %v2492_v2 = vld [vmem:[#allocation2 + $0x20] sm:$0xff]  ;;  %4581 = vrot.lane.b32.xlu0 %v8424_v48, %s7305_s17  ;;  %4759 = vrot.lane.b32.xlu1 %v4743_v47, %s7306_s18 }
 0x27a   : > { %v2606_v61 = vadd.f32 %v2596_v4, %v2492_v2  ;;  %2667 = vst.msk [vmem:[#allocation2 + $0x28] sm:$0xff] %vm1304_vm8, %v2666_v57  ;;  %v8482_v42 = vpop.f32.mrf.mxu1  ;;  %v8484_v6 = vpop.f32.mrf.mxu0 }
 0x27b   : > { %v2844_v15 = vpop.permute.xlu1 %2843 }
 0x27c   : > { %2611 = vst.msk [vmem:[#allocation2 + $0x20] sm:$0xff] %vm1304_vm8, %v2606_v61  ;;  %v7016_v8 = vpop.f32.mrf.mxu1  ;;  %v8487_v51 = vpop.f32.mrf.mxu0 }
 0x27d   : > { %4577 = vrot.lane.b32.xlu0 %v8429_v9, %s7305_s17  ;;  %4491 = vrot.lane.b32.xlu1 %v6992_v19, %s7304_s16 }
 0x27e   : > { %v8492_v48 = vpop.f32.mrf.mxu1  ;;  %v8494_v3 = vpop.f32.mrf.mxu0 }
 0x27f   : > { %v2768_v20 = vpop.permute.xlu0 %2767  ;;  %v2671_v18 = vld [vmem:[#allocation2 + $0x18] sm:$0xff] }
 0x280   : > { %v2782_v0 = vadd.f32 %v2768_v20, %v2668_v16  ;;  %v7017_v21 = vpop.f32.mrf.mxu1  ;;  %v7047_v17 = vpop.f32.mrf.mxu0 }
 0x281   : > { %v2792_v58 = vld [vmem:[#allocation2 + $0x28] sm:$0xff]  ;;  %4761 = vrot.lane.b32.xlu0 %v8437_v55, %s7306_s18  ;;  %4487 = vrot.lane.b32.xlu1 %v4470_v29, %s7304_s16  ;;  %v2670_v29 = vld [vmem:[#allocation2 + $0x10] sm:$0xff] }
 0x282   : > { %v2846_v47 = vadd.f32 %v2844_v15, %v2792_v58  ;;  %2787 = vst.msk [vmem:[#allocation2] sm:$0xff] %vm1428_vm9, %v2782_v0  ;;  %v8500_v9 = vpop.f32.mrf.mxu1  ;;  %v8502_v13 = vpop.f32.mrf.mxu0 }
 0x283   : > { %v2770_v26 = vpop.permute.xlu1 %2769  ;;  %v2672_v2 = vld [vmem:[#allocation2 + $0x20] sm:$0xff] }
 0x284   : > { %2847 = vst.msk [vmem:[#allocation2 + $0x28] sm:$0xff] %vm1428_vm9, %v2846_v47  ;;  %v2783_v27 = vadd.f32 %v2770_v26, %v2669_v23  ;;  %v8505_v19 = vpop.f32.mrf.mxu1  ;;  %v8507_v24 = vpop.f32.mrf.mxu0 }
 0x285   : > { %4757 = vrot.lane.b32.xlu0 %v8446_v12, %s7306_s18  ;;  %4671 = vrot.lane.b32.xlu1 %v7004_v46, %s7305_s17 }
 0x286   : > { %2788 = vst.msk [vmem:[#allocation2 + $0x8] sm:$0xff] %vm1428_vm9, %v2783_v27  ;;  %v8513_v55 = vpop.f32.mrf.mxu1  ;;  %v8515_v52 = vpop.f32.mrf.mxu0 }
 0x287   : > { %v2772_v39 = vpop.permute.xlu0 %2771 }
 0x288   : > { %v2784_v32 = vadd.f32 %v2772_v39, %v2670_v29  ;;  %v7029_v30 = vpop.f32.mrf.mxu1  ;;  %v7059_v36 = vpop.f32.mrf.mxu0 }
 0x289   : > { %v2849_v35 = vld [vmem:[#allocation2] sm:$0xff]  ;;  %4489 = vrot.lane.b32.xlu0 %v4473_v43, %s7304_s16  ;;  %4667 = vrot.lane.b32.xlu1 %v4650_v53, %s7305_s17 }
 0x28a   : > { %v2925_v12 = vadd.f32 %v8320_v5, %v2849_v35  ;;  %2789 = vst.msk [vmem:[#allocation2 + $0x10] sm:$0xff] %vm1428_vm9, %v2784_v32  ;;  %v8521_v38 = vpop.f32.mrf.mxu1 }
 0x28b   : > { %v2934_v31 = vld [vmem:[#allocation2 + $0x28] sm:$0xff]  ;;  %v2774_v46 = vpop.permute.xlu1 %2773  ;;  %v3076_v25 = vpop.permute.xlu0 %3075 }
 0x28c   : > { %v2987_v34 = vadd.f32 %v8351_v22, %v2934_v31  ;;  %2929 = vst.msk [vmem:[#allocation2] sm:$0xff] %vm490_vm2, %v2925_v12  ;;  %v2785_v41 = vadd.f32 %v2774_v46, %v2671_v18  ;;  %v8525_v62 = vpop.f32.mrf.mxu1 }
 0x28d   : > { %v2850_v43 = vld [vmem:[#allocation2 + $0x8] sm:$0xff]  ;;  %4937 = vrot.lane.b32.xlu0 %v8460_v50, %s7307_s19  ;;  %4939 = vrot.lane.b32.xlu1 %v8467_v45, %s7307_s19 }
 0x28e   : > { %2989 = vst.msk [vmem:[#allocation2 + $0x28] sm:$0xff] %vm490_vm2, %v2987_v34  ;;  %v2926_v5 = vadd.f32 %v8328_v40, %v2850_v43  ;;  %v8534_v53 = vpop.f32.mrf.mxu1 }
 0x28f   : > { %2790 = vst.msk [vmem:[#allocation2 + $0x18] sm:$0xff] %vm1428_vm9, %v2785_v41  ;;  %v3072_v22 = vpop.permute.xlu0 %3071  ;;  %v3078_v57 = vpop.permute.xlu1 %3077 }
 0x290   : > { %2930 = vst.msk [vmem:[#allocation2 + $0x8] sm:$0xff] %vm490_vm2, %v2926_v5  ;;  %v7041_v33 = vpop.f32.mrf.mxu1 }
 0x291   : > { %v2851_v59 = vld [vmem:[#allocation2 + $0x10] sm:$0xff]  ;;  %4669 = vrot.lane.b32.xlu0 %v8482_v42, %s7305_s17  ;;  %4851 = vrot.lane.b32.xlu1 %v7016_v8, %s7306_s18 }
 0x292   : > { %v2927_v50 = vadd.f32 %v8316_v60, %v2851_v59  ;;  %v8541_v45 = vpop.f32.mrf.mxu1 }
 0x293   : > { %v2990_v40 = vld [vmem:[#allocation2] sm:$0xff]  ;;  %v2776_v4 = vpop.permute.xlu0 %2775  ;;  %v3074_v61 = vpop.permute.xlu1 %3073 }
 0x294   : > { %2931 = vst.msk [vmem:[#allocation2 + $0x10] sm:$0xff] %vm490_vm2, %v2927_v50  ;;  %v3083_v15 = vadd.f32 %v3072_v22, %v2990_v40  ;;  %v2786_v16 = vadd.f32 %v2776_v4, %v2672_v2  ;;  %v8544_v20 = vpop.f32.mrf.mxu1 }
 0x295   : > { %4941 = vrot.lane.b32.xlu0 %v8454_v28, %s7307_s19  ;;  %4847 = vrot.lane.b32.xlu1 %v8492_v48, %s7306_s18  ;;  %v3092_v43 = vld [vmem:[#allocation2 + $0x28] sm:$0xff] }
 0x296   : > { %v2852_v0 = vld [vmem:[#allocation2 + $0x18] sm:$0xff]  ;;  %3087 = vst.msk [vmem:[#allocation2] sm:$0xff] %vm684_vm3, %v3083_v15  ;;  %v8553_v42 = vpop.f32.mrf.mxu1 }
 0x297   : > { %v2928_v60 = vadd.f32 %v8324_v49, %v2852_v0  ;;  %2791 = vst.msk [vmem:[#allocation2 + $0x20] sm:$0xff] %vm1428_vm9, %v2786_v16  ;;  %v2991_v8 = vld [vmem:[#allocation2 + $0x8] sm:$0xff]  ;;  %v3244_v21 = vpop.permute.xlu0 %3243  ;;  %v3246_v17 = vpop.permute.xlu1 %3245 }
 0x298   : > { %v3084_v58 = vadd.f32 %v3074_v61, %v2991_v8  ;;  %v7053_v47 = vpop.f32.mrf.mxu1 }
 0x299   : > { %2932 = vst.msk [vmem:[#allocation2 + $0x18] sm:$0xff] %vm490_vm2, %v2928_v60  ;;  %5117 = vrot.lane.b32.xlu0 %v8475_v54, %s7308_s20  ;;  %5119 = vrot.lane.b32.xlu1 %v8484_v6, %s7308_s20 }
 0x29a   : > { %3088 = vst.msk [vmem:[#allocation2 + $0x8] sm:$0xff] %vm684_vm3, %v3084_v58  ;;  %v8561_v49 = vpop.f32.mrf.mxu1 }
 0x29b   : > { %v2992_v28 = vld [vmem:[#allocation2 + $0x10] sm:$0xff]  ;;  %v3240_v48 = vpop.permute.xlu0 %3239  ;;  %v3242_v23 = vpop.permute.xlu1 %3241 }
 0x29c   : > { %v3085_v26 = vadd.f32 %v3076_v25, %v2992_v28  ;;  %v8563_v27 = vpop.f32.mrf.mxu1 }
 0x29d   : > { %v3158_v39 = vld [vmem:[#allocation2] sm:$0xff]  ;;  %4849 = vrot.lane.b32.xlu0 %v8500_v9, %s7306_s18  ;;  %5027 = vrot.lane.b32.xlu1 %v8513_v55, %s7307_s19  ;;  %s8844_s18 = scalar_lea.vmem %s8877_s12, %s6152_s15 }
 0x29e   : > { %v2933_v29 = vld [vmem:[#allocation2 + $0x20] sm:$0xff]  ;;  %3089 = vst.msk [vmem:[#allocation2 + $0x10] sm:$0xff] %vm684_vm3, %v3085_v26  ;;  %v3251_v6 = vadd.f32 %v3240_v48, %v3158_v39  ;;  %v8571_v32 = vpop.f32.mrf.mxu1 }
 0x29f   : > { %v2986_v54 = vadd.f32 %v8345_v37, %v2933_v29  ;;  %v3412_v36 = vpop.permute.xlu0 %3411  ;;  %v3414_v35 = vpop.permute.xlu1 %3413 }
 0x2a0   : > { %v2993_v30 = vld [vmem:[#allocation2 + $0x18] sm:$0xff]  ;;  %3255 = vst.msk [vmem:[#allocation2] sm:$0xff] %vm808_vm4, %v3251_v6  ;;  %v7065_v31 = vpop.f32.mrf.mxu1 }
 0x2a1   : > { %v3086_v12 = vadd.f32 %v3078_v57, %v2993_v30  ;;  %2988 = vst.msk [vmem:[#allocation2 + $0x20] sm:$0xff] %vm490_vm2, %v2986_v54  ;;  %v3159_v9 = vld [vmem:[#allocation2 + $0x8] sm:$0xff]  ;;  %5121 = vrot.lane.b32.xlu0 %v8470_v14, %s7308_s20  ;;  %5031 = vrot.lane.b32.xlu1 %v8505_v19, %s7307_s19 }
 0x2a2   : > { %v3252_v37 = vadd.f32 %v3242_v23, %v3159_v9 }
 0x2a3   : > { %3090 = vst.msk [vmem:[#allocation2 + $0x18] sm:$0xff] %vm684_vm3, %v3086_v12  ;;  %v3408_v55 = vpop.permute.xlu0 %3407  ;;  %v3410_v18 = vpop.permute.xlu1 %3409 }
 0x2a4   : > { %3256 = vst.msk [vmem:[#allocation2 + $0x8] sm:$0xff] %vm808_vm4, %v3252_v37  ;;  %v5553_v12 = vpop.f32.mrf.mxu1 }
 0x2a5   : > { %v3160_v46 = vld [vmem:[#allocation2 + $0x10] sm:$0xff]  ;;  %5029 = vrot.lane.b32.xlu0 %v8521_v38, %s7307_s19  ;;  %5299 = vrot.lane.b32.xlu1 %v8502_v13, %s7309_s26 }
 0x2a6   : > { %v3253_v25 = vadd.f32 %v3244_v21, %v3160_v46  ;;  %v5463_v21 = vpop.f32.mrf.mxu0 }
 0x2a7   : > { %v3326_v34 = vld [vmem:[#allocation2] sm:$0xff]  ;;  %v3149_v41 = vpop.permute.xlu0 %3148  ;;  %v3151_v19 = vpop.permute.xlu1 %3150 }
 0x2a8   : > { %v3091_v14 = vld [vmem:[#allocation2 + $0x20] sm:$0xff]  ;;  %3257 = vst.msk [vmem:[#allocation2 + $0x10] sm:$0xff] %vm808_vm4, %v3253_v25  ;;  %v3419_v5 = vadd.f32 %v3408_v55, %v3326_v34  ;;  %v3155_v57 = vadd.f32 %v3151_v19, %v3092_v43 }
 0x2a9   : > { %v3154_v22 = vadd.f32 %v3149_v41, %v3091_v14  ;;  %5297 = vrot.lane.b32.xlu0 %v8494_v3, %s7309_s26  ;;  %5207 = vrot.lane.b32.xlu1 %v8534_v53, %s7308_s20 }
 0x2aa   : > { %v3161_v33 = vld [vmem:[#allocation2 + $0x18] sm:$0xff]  ;;  %3423 = vst.msk [vmem:[#allocation2] sm:$0xff] %vm932_vm5, %v3419_v5 }
 0x2ab   : > { %v3254_v38 = vadd.f32 %v3246_v17, %v3161_v33  ;;  %3156 = vst.msk [vmem:[#allocation2 + $0x20] sm:$0xff] %vm684_vm3, %v3154_v22  ;;  %3157 = vst.msk [vmem:[#allocation2 + $0x28] sm:$0xff] %vm684_vm3, %v3155_v57  ;;  %v3327_v13 = vld [vmem:[#allocation2 + $0x8] sm:$0xff]  ;;  %v3580_v59 = vpop.permute.xlu0 %3579  ;;  %v3582_v50 = vpop.permute.xlu1 %3581 }
 0x2ac   : > { %v3420_v40 = vadd.f32 %v3410_v18, %v3327_v13 }
 0x2ad   : > { %3258 = vst.msk [vmem:[#allocation2 + $0x18] sm:$0xff] %vm808_vm4, %v3254_v38  ;;  %5301 = vrot.lane.b32.xlu0 %v8487_v51, %s7309_s26  ;;  %5211 = vrot.lane.b32.xlu1 %v8525_v62, %s7308_s20 }
 0x2ae   : > { %3424 = vst.msk [vmem:[#allocation2 + $0x8] sm:$0xff] %vm932_vm5, %v3420_v40 }
 0x2af   : > { %v3328_v3 = vld [vmem:[#allocation2 + $0x10] sm:$0xff]  ;;  %v3576_v53 = vpop.permute.xlu0 %3575  ;;  %v3578_v2 = vpop.permute.xlu1 %3577 }
 0x2b0   : > { %v3421_v4 = vadd.f32 %v3412_v36, %v3328_v3 }
 0x2b1   : > { %v3494_v61 = vld [vmem:[#allocation2] sm:$0xff]  ;;  %5209 = vrot.lane.b32.xlu0 %v8541_v45, %s7308_s20  ;;  %5387 = vrot.lane.b32.xlu1 %v8553_v42, %s7309_s26 }
 0x2b2   : > { %3425 = vst.msk [vmem:[#allocation2 + $0x10] sm:$0xff] %vm932_vm5, %v3421_v4  ;;  %v3587_v15 = vadd.f32 %v3576_v53, %v3494_v61  ;;  %v3259_v16 = vld [vmem:[#allocation2 + $0x20] sm:$0xff]  ;;  %v3260_v62 = vld [vmem:[#allocation2 + $0x28] sm:$0xff] }
 0x2b3   : > { %v3317_v0 = vpop.permute.xlu0 %3316  ;;  %v3319_v60 = vpop.permute.xlu1 %3318 }
 0x2b4   : > { %v3329_v51 = vld [vmem:[#allocation2 + $0x18] sm:$0xff]  ;;  %3591 = vst.msk [vmem:[#allocation2] sm:$0xff] %vm1056_vm6, %v3587_v15  ;;  %v3322_v17 = vadd.f32 %v3317_v0, %v3259_v16  ;;  %v3323_v58 = vadd.f32 %v3319_v60, %v3260_v62 }
 0x2b5   : > { %v3422_v8 = vadd.f32 %v3414_v35, %v3329_v51  ;;  %v3495_v47 = vld [vmem:[#allocation2 + $0x8] sm:$0xff]  ;;  %5477 = vrot.lane.b32.xlu0 %v8515_v52, %s7310_s27  ;;  %5479 = vrot.lane.b32.xlu1 %v5463_v21, %s7310_s27 }
 0x2b6   : > { %v3588_v45 = vadd.f32 %v3578_v2, %v3495_v47  ;;  %3324 = vst.msk [vmem:[#allocation2 + $0x20] sm:$0xff] %vm808_vm4, %v3322_v17  ;;  %3325 = vst.msk [vmem:[#allocation2 + $0x28] sm:$0xff] %vm808_vm4, %v3323_v58 }
 0x2b7   : > { %3426 = vst.msk [vmem:[#allocation2 + $0x18] sm:$0xff] %vm932_vm5, %v3422_v8  ;;  %v3748_v42 = vpop.permute.xlu0 %3747  ;;  %v3750_v28 = vpop.permute.xlu1 %3749 }
 0x2b8   : > { %3592 = vst.msk [vmem:[#allocation2 + $0x8] sm:$0xff] %vm1056_vm6, %v3588_v45 }
 0x2b9   : > { %v3496_v48 = vld [vmem:[#allocation2 + $0x10] sm:$0xff]  ;;  %5389 = vrot.lane.b32.xlu0 %v8561_v49, %s7309_s26  ;;  %5391 = vrot.lane.b32.xlu1 %v8544_v20, %s7309_s26 }
 0x2ba   : > { %v3589_v52 = vadd.f32 %v3580_v59, %v3496_v48 }
 0x2bb   : > { %v3662_v23 = vld [vmem:[#allocation2] sm:$0xff]  ;;  %v3744_v26 = vpop.permute.xlu0 %3743  ;;  %v3746_v29 = vpop.permute.xlu1 %3745 }
 0x2bc   : > { %3593 = vst.msk [vmem:[#allocation2 + $0x10] sm:$0xff] %vm1056_vm6, %v3589_v52  ;;  %v3755_v39 = vadd.f32 %v3744_v26, %v3662_v23 }
 0x2bd   : > { %5481 = vrot.lane.b32.xlu0 %v8507_v24, %s7310_s27  ;;  %5567 = vrot.lane.b32.xlu1 %v8571_v32, %s7310_s27  ;;  %v3427_v30 = vld [vmem:[#allocation2 + $0x20] sm:$0xff]  ;;  %v3428_v36 = vld [vmem:[#allocation2 + $0x28] sm:$0xff] }
 0x2be   : > { %v3497_v54 = vld [vmem:[#allocation2 + $0x18] sm:$0xff]  ;;  %3759 = vst.msk [vmem:[#allocation2] sm:$0xff] %vm1180_vm7, %v3755_v39 }
 0x2bf   : > { %v3590_v6 = vadd.f32 %v3582_v50, %v3497_v54  ;;  %v3663_v49 = vld [vmem:[#allocation2 + $0x8] sm:$0xff]  ;;  %v3485_v20 = vpop.permute.xlu0 %3484  ;;  %v3487_v35 = vpop.permute.xlu1 %3486 }
 0x2c0   : > { %v3756_v31 = vadd.f32 %v3746_v29, %v3663_v49  ;;  %v3490_v9 = vadd.f32 %v3485_v20, %v3427_v30  ;;  %v3491_v37 = vadd.f32 %v3487_v35, %v3428_v36 }
 0x2c1   : > { %3594 = vst.msk [vmem:[#allocation2 + $0x18] sm:$0xff] %vm1056_vm6, %v3590_v6  ;;  %5569 = vrot.lane.b32.xlu0 %v5553_v12, %s7310_s27  ;;  %5571 = vrot.lane.b32.xlu1 %v8563_v27, %s7310_s27 }
 0x2c2   : > { %3760 = vst.msk [vmem:[#allocation2 + $0x8] sm:$0xff] %vm1180_vm7, %v3756_v31 }
 0x2c3   : > { %3492 = vst.msk [vmem:[#allocation2 + $0x20] sm:$0xff] %vm932_vm5, %v3490_v9  ;;  %3493 = vst.msk [vmem:[#allocation2 + $0x28] sm:$0xff] %vm932_vm5, %v3491_v37  ;;  %v3664_v24 = vld [vmem:[#allocation2 + $0x10] sm:$0xff]  ;;  %v3912_v32 = vpop.permute.xlu0 %3911  ;;  %v3914_v55 = vpop.permute.xlu1 %3913 }
 0x2c4   : > { %v3757_v18 = vadd.f32 %v3748_v42, %v3664_v24 }
 0x2c5   : > { %v3830_v46 = vld [vmem:[#allocation2] sm:$0xff] }
 0x2c6   : > { %3761 = vst.msk [vmem:[#allocation2 + $0x10] sm:$0xff] %vm1180_vm7, %v3757_v18  ;;  %v3923_v25 = vadd.f32 %v3912_v32, %v3830_v46 }
 0x2c7   : > { %v3653_v14 = vpop.permute.xlu0 %3652  ;;  %v3655_v41 = vpop.permute.xlu1 %3654 }
 0x2c8   : > { %v3665_v34 = vld [vmem:[#allocation2 + $0x18] sm:$0xff]  ;;  %3927 = vst.msk [vmem:[#allocation2] sm:$0xff] %vm1304_vm8, %v3923_v25 }
 0x2c9   : > { %v3758_v43 = vadd.f32 %v3750_v28, %v3665_v34  ;;  %v3831_v27 = vld [vmem:[#allocation2 + $0x8] sm:$0xff] }
 0x2ca   : > { %v3595_v19 = vld [vmem:[#allocation2 + $0x20] sm:$0xff]  ;;  %v3596_v5 = vld [vmem:[#allocation2 + $0x28] sm:$0xff]  ;;  %v3924_v22 = vadd.f32 %v3914_v55, %v3831_v27 }
 0x2cb   : > { %3762 = vst.msk [vmem:[#allocation2 + $0x18] sm:$0xff] %vm1180_vm7, %v3758_v43  ;;  %v3658_v57 = vadd.f32 %v3653_v14, %v3595_v19  ;;  %v3659_v33 = vadd.f32 %v3655_v41, %v3596_v5  ;;  %v3916_v38 = vpop.permute.xlu0 %3915  ;;  %v3918_v13 = vpop.permute.xlu1 %3917 }
 0x2cc   : > { %3928 = vst.msk [vmem:[#allocation2 + $0x8] sm:$0xff] %vm1304_vm8, %v3924_v22 }
 0x2cd   : > { %3660 = vst.msk [vmem:[#allocation2 + $0x20] sm:$0xff] %vm1056_vm6, %v3658_v57  ;;  %3661 = vst.msk [vmem:[#allocation2 + $0x28] sm:$0xff] %vm1056_vm6, %v3659_v33  ;;  %v3832_v59 = vld [vmem:[#allocation2 + $0x10] sm:$0xff] }
 0x2ce   : > { %v3925_v50 = vadd.f32 %v3916_v38, %v3832_v59 }
 0x2cf   : > { %v3998_v40 = vld [vmem:[#allocation2] sm:$0xff]  ;;  %v4080_v3 = vpop.permute.xlu0 %4079  ;;  %v4082_v53 = vpop.permute.xlu1 %4081 }
 0x2d0   : > { %3929 = vst.msk [vmem:[#allocation2 + $0x10] sm:$0xff] %vm1304_vm8, %v3925_v50  ;;  %v4091_v2 = vadd.f32 %v4080_v3, %v3998_v40 }
 0x2d2   : > { %v3833_v4 = vld [vmem:[#allocation2 + $0x18] sm:$0xff]  ;;  %4095 = vst.msk [vmem:[#allocation2] sm:$0xff] %vm1428_vm9, %v4091_v2 }
 0x2d3   : > { %v3926_v61 = vadd.f32 %v3918_v13, %v3833_v4  ;;  %v3999_v15 = vld [vmem:[#allocation2 + $0x8] sm:$0xff]  ;;  %v3821_v16 = vpop.permute.xlu0 %3820  ;;  %v3823_v62 = vpop.permute.xlu1 %3822 }
 0x2d4   : > { %v3763_v51 = vld [vmem:[#allocation2 + $0x20] sm:$0xff]  ;;  %v3764_v0 = vld [vmem:[#allocation2 + $0x28] sm:$0xff]  ;;  %v4092_v60 = vadd.f32 %v4082_v53, %v3999_v15 }
 0x2d5   : > { %3930 = vst.msk [vmem:[#allocation2 + $0x18] sm:$0xff] %vm1304_vm8, %v3926_v61  ;;  %v3826_v8 = vadd.f32 %v3821_v16, %v3763_v51  ;;  %v3827_v21 = vadd.f32 %v3823_v62, %v3764_v0 }
 0x2d6   : > { %4096 = vst.msk [vmem:[#allocation2 + $0x8] sm:$0xff] %vm1428_vm9, %v4092_v60 }
 0x2d7   : > { %3828 = vst.msk [vmem:[#allocation2 + $0x20] sm:$0xff] %vm1180_vm7, %v3826_v8  ;;  %3829 = vst.msk [vmem:[#allocation2 + $0x28] sm:$0xff] %vm1180_vm7, %v3827_v21  ;;  %v4000_v17 = vld [vmem:[#allocation2 + $0x10] sm:$0xff]  ;;  %v4084_v58 = vpop.permute.xlu0 %4083  ;;  %v4086_v47 = vpop.permute.xlu1 %4085 }
 0x2d8   : > { %v4093_v45 = vadd.f32 %v4084_v58, %v4000_v17 }
 0x2d9   : > { %v4167_v42 = vld [vmem:[#allocation2] sm:$0xff] }
 0x2da   : > { %4097 = vst.msk [vmem:[#allocation2 + $0x10] sm:$0xff] %vm1428_vm9, %v4093_v45  ;;  %v4242_v28 = vadd.f32 %v8400_v7, %v4167_v42 }
 0x2db   : > { %v3989_v52 = vpop.permute.xlu0 %3988  ;;  %v3991_v23 = vpop.permute.xlu1 %3990 }
 0x2dc   : > { %v4001_v48 = vld [vmem:[#allocation2 + $0x18] sm:$0xff]  ;;  %4245 = vst.msk [vmem:[#allocation2] sm:$0xff] %vm490_vm2, %v4242_v28 }
 0x2dd   : > { %v4094_v26 = vadd.f32 %v4086_v47, %v4001_v48  ;;  %v4168_v54 = vld [vmem:[#allocation2 + $0x8] sm:$0xff] }
 0x2de   : > { %v3931_v29 = vld [vmem:[#allocation2 + $0x20] sm:$0xff]  ;;  %v3932_v39 = vld [vmem:[#allocation2 + $0x28] sm:$0xff]  ;;  %v4243_v30 = vadd.f32 %v8406_v10, %v4168_v54 }
 0x2df   : > { %4098 = vst.msk [vmem:[#allocation2 + $0x18] sm:$0xff] %vm1428_vm9, %v4094_v26  ;;  %v3994_v6 = vadd.f32 %v3989_v52, %v3931_v29  ;;  %v3995_v49 = vadd.f32 %v3991_v23, %v3932_v39  ;;  %v4402_v20 = vpop.permute.xlu0 %4401  ;;  %v4400_v36 = vpop.permute.xlu1 %4399 }
 0x2e0   : > { %4246 = vst.msk [vmem:[#allocation2 + $0x8] sm:$0xff] %vm490_vm2, %v4243_v30 }
 0x2e1   : > { %3996 = vst.msk [vmem:[#allocation2 + $0x20] sm:$0xff] %vm1304_vm8, %v3994_v6  ;;  %3997 = vst.msk [vmem:[#allocation2 + $0x28] sm:$0xff] %vm1304_vm8, %v3995_v49  ;;  %v4169_v7 = vld [vmem:[#allocation2 + $0x10] sm:$0xff] }
 0x2e2   : > { %v4244_v35 = vadd.f32 %v8395_v63, %v4169_v7 }
 0x2e3   : > { %v4322_v12 = vld [vmem:[#allocation2] sm:$0xff]  ;;  %v4398_v31 = vpop.permute.xlu0 %4397  ;;  %v4159_v9 = vpop.permute.xlu1 %4158 }
 0x2e4   : > { %4247 = vst.msk [vmem:[#allocation2 + $0x10] sm:$0xff] %vm490_vm2, %v4244_v35  ;;  %v4406_v37 = vadd.f32 %v4398_v31, %v4322_v12 }
 0x2e6   : > { %v4248_v24 = vld [vmem:[#allocation2 + $0x18] sm:$0xff]  ;;  %4409 = vst.msk [vmem:[#allocation2] sm:$0xff] %vm684_vm3, %v4406_v37 }
 0x2e7   : > { %v4316_v10 = vadd.f32 %v8444_v56, %v4248_v24  ;;  %v4323_v32 = vld [vmem:[#allocation2 + $0x8] sm:$0xff]  ;;  %v4157_v46 = vpop.permute.xlu0 %4156  ;;  %v4580_v25 = vpop.permute.xlu1 %4579 }
 0x2e8   : > { %v4100_v55 = vld [vmem:[#allocation2 + $0x28] sm:$0xff]  ;;  %v4099_v18 = vld [vmem:[#allocation2 + $0x20] sm:$0xff]  ;;  %v4407_v34 = vadd.f32 %v4400_v36, %v4323_v32 }
 0x2e9   : > { %v4163_v14 = vadd.f32 %v4159_v9, %v4100_v55  ;;  %v4162_v41 = vadd.f32 %v4157_v46, %v4099_v18  ;;  %4319 = vst.msk [vmem:[#allocation2 + $0x18] sm:$0xff] %vm490_vm2, %v4316_v10 }
 0x2ea   : > { %4410 = vst.msk [vmem:[#allocation2 + $0x8] sm:$0xff] %vm684_vm3, %v4407_v34 }
 0x2eb   : > { %4165 = vst.msk [vmem:[#allocation2 + $0x28] sm:$0xff] %vm1428_vm9, %v4163_v14  ;;  %4164 = vst.msk [vmem:[#allocation2 + $0x20] sm:$0xff] %vm1428_vm9, %v4162_v41  ;;  %v4324_v63 = vld [vmem:[#allocation2 + $0x10] sm:$0xff]  ;;  %v4582_v43 = vpop.permute.xlu0 %4581  ;;  %v4760_v27 = vpop.permute.xlu1 %4759 }
 0x2ec   : > { %v4408_v56 = vadd.f32 %v4402_v20, %v4324_v63 }
 0x2ed   : > { %v4502_v19 = vld [vmem:[#allocation2] sm:$0xff] }
 0x2ee   : > { %4411 = vst.msk [vmem:[#allocation2 + $0x10] sm:$0xff] %vm684_vm3, %v4408_v56 }
 0x2ef   : > { %v4578_v5 = vpop.permute.xlu0 %4577  ;;  %v4492_v22 = vpop.permute.xlu1 %4491 }
 0x2f0   : > { %v4586_v57 = vadd.f32 %v4578_v5, %v4502_v19  ;;  %v4412_v53 = vld [vmem:[#allocation2 + $0x18] sm:$0xff] }
 0x2f1   : > { %v4503_v33 = vld [vmem:[#allocation2 + $0x8] sm:$0xff] }
 0x2f2   : > { %v4250_v38 = vld [vmem:[#allocation2 + $0x28] sm:$0xff]  ;;  %v4249_v13 = vld [vmem:[#allocation2 + $0x20] sm:$0xff]  ;;  %v4587_v59 = vadd.f32 %v4580_v25, %v4503_v33  ;;  %4589 = vst.msk [vmem:[#allocation2] sm:$0xff] %vm808_vm4, %v4586_v57 }
 0x2f3   : > { %v4318_v50 = vadd.f32 %v8435_v11, %v4250_v38  ;;  %v4317_v40 = vadd.f32 %v8451_v44, %v4249_v13  ;;  %v4762_v3 = vpop.permute.xlu0 %4761  ;;  %v4488_v2 = vpop.permute.xlu1 %4487 }
 0x2f4   : > { %4590 = vst.msk [vmem:[#allocation2 + $0x8] sm:$0xff] %vm808_vm4, %v4587_v59  ;;  %v4496_v4 = vadd.f32 %v4488_v2, %v4412_v53 }
 0x2f5   : > { %4321 = vst.msk [vmem:[#allocation2 + $0x28] sm:$0xff] %vm490_vm2, %v4318_v50  ;;  %4320 = vst.msk [vmem:[#allocation2 + $0x20] sm:$0xff] %vm490_vm2, %v4317_v40  ;;  %v4504_v61 = vld [vmem:[#allocation2 + $0x10] sm:$0xff] }
 0x2f6   : > { %v4588_v15 = vadd.f32 %v4582_v43, %v4504_v61  ;;  %4499 = vst.msk [vmem:[#allocation2 + $0x18] sm:$0xff] %vm684_vm3, %v4496_v4 }
 0x2f7   : > { %v4758_v51 = vpop.permute.xlu0 %4757  ;;  %v4672_v16 = vpop.permute.xlu1 %4671 }
 0x2f8   : > { %4591 = vst.msk [vmem:[#allocation2 + $0x10] sm:$0xff] %vm808_vm4, %v4588_v15 }
 0x2f9   : > { %v4682_v11 = vld [vmem:[#allocation2] sm:$0xff] }
 0x2fa   : > { %v4766_v44 = vadd.f32 %v4758_v51, %v4682_v11 }
 0x2fb   : > { %v4683_v0 = vld [vmem:[#allocation2 + $0x8] sm:$0xff]  ;;  %v4490_v8 = vpop.permute.xlu0 %4489  ;;  %v4668_v21 = vpop.permute.xlu1 %4667 }
 0x2fc   : > { %v4414_v62 = vld [vmem:[#allocation2 + $0x28] sm:$0xff]  ;;  %v4413_v60 = vld [vmem:[#allocation2 + $0x20] sm:$0xff]  ;;  %v4767_v17 = vadd.f32 %v4760_v27, %v4683_v0  ;;  %4769 = vst.msk [vmem:[#allocation2] sm:$0xff] %vm932_vm5, %v4766_v44 }
 0x2fd   : > { %v4498_v58 = vadd.f32 %v4492_v22, %v4414_v62  ;;  %v4497_v47 = vadd.f32 %v4490_v8, %v4413_v60  ;;  %v4592_v45 = vld [vmem:[#allocation2 + $0x18] sm:$0xff] }
 0x2fe   : > { %4770 = vst.msk [vmem:[#allocation2 + $0x8] sm:$0xff] %vm932_vm5, %v4767_v17  ;;  %v4676_v42 = vadd.f32 %v4668_v21, %v4592_v45 }
 0x2ff   : > { %4501 = vst.msk [vmem:[#allocation2 + $0x28] sm:$0xff] %vm684_vm3, %v4498_v58  ;;  %4500 = vst.msk [vmem:[#allocation2 + $0x20] sm:$0xff] %vm684_vm3, %v4497_v47  ;;  %v4684_v28 = vld [vmem:[#allocation2 + $0x10] sm:$0xff]  ;;  %v4938_v48 = vpop.permute.xlu0 %4937  ;;  %v4940_v52 = vpop.permute.xlu1 %4939 }
 0x300   : > { %v4768_v23 = vadd.f32 %v4762_v3, %v4684_v28  ;;  %4679 = vst.msk [vmem:[#allocation2 + $0x18] sm:$0xff] %vm808_vm4, %v4676_v42 }
 0x302   : > { %4771 = vst.msk [vmem:[#allocation2 + $0x10] sm:$0xff] %vm932_vm5, %v4768_v23 }
 0x303   : > { %v4862_v26 = vld [vmem:[#allocation2] sm:$0xff]  ;;  %v4670_v29 = vpop.permute.xlu0 %4669  ;;  %v4852_v39 = vpop.permute.xlu1 %4851 }
 0x304   : > { %v4946_v54 = vadd.f32 %v4938_v48, %v4862_v26 }
 0x305   : > { %v4863_v49 = vld [vmem:[#allocation2 + $0x8] sm:$0xff] }
 0x306   : > { %v4594_v6 = vld [vmem:[#allocation2 + $0x28] sm:$0xff]  ;;  %v4593_v30 = vld [vmem:[#allocation2 + $0x20] sm:$0xff]  ;;  %4949 = vst.msk [vmem:[#allocation2] sm:$0xff] %vm1056_vm6, %v4946_v54  ;;  %v4947_v36 = vadd.f32 %v4940_v52, %v4863_v49 }
 0x307   : > { %v4678_v20 = vadd.f32 %v4672_v16, %v4594_v6  ;;  %v4677_v7 = vadd.f32 %v4670_v29, %v4593_v30  ;;  %v4942_v35 = vpop.permute.xlu0 %4941  ;;  %v4772_v12 = vld [vmem:[#allocation2 + $0x18] sm:$0xff]  ;;  %v4848_v31 = vpop.permute.xlu1 %4847 }
 0x308   : > { %4950 = vst.msk [vmem:[#allocation2 + $0x8] sm:$0xff] %vm1056_vm6, %v4947_v36  ;;  %v4856_v9 = vadd.f32 %v4848_v31, %v4772_v12  ;;  %v5598_v36 = vld [vmem:[%s7407_s14 + $0xc] sm:$0xf]  ;;  %v6423_v12 = vld [vmem:[%s7407_s14 + $0x10] sm:$0xff]  }
 0x309   : > { %4681 = vst.msk [vmem:[#allocation2 + $0x28] sm:$0xff] %vm808_vm4, %v4678_v20  ;;  %4680 = vst.msk [vmem:[#allocation2 + $0x20] sm:$0xff] %vm808_vm4, %v4677_v7  ;;  %v4864_v37 = vld [vmem:[#allocation2 + $0x10] sm:$0xff]  ;;  %v6378_v20 = vld [vmem:[%s8868_s3] ss:$0 sm:$0xff] }
 0x30a   : > { %v4948_v24 = vadd.f32 %v4942_v35, %v4864_v37  ;;  %4859 = vst.msk [vmem:[#allocation2 + $0x18] sm:$0xff] %vm932_vm5, %v4856_v9 }
 0x30b   : > { %v5118_v10 = vpop.permute.xlu0 %5117  ;;  %v5120_v32 = vpop.permute.xlu1 %5119 }
 0x30c   : > { %4951 = vst.msk [vmem:[#allocation2 + $0x10] sm:$0xff] %vm1056_vm6, %v4948_v24 }
 0x30d   : > { %v5042_v55 = vld [vmem:[#allocation2] sm:$0xff] }
 0x30e   : > { %v5126_v18 = vadd.f32 %v5118_v10, %v5042_v55 }
 0x30f   : > { %v5043_v25 = vld [vmem:[#allocation2 + $0x8] sm:$0xff]  ;;  %v4850_v14 = vpop.permute.xlu0 %4849  ;;  %v5028_v41 = vpop.permute.xlu1 %5027 }
 0x310   : > { %v4774_v46 = vld [vmem:[#allocation2 + $0x28] sm:$0xff]  ;;  %v4773_v34 = vld [vmem:[#allocation2 + $0x20] sm:$0xff]  ;;  %5129 = vst.msk [vmem:[#allocation2] sm:$0xff] %vm1180_vm7, %v5126_v18  ;;  %v5127_v43 = vadd.f32 %v5120_v32, %v5043_v25 }
 0x311   : > { %v4858_v63 = vadd.f32 %v4852_v39, %v4774_v46  ;;  %v4857_v27 = vadd.f32 %v4850_v14, %v4773_v34  ;;  %v4952_v56 = vld [vmem:[#allocation2 + $0x18] sm:$0xff]  ;;  %v5601_v46 = vunpack.c.l.bf16 %v5598_v36  ;;  %v6417_v34 = vunpack.c.l.bf16 %v6423_v12 }
 0x312   : > { %5130 = vst.msk [vmem:[#allocation2 + $0x8] sm:$0xff] %vm1180_vm7, %v5127_v43  ;;  %v5036_v19 = vadd.f32 %v5028_v41, %v4952_v56  ;;  %v6420_v56 = vld [vmem:[%s7435_s25] sm:$0xff]  }
 0x313   : > { %4861 = vst.msk [vmem:[#allocation2 + $0x28] sm:$0xff] %vm932_vm5, %v4858_v63  ;;  %4860 = vst.msk [vmem:[#allocation2 + $0x20] sm:$0xff] %vm932_vm5, %v4857_v27  ;;  %v5044_v5 = vld [vmem:[#allocation2 + $0x10] sm:$0xff]  ;;  %v5122_v22 = vpop.permute.xlu0 %5121  ;;  %v5032_v57 = vpop.permute.xlu1 %5031 }
 0x314   : > { %5039 = vst.msk [vmem:[#allocation2 + $0x18] sm:$0xff] %vm1056_vm6, %v5036_v19  ;;  %v5128_v33 = vadd.f32 %v5122_v22, %v5044_v5 }
 0x316   : > { %5131 = vst.msk [vmem:[#allocation2 + $0x10] sm:$0xff] %vm1180_vm7, %v5128_v33 }
 0x317   : > { %v5030_v38 = vpop.permute.xlu0 %5029  ;;  %v5300_v13 = vpop.permute.xlu1 %5299  ;;  %v5222_v4 = vld [vmem:[#allocation2] sm:$0xff] }
 0x319   : > { %v5223_v40 = vld [vmem:[#allocation2 + $0x8] sm:$0xff] }
 0x31a   : > { %v4954_v59 = vld [vmem:[#allocation2 + $0x28] sm:$0xff]  ;;  %v4953_v50 = vld [vmem:[#allocation2 + $0x20] sm:$0xff]  ;;  %v5307_v2 = vadd.f32 %v5300_v13, %v5223_v40 }
 0x31b   : > { %v5038_v3 = vadd.f32 %v5032_v57, %v4954_v59  ;;  %v5037_v53 = vadd.f32 %v5030_v38, %v4953_v50  ;;  %v5298_v61 = vpop.permute.xlu0 %5297  ;;  %v5132_v15 = vld [vmem:[#allocation2 + $0x18] sm:$0xff]  ;;  %v5208_v51 = vpop.permute.xlu1 %5207  ;;  %v6418_v50 = vunpack.c.h.bf16 %v6423_v12 }
 0x31c   : > { %5310 = vst.msk [vmem:[#allocation2 + $0x8] sm:$0xff] %vm1304_vm8, %v5307_v2  ;;  %v5306_v16 = vadd.f32 %v5298_v61, %v5222_v4  ;;  %v5216_v11 = vadd.f32 %v5208_v51, %v5132_v15  ;;  %v5622_v51 = vld [vmem:[%s7435_s25 + $0x8] sm:$0xf] }
 0x31d   : > { %5041 = vst.msk [vmem:[#allocation2 + $0x28] sm:$0xff] %vm1056_vm6, %v5038_v3  ;;  %5040 = vst.msk [vmem:[#allocation2 + $0x20] sm:$0xff] %vm1056_vm6, %v5037_v53  ;;  %v5224_v44 = vld [vmem:[#allocation2 + $0x10] sm:$0xff]  ;;  %v6421_v3 = vunpack.c.l.bf16 %v6420_v56 }
 0x31e   : > { %5309 = vst.msk [vmem:[#allocation2] sm:$0xff] %vm1304_vm8, %v5306_v16 }
 0x31f   : > { %5219 = vst.msk [vmem:[#allocation2 + $0x18] sm:$0xff] %vm1180_vm7, %v5216_v11  ;;  %v5302_v0 = vpop.permute.xlu0 %5301  ;;  %v5212_v62 = vpop.permute.xlu1 %5211 }
 0x320   : > { %v5308_v60 = vadd.f32 %v5302_v0, %v5224_v44 }
 0x322   : > { %5311 = vst.msk [vmem:[#allocation2 + $0x10] sm:$0xff] %vm1304_vm8, %v5308_v60 }
 0x323   : > { %v5210_v17 = vpop.permute.xlu0 %5209  ;;  %v5388_v58 = vpop.permute.xlu1 %5387  ;;  %v5403_v26 = vld [vmem:[#allocation2 + $0x8] sm:$0xff] }
 0x324   : > { %v5134_v8 = vld [vmem:[#allocation2 + $0x28] sm:$0xff]  ;;  %v5133_v21 = vld [vmem:[#allocation2 + $0x20] sm:$0xff] }
 0x325   : > { %v5218_v47 = vadd.f32 %v5212_v62, %v5134_v8  ;;  %v5217_v45 = vadd.f32 %v5210_v17, %v5133_v21  ;;  %v5402_v48 = vld [vmem:[#allocation2] sm:$0xff]  ;;  %v6422_v8 = vunpack.c.h.bf16 %v6420_v56  ;;  %v5625_v17 = vunpack.c.l.bf16 %v5622_v51 }
 0x326   : > { %v5312_v42 = vld [vmem:[#allocation2 + $0x18] sm:$0xff] }
 0x327   : > { %5221 = vst.msk [vmem:[#allocation2 + $0x28] sm:$0xff] %vm1180_vm7, %v5218_v47  ;;  %5220 = vst.msk [vmem:[#allocation2 + $0x20] sm:$0xff] %vm1180_vm7, %v5217_v45  ;;  %v5396_v28 = vadd.f32 %v5388_v58, %v5312_v42  ;;  %v5478_v52 = vpop.permute.xlu0 %5477  ;;  %v5480_v23 = vpop.permute.xlu1 %5479 }
 0x328   : > { %v5486_v29 = vadd.f32 %v5478_v52, %v5402_v48  ;;  %v5487_v39 = vadd.f32 %v5480_v23, %v5403_v26 }
 0x329   : > { %5399 = vst.msk [vmem:[#allocation2 + $0x18] sm:$0xff] %vm1304_vm8, %v5396_v28  ;;  %v5404_v31 = vld [vmem:[#allocation2 + $0x10] sm:$0xff] }
 0x32a   : > { %5489 = vst.msk [vmem:[#allocation2] sm:$0xff] %vm1428_vm9, %v5486_v29  ;;  %5490 = vst.msk [vmem:[#allocation2 + $0x8] sm:$0xff] %vm1428_vm9, %v5487_v39 }
 0x32b   : > { %v5390_v54 = vpop.permute.xlu0 %5389  ;;  %v5392_v6 = vpop.permute.xlu1 %5391 }
 0x32e   : > { %v5313_v49 = vld [vmem:[#allocation2 + $0x20] sm:$0xff]  ;;  %v5314_v30 = vld [vmem:[#allocation2 + $0x28] sm:$0xff] }
 0x32f   : > { %v5397_v7 = vadd.f32 %v5390_v54, %v5313_v49  ;;  %v5398_v35 = vadd.f32 %v5392_v6, %v5314_v30  ;;  %v5482_v9 = vpop.permute.xlu0 %5481  ;;  %v5568_v24 = vpop.permute.xlu1 %5567 }
 0x330   : > { %v5492_v37 = vld [vmem:[#allocation2 + $0x18] sm:$0xff]  ;;  %v5488_v10 = vadd.f32 %v5482_v9, %v5404_v31 }
 0x331   : > { %5400 = vst.msk [vmem:[#allocation2 + $0x20] sm:$0xff] %vm1304_vm8, %v5397_v7  ;;  %5401 = vst.msk [vmem:[#allocation2 + $0x28] sm:$0xff] %vm1304_vm8, %v5398_v35  ;;  %v5576_v32 = vadd.f32 %v5568_v24, %v5492_v37  ;;  %v5583_v55 = vld [vmem:[#allocation2] sm:$0xff]  ;;  %v5584_v18 = vld [vmem:[#allocation2 + $0x8] sm:$0xff] }
 0x332   : > { %v5592_v25 = vadd.f32 %v6378_v20, %v5583_v55  ;;  %v5593_v14 = vadd.f32 %v6378_v20, %v5584_v18  ;;  %5491 = vst.msk [vmem:[#allocation2 + $0x10] sm:$0xff] %vm1428_vm9, %v5488_v10 }
 0x333   : > { %5579 = vst.msk [vmem:[#allocation2 + $0x18] sm:$0xff] %vm1428_vm9, %v5576_v32  ;;  %v5570_v5 = vpop.permute.xlu0 %5569  ;;  %v5572_v57 = vpop.permute.xlu1 %5571 }
 0x334   : > { %v5595_v41 = vmax.f32 %v5592_v25, 0.0  ;;  %v5596_v63 = vmax.f32 %v5593_v14, 0.0 }
 0x336   : > { %v5604_v43 = vadd.f32 %v5601_v46, %v5595_v41  ;;  %v5605_v27 = vadd.f32 %v6417_v34, %v5596_v63 }
 0x338   : > { %v5493_v19 = vld [vmem:[#allocation2 + $0x20] sm:$0xff]  ;;  %v5494_v22 = vld [vmem:[#allocation2 + $0x28] sm:$0xff]  ;;  %5608 = vst.msk [vmem:[#allocation2] sm:$0xff] %vm5607_vm10, %v5604_v43  ;;  %5609 = vst.msk [vmem:[#allocation2 + $0x8] sm:$0xff] %vm5607_vm10, %v5605_v27 }
 0x339   : > { %v5577_v33 = vadd.f32 %v5570_v5, %v5493_v19  ;;  %v5578_v38 = vadd.f32 %v5572_v57, %v5494_v22  ;;  %v5585_v13 = vld [vmem:[#allocation2 + $0x10] sm:$0xff] }
 0x33a   : > { %v5611_v59 = vld [vmem:[#allocation2 + $0x18] sm:$0xff]  ;;  %v5594_v40 = vadd.f32 %v6378_v20, %v5585_v13  ;;  %v7259_v13 = vld [vmem:[%s8871_s6 + $0x8] sm:$0xff]  }
 0x33b   : > { %v5614_v53 = vadd.f32 %v6378_v20, %v5611_v59  ;;  %5580 = vst.msk [vmem:[#allocation2 + $0x20] sm:$0xff] %vm1428_vm9, %v5577_v33  ;;  %5581 = vst.msk [vmem:[#allocation2 + $0x28] sm:$0xff] %vm1428_vm9, %v5578_v38  ;;  %7067 = vmatpush3.bf16.msra.mxu0 %v7259_v13  ;;  %v7260_v59 = vld [vmem:[%s8871_s6] sm:$0xff]  }
 0x33c   : > { %v5597_v2 = vmax.f32 %v5594_v40, 0.0  ;;  %7068 = vmatprep.subr.bf16.mxu0 %v7295_v1 }
 0x33d   : > { %v5617_v4 = vmax.f32 %v5614_v53, 0.0 }
 0x33e   : > { %v5606_v61 = vadd.f32 %v6418_v50, %v5597_v2 }
 0x33f   : > { %v5626_v15 = vadd.f32 %v6421_v3, %v5617_v4  ;;  %v5632_v16 = vld [vmem:[#allocation2] sm:$0xff]  ;;  %v5633_v11 = vld [vmem:[#allocation2 + $0x8] sm:$0xff]  ;;  %7069 = vmatpush3.bf16.msra.mxu0 %v7260_v59 }
 0x340   : > { %5610 = vst.msk [vmem:[#allocation2 + $0x10] sm:$0xff] %vm5607_vm10, %v5606_v61  ;;  %v5640_v44 = vsel %vm5607_vm10, %v5632_v16, 0.0  ;;  %v5643_v0 = vsel %vm5607_vm10, %v5633_v11, 0.0 }
 0x341   : > { %5629 = vst.msk [vmem:[#allocation2 + $0x18] sm:$0xff] %vm5607_vm10, %v5626_v15  ;;  %5641 = vadd.xlane.f32.xlu0 %v5640_v44  ;;  %5644 = vadd.xlane.f32.xlu1 %v5643_v0 }
 0x342   : > { %v5612_v62 = vld [vmem:[#allocation2 + $0x20] sm:$0xff]  ;;  %v5613_v60 = vld [vmem:[#allocation2 + $0x28] sm:$0xff] }
 0x343   : > { %v5615_v21 = vadd.f32 %v6378_v20, %v5612_v62  ;;  %v5616_v58 = vadd.f32 %v6378_v20, %v5613_v60 }
 0x345   : > { %v5618_v47 = vmax.f32 %v5615_v21, 0.0  ;;  %v5619_v45 = vmax.f32 %v5616_v58, 0.0 }
 0x347   : > { %v5627_v42 = vadd.f32 %v6422_v8, %v5618_v47  ;;  %v5628_v28 = vadd.f32 %v5625_v17, %v5619_v45  ;;  %v5634_v48 = vld [vmem:[#allocation2 + $0x10] sm:$0xff]  ;;  %v6379_v17 = vld [vmem:[%s8869_s4] ss:$0 sm:$0xff] }
 0x348   : > { %v5646_v52 = vsel %vm5607_vm10, %v5634_v48, 0.0  ;;  %v5635_v23 = vld [vmem:[#allocation2 + $0x18] sm:$0xff] }
 0x349   : > { %5630 = vst.msk [vmem:[#allocation2 + $0x20] sm:$0xff] %vm5607_vm10, %v5627_v42  ;;  %5631 = vst.msk [vmem:[#allocation2 + $0x28] sm:$0xff] %vm5607_vm10, %v5628_v28  ;;  %5647 = vadd.xlane.f32.xlu0 %v5646_v52  ;;  %v5649_v26 = vsel %vm5607_vm10, %v5635_v23, 0.0 }
 0x34d   : > { %5650 = vadd.xlane.f32.xlu0 %v5649_v26 }
 0x350   : > { %v5637_v29 = vld [vmem:[#allocation2 + $0x28] sm:$0xff]  ;;  %v5636_v39 = vld [vmem:[#allocation2 + $0x20] sm:$0xff] }
 0x351   : > { %v5655_v54 = vsel %vm5607_vm10, %v5637_v29, 0.0  ;;  %v5652_v6 = vsel %vm5607_vm10, %v5636_v39, 0.0 }
 0x352   : > { %5656 = vadd.xlane.f32.xlu0 %v5655_v54  ;;  %5653 = vadd.xlane.f32.xlu1 %v5652_v6 }
 0x3ca   : > { %v5642_v49 = vpop.xlane.xlu0 %5641  ;;  %v5645_v30 = vpop.xlane.xlu1 %5644 }
 0x3cb   : > { %v5659_v20 = vmul.f32 0.03125, %v5642_v49  ;;  %v5660_v36 = vmul.f32 0.03125, %v5645_v30 }
 0x3cd   : > { %v8720_v7 = vsub.f32 %v5632_v16, %v5659_v20  ;;  %v5666_v35 = vsub.f32 %v5633_v11, %v5660_v36 }
 0x3cf   : > { %v5671_v12 = vmul.f32 %v8720_v7, %v8720_v7  ;;  %v5672_v31 = vmul.f32 %v5666_v35, %v5666_v35 }
 0x3d1   : > { %v5677_v9 = vsel %vm5607_vm10, %v5671_v12, 0.0  ;;  %v5680_v37 = vsel %vm5607_vm10, %v5672_v31, 0.0 }
 0x3d2   : > { %v5648_v24 = vpop.xlane.xlu0 %5647  ;;  %5678 = vadd.xlane.f32.xlu1 %v5677_v9  ;;  %5681 = vadd.xlane.f32.xlu0 %v5680_v37 }
 0x3d3   : > { %v5661_v10 = vmul.f32 0.03125, %v5648_v24 }
 0x3d5   : > { %v8726_v32 = vsub.f32 %v5634_v48, %v5661_v10  ;;  %v6380_v48 = vld [vmem:[%s8870_s5] ss:$0 sm:$0xff] }
 0x3d6   : > { %v5651_v55 = vpop.xlane.xlu0 %5650 }
 0x3d7   : > { %v5662_v18 = vmul.f32 0.03125, %v5651_v55  ;;  %v5673_v46 = vmul.f32 %v8726_v32, %v8726_v32 }
 0x3d9   : > { %v8730_v25 = vsub.f32 %v5635_v23, %v5662_v18  ;;  %v5683_v34 = vsel %vm5607_vm10, %v5673_v46, 0.0 }
 0x3da   : > { %5684 = vadd.xlane.f32.xlu1 %v5683_v34  ;;  %v7262_v34 = vld [vmem:[%s8873_s8] sm:$0xff]  }
 0x3db   : > { %v5657_v14 = vpop.xlane.xlu0 %5656  ;;  %v5654_v41 = vpop.xlane.xlu1 %5653  ;;  %v5674_v27 = vmul.f32 %v8730_v25, %v8730_v25 }
 0x3dc   : > { %v5664_v63 = vmul.f32 0.03125, %v5657_v14  ;;  %v5663_v43 = vmul.f32 0.03125, %v5654_v41  ;;  %v6381_v14 = vld [vmem:[%s8872_s7] ss:$0 sm:$0xff] }
 0x3dd   : > { %v5686_v5 = vsel %vm5607_vm10, %v5674_v27, 0.0 }
 0x3de   : > { %v5670_v56 = vsub.f32 %v5637_v29, %v5664_v63  ;;  %v5669_v19 = vsub.f32 %v5636_v39, %v5663_v43  ;;  %5687 = vadd.xlane.f32.xlu0 %v5686_v5 }
 0x3e0   : > { %v5676_v22 = vmul.f32 %v5670_v56, %v5670_v56  ;;  %v5675_v57 = vmul.f32 %v5669_v19, %v5669_v19 }
 0x3e2   : > { %v5692_v33 = vsel %vm5607_vm10, %v5676_v22, 0.0  ;;  %v5689_v38 = vsel %vm5607_vm10, %v5675_v57, 0.0 }
 0x3e3   : > { %5693 = vadd.xlane.f32.xlu0 %v5692_v33  ;;  %5690 = vadd.xlane.f32.xlu1 %v5689_v38 }
 0x45b   : > { %v5682_v50 = vpop.xlane.xlu0 %5681  ;;  %v5679_v40 = vpop.xlane.xlu1 %5678 }
 0x45c   : > { %v5696_v3 = vmul.f32 0.03125, %v5682_v50  ;;  %v5695_v53 = vmul.f32 0.03125, %v5679_v40 }
 0x45e   : > { %v5702_v2 = vadd.f32 1e-05, %v5696_v3  ;;  %v5701_v4 = vadd.f32 1e-05, %v5695_v53 }
 0x460   : > { %7263 = vrsqrt.f32 %v5702_v2 }
 0x461   : > { %7265 = vrsqrt.f32 %v5701_v4 }
 0x463   : > { %v5685_v61 = vpop.xlane.xlu1 %5684 }
 0x464   : > { %v5697_v15 = vmul.f32 0.03125, %v5685_v61 }
 0x466   : > { %v5703_v51 = vadd.f32 1e-05, %v5697_v15 }
 0x467   : > { %v5688_v16 = vpop.xlane.xlu0 %5687 }
 0x468   : > { %7267 = vrsqrt.f32 %v5703_v51  ;;  %v5698_v11 = vmul.f32 0.03125, %v5688_v16 }
 0x46a   : > { %v5704_v44 = vadd.f32 1e-05, %v5698_v11 }
 0x46c   : > { %v5694_v0 = vpop.xlane.xlu0 %5693  ;;  %v5691_v62 = vpop.xlane.xlu1 %5690  ;;  %7269 = vrsqrt.f32 %v5704_v44 }
 0x46d   : > { %v5700_v60 = vmul.f32 0.03125, %v5694_v0  ;;  %v5699_v8 = vmul.f32 0.03125, %v5691_v62  ;;  %v7264_v21 = vpop.eup %7263 }
 0x46e   : > { %v7266_v58 = vpop.eup %7265  ;;  %v5714_v47 = vmul.f32 %v7264_v21, %v5666_v35 }
 0x46f   : > { %v5706_v45 = vadd.f32 1e-05, %v5700_v60  ;;  %v5705_v42 = vadd.f32 1e-05, %v5699_v8  ;;  %v5713_v28 = vmul.f32 %v7266_v58, %v8720_v7  ;;  %v6387_v60 = vld [vmem:[%s8874_s9] ss:$0 sm:$0xff] }
 0x470   : > { %v5726_v52 = vmul.f32 %v6379_v17, %v5714_v47 }
 0x471   : > { %7271 = vrsqrt.f32 %v5706_v45  ;;  %v5725_v23 = vmul.f32 %v6379_v17, %v5713_v28 }
 0x472   : > { %7273 = vrsqrt.f32 %v5705_v42  ;;  %v8752_v26 = vadd.f32 %v6380_v48, %v5726_v52 }
 0x473   : > { %v8754_v29 = vadd.f32 %v6380_v48, %v5725_v23 }
 0x475   : > { %v7268_v39 = vpop.eup %7267  ;;  %v5743_v54 = vpack.c.bf16 %v8752_v26, %v8754_v29 }
 0x476   : > { %v5715_v6 = vmul.f32 %v7268_v39, %v8726_v32 }
 0x477   : > { %7071 = vmatmul.mubr.msk.bf16.vlgmr.msra.gmra.mxu0 %vm5607_vm10, %v5743_v54 }
 0x478   : > { %7074 = vmatprep.mubr.msk.bf16.mxu0 %vm7296_vm1, %v7295_v1  ;;  %v5727_v20 = vmul.f32 %v6379_v17, %v5715_v6 }
 0x479   : > { %v7270_v49 = vpop.eup %7269 }
 0x47a   : > { %v5716_v30 = vmul.f32 %v7270_v49, %v8730_v25  ;;  %v8763_v31 = vadd.f32 %v6380_v48, %v5727_v20  ;;  %v7261_v25 = vld [vmem:[%s8873_s8 + $0x8] sm:$0xff]  }
 0x47b   : > { %7083 = vmatpush3.bf16.msra.mxu1 %v7261_v25 }
 0x47c   : > { %v5728_v36 = vmul.f32 %v6379_v17, %v5716_v30  ;;  %7084 = vmatprep.subr.bf16.mxu1 %v7295_v1 }
 0x47e   : > { %v7272_v7 = vpop.eup %7271  ;;  %v8765_v9 = vadd.f32 %v6380_v48, %v5728_v36 }
 0x47f   : > { %v7274_v35 = vpop.eup %7273  ;;  %v5718_v12 = vmul.f32 %v7272_v7, %v5670_v56  ;;  %7085 = vmatpush3.bf16.msra.mxu1 %v7262_v34 }
 0x480   : > { %v5717_v37 = vmul.f32 %v7274_v35, %v5669_v19  ;;  %v5744_v24 = vpack.c.bf16 %v8765_v9, %v8763_v31 }
 0x481   : > { %v5730_v10 = vmul.f32 %v6379_v17, %v5718_v12 }
 0x482   : > { %v5729_v32 = vmul.f32 %v6379_v17, %v5717_v37  ;;  %7075 = vmatmul.mubr.msk.bf16.gmra.mxu0 %vm5607_vm10, %v5744_v24 }
 0x483   : > { %7078 = vmatprep.mubr.msk.bf16.mxu0 %vm7296_vm1, %v7295_v1  ;;  %v8774_v18 = vadd.f32 %v6380_v48, %v5730_v10 }
 0x484   : > { %v8772_v55 = vadd.f32 %v6380_v48, %v5729_v32 }
 0x486   : > { %v5745_v46 = vpack.c.bf16 %v8774_v18, %v8772_v55 }
 0x48a   : > { %7079 = vmatmul.mubr.msk.bf16.gmra.mxu0 %vm5607_vm10, %v5745_v46 }
 0x537   : > { %v5812_v41 = vpop.f32.mrf.mxu0 }
 0x538   : > { %v5813_v43 = vadd.f32 %v6381_v14, %v5812_v41 }
 0x539   : > { %v7072_v63 = vpop.f32.mrf.mxu0 }
 0x53a   : > { %v5835_v5 = vmax.f32 %v5813_v43, 0.0 }
 0x53b   : > { %v5815_v27 = vpop.f32.mrf.mxu0 }
 0x53c   : > { %v5816_v56 = vadd.f32 %v6381_v14, %v5815_v27 }
 0x53d   : > { %v7073_v19 = vpop.f32.mrf.mxu0 }
 0x53e   : > { %v5836_v22 = vmax.f32 %v5816_v56, 0.0 }
 0x540   : > { %v5841_v57 = vpack.c.bf16 %v5836_v22, %v5835_v5 }
 0x542   : > { %7087 = vmatmul.mubr.msk.bf16.vlgmr.msra.gmra.mxu1 %vm5607_vm10, %v5841_v57  ;;  %v5820_v33 = vpop.f32.mrf.mxu0 }
 0x543   : > { %7090 = vmatprep.mubr.msk.bf16.mxu1 %vm7296_vm1, %v7295_v1  ;;  %v5821_v13 = vadd.f32 %v6381_v14, %v5820_v33 }
 0x544   : > { %v7076_v38 = vpop.f32.mrf.mxu0 }
 0x545   : > { %v5837_v3 = vmax.f32 %v5821_v13, 0.0 }
 0x546   : > { %v5823_v59 = vpop.f32.mrf.mxu0 }
 0x547   : > { %v5824_v50 = vadd.f32 %v6381_v14, %v5823_v59 }
 0x548   : > { %v7077_v40 = vpop.f32.mrf.mxu0 }
 0x549   : > { %v5838_v53 = vmax.f32 %v5824_v50, 0.0 }
 0x54a   : > { %v5828_v2 = vpop.f32.mrf.mxu0 }
 0x54b   : > { %v5842_v4 = vpack.c.bf16 %v5838_v53, %v5837_v3  ;;  %v5829_v15 = vadd.f32 %v6381_v14, %v5828_v2 }
 0x54c   : > { %v7080_v61 = vpop.f32.mrf.mxu0 }
 0x54d   : > { %7091 = vmatmul.mubr.msk.bf16.gmra.mxu1 %vm5607_vm10, %v5842_v4  ;;  %v5839_v44 = vmax.f32 %v5829_v15, 0.0 }
 0x54e   : > { %v5831_v51 = vpop.f32.mrf.mxu0  ;;  %7094 = vmatprep.mubr.msk.bf16.mxu1 %vm7296_vm1, %v7295_v1 }
 0x54f   : > { %v5832_v16 = vadd.f32 %v6381_v14, %v5831_v51 }
 0x550   : > { %v7081_v11 = vpop.f32.mrf.mxu0 }
 0x551   : > { %v5840_v0 = vmax.f32 %v5832_v16, 0.0 }
 0x553   : > { %v5843_v62 = vpack.c.bf16 %v5840_v0, %v5839_v44 }
 0x555   : > { %7095 = vmatmul.mubr.msk.bf16.gmra.mxu1 %vm5607_vm10, %v5843_v62 }
 0x602   : > { %v5910_v8 = vpop.f32.mrf.mxu1 }
 0x603   : > { %v5911_v21 = vadd.f32 %v6387_v60, %v5910_v8 }
 0x604   : > { %v7088_v17 = vpop.f32.mrf.mxu1 }
 0x605   : > { %v5933_v58 = vadd.f32 %v5911_v21, %v8754_v29 }
 0x606   : > { %v5913_v47 = vpop.f32.mrf.mxu1 }
 0x607   : > { %v5914_v45 = vadd.f32 %v6387_v60, %v5913_v47  ;;  %v5941_v1 = vsel %vm5607_vm10, %v5933_v58, 0.0 }
 0x608   : > { %5942 = vadd.xlane.f32.xlu1 %v5941_v1  ;;  %v7089_v42 = vpop.f32.mrf.mxu1 }
 0x609   : > { %v5934_v28 = vadd.f32 %v5914_v45, %v8752_v26 }
 0x60b   : > { %v5944_v48 = vsel %vm5607_vm10, %v5934_v28, 0.0 }
 0x60c   : > { %5945 = vadd.xlane.f32.xlu0 %v5944_v48 }
 0x60d   : > { %v5918_v52 = vpop.f32.mrf.mxu1 }
 0x60e   : > { %v5919_v23 = vadd.f32 %v6387_v60, %v5918_v52 }
 0x60f   : > { %v7092_v39 = vpop.f32.mrf.mxu1 }
 0x610   : > { %v5935_v54 = vadd.f32 %v5919_v23, %v8763_v31  ;;  %v6394_v39 = vld [vmem:[%s8876_s11] ss:$0 sm:$0xff] }
 0x611   : > { %v5921_v6 = vpop.f32.mrf.mxu1 }
 0x612   : > { %v5922_v49 = vadd.f32 %v6387_v60, %v5921_v6  ;;  %v5947_v29 = vsel %vm5607_vm10, %v5935_v54, 0.0 }
 0x613   : > { %5948 = vadd.xlane.f32.xlu1 %v5947_v29  ;;  %v7093_v30 = vpop.f32.mrf.mxu1 }
 0x614   : > { %v5936_v20 = vadd.f32 %v5922_v49, %v8765_v9 }
 0x615   : > { %v5926_v36 = vpop.f32.mrf.mxu1 }
 0x616   : > { %v5927_v7 = vadd.f32 %v6387_v60, %v5926_v36  ;;  %v5950_v26 = vsel %vm5607_vm10, %v5936_v20, 0.0 }
 0x617   : > { %5951 = vadd.xlane.f32.xlu0 %v5950_v26  ;;  %v7096_v35 = vpop.f32.mrf.mxu1 }
 0x618   : > { %v5937_v12 = vadd.f32 %v5927_v7, %v8772_v55 }
 0x619   : > { %v5929_v37 = vpop.f32.mrf.mxu1 }
 0x61a   : > { %v5930_v24 = vadd.f32 %v6387_v60, %v5929_v37  ;;  %v5953_v31 = vsel %vm5607_vm10, %v5937_v12, 0.0 }
 0x61b   : > { %5954 = vadd.xlane.f32.xlu1 %v5953_v31  ;;  %v7097_v10 = vpop.f32.mrf.mxu1 }
 0x61c   : > { %v5938_v32 = vadd.f32 %v5930_v24, %v8774_v18 }
 0x61e   : > { %v5956_v46 = vsel %vm5607_vm10, %v5938_v32, 0.0 }
 0x61f   : > { %5957 = vadd.xlane.f32.xlu0 %v5956_v46 }
 0x691   : > { %v5943_v9 = vpop.xlane.xlu1 %5942 }
 0x692   : > { %v5959_v25 = vmul.f32 0.03125, %v5943_v9 }
 0x694   : > { %v5965_v34 = vsub.f32 %v5933_v58, %v5959_v25 }
 0x695   : > { %v5946_v14 = vpop.xlane.xlu0 %5945 }
 0x696   : > { %v5960_v41 = vmul.f32 0.03125, %v5946_v14  ;;  %v5971_v63 = vmul.f32 %v5965_v34, %v5965_v34 }
 0x698   : > { %v5966_v43 = vsub.f32 %v5934_v28, %v5960_v41  ;;  %v5977_v55 = vsel %vm5607_vm10, %v5971_v63, 0.0  ;;  %v6393_v28 = vld [vmem:[%s8875_s10] ss:$0 sm:$0xff] }
 0x699   : > { %5978 = vadd.xlane.f32.xlu1 %v5977_v55 }
 0x69a   : > { %v5972_v27 = vmul.f32 %v5966_v43, %v5966_v43 }
 0x69c   : > { %v5980_v56 = vsel %vm5607_vm10, %v5972_v27, 0.0  ;;  %v5949_v19 = vpop.xlane.xlu1 %5948 }
 0x69d   : > { %5981 = vadd.xlane.f32.xlu0 %v5980_v56  ;;  %v5961_v5 = vmul.f32 0.03125, %v5949_v19 }
 0x69f   : > { %v8813_v18 = vsub.f32 %v5935_v54, %v5961_v5 }
 0x6a0   : > { %v5952_v22 = vpop.xlane.xlu0 %5951 }
 0x6a1   : > { %v5962_v57 = vmul.f32 0.03125, %v5952_v22  ;;  %v5973_v33 = vmul.f32 %v8813_v18, %v8813_v18 }
 0x6a3   : > { %v8817_v38 = vsub.f32 %v5936_v20, %v5962_v57  ;;  %v5983_v13 = vsel %vm5607_vm10, %v5973_v33, 0.0 }
 0x6a4   : > { %5984 = vadd.xlane.f32.xlu1 %v5983_v13  ;;  %v5955_v59 = vpop.xlane.xlu1 %5954 }
 0x6a5   : > { %v5963_v50 = vmul.f32 0.03125, %v5955_v59  ;;  %v5974_v40 = vmul.f32 %v8817_v38, %v8817_v38 }
 0x6a7   : > { %v8822_v3 = vsub.f32 %v5937_v12, %v5963_v50  ;;  %v5986_v53 = vsel %vm5607_vm10, %v5974_v40, 0.0 }
 0x6a8   : > { %5987 = vadd.xlane.f32.xlu0 %v5986_v53  ;;  %v5958_v2 = vpop.xlane.xlu0 %5957 }
 0x6a9   : > { %v5964_v4 = vmul.f32 0.03125, %v5958_v2  ;;  %v5975_v61 = vmul.f32 %v8822_v3, %v8822_v3 }
 0x6ab   : > { %v8827_v15 = vsub.f32 %v5938_v32, %v5964_v4  ;;  %v5989_v51 = vsel %vm5607_vm10, %v5975_v61, 0.0 }
 0x6ac   : > { %5990 = vadd.xlane.f32.xlu1 %v5989_v51 }
 0x6ad   : > { %v5976_v16 = vmul.f32 %v8827_v15, %v8827_v15 }
 0x6af   : > { %v5992_v11 = vsel %vm5607_vm10, %v5976_v16, 0.0 }
 0x6b0   : > { %5993 = vadd.xlane.f32.xlu0 %v5992_v11 }
 0x722   : > { %v5979_v44 = vpop.xlane.xlu1 %5978 }
 0x723   : > { %v5995_v0 = vmul.f32 0.03125, %v5979_v44 }
 0x725   : > { %v6001_v62 = vadd.f32 1e-05, %v5995_v0 }
 0x726   : > { %v5982_v60 = vpop.xlane.xlu0 %5981 }
 0x727   : > { %7275 = vrsqrt.f32 %v6001_v62  ;;  %v5996_v8 = vmul.f32 0.03125, %v5982_v60 }
 0x729   : > { %v6002_v21 = vadd.f32 1e-05, %v5996_v8 }
 0x72b   : > { %7277 = vrsqrt.f32 %v6002_v21 }
 0x72d   : > { %v5985_v17 = vpop.xlane.xlu1 %5984 }
 0x72e   : > { %v5997_v58 = vmul.f32 0.03125, %v5985_v17 }
 0x730   : > { %v6003_v47 = vadd.f32 1e-05, %v5997_v58 }
 0x731   : > { %v5988_v45 = vpop.xlane.xlu0 %5987 }
 0x732   : > { %7279 = vrsqrt.f32 %v6003_v47  ;;  %v5998_v1 = vmul.f32 0.03125, %v5988_v45 }
 0x734   : > { %v7276_v42 = vpop.eup %7275  ;;  %v6004_v48 = vadd.f32 1e-05, %v5998_v1 }
 0x735   : > { %v6013_v52 = vmul.f32 %v7276_v42, %v5965_v34  ;;  %v5991_v23 = vpop.xlane.xlu1 %5990 }
 0x736   : > { %7281 = vrsqrt.f32 %v6004_v48  ;;  %v5999_v54 = vmul.f32 0.03125, %v5991_v23 }
 0x737   : > { %v6025_v6 = vmul.f32 %v6393_v28, %v6013_v52 }
 0x738   : > { %v7278_v49 = vpop.eup %7277  ;;  %v6005_v29 = vadd.f32 1e-05, %v5999_v54 }
 0x739   : > { %v6037_v30 = vadd.f32 %v6394_v39, %v6025_v6  ;;  %v6014_v20 = vmul.f32 %v7278_v49, %v5966_v43  ;;  %v5994_v36 = vpop.xlane.xlu0 %5993 }
 0x73a   : > { %7283 = vrsqrt.f32 %v6005_v29  ;;  %v6000_v7 = vmul.f32 0.03125, %v5994_v36 }
 0x73b   : > { %v6409_v26 = vpack.c.bf16 %v6037_v30, %v6037_v30  ;;  %v6026_v35 = vmul.f32 %v6393_v28, %v6014_v20 }
 0x73c   : > { %v6006_v12 = vadd.f32 1e-05, %v6000_v7 }
 0x73d   : > { %6068 = vst.msk [vmem:[%s8844_s18] sm:$0xf] %vm6067_vm11, %v6409_v26  ;;  %v6038_v37 = vadd.f32 %v6394_v39, %v6026_v35 }
 0x73e   : > { %7285 = vrsqrt.f32 %v6006_v12 }
 0x73f   : > { %v7280_v24 = vpop.eup %7279  ;;  %v6410_v31 = vpack.c.bf16 %v6038_v37, %v6038_v37 }
 0x740   : > { %v6015_v10 = vmul.f32 %v7280_v24, %v8813_v18 }
 0x741   : > { %6069 = vst.msk [vmem:[%s8844_s18 + $0x4] sm:$0xf] %vm6067_vm11, %v6410_v31 }
 0x742   : > { %v6027_v32 = vmul.f32 %v6393_v28, %v6015_v10 }
 0x743   : > { %v7282_v46 = vpop.eup %7281 }
 0x744   : > { %v6039_v9 = vadd.f32 %v6394_v39, %v6027_v32  ;;  %v6016_v25 = vmul.f32 %v7282_v46, %v8817_v38 }
 0x746   : > { %v6411_v34 = vpack.c.bf16 %v6039_v9, %v6039_v9  ;;  %v6028_v14 = vmul.f32 %v6393_v28, %v6016_v25 }
 0x747   : > { %v7284_v41 = vpop.eup %7283 }
 0x748   : > { %6070 = vst.msk [vmem:[%s8844_s18 + $0x8] sm:$0xf] %vm6067_vm11, %v6411_v34  ;;  %v6040_v63 = vadd.f32 %v6394_v39, %v6028_v14  ;;  %v6017_v43 = vmul.f32 %v7284_v41, %v8822_v3 }
 0x74a   : > { %v6412_v55 = vpack.c.bf16 %v6040_v63, %v6040_v63  ;;  %v6029_v27 = vmul.f32 %v6393_v28, %v6017_v43 }
 0x74b   : > { %v7286_v56 = vpop.eup %7285 }
 0x74c   : > { %6071 = vst.msk [vmem:[%s8844_s18 + $0xc] sm:$0xf] %vm6067_vm11, %v6412_v55  ;;  %v6041_v19 = vadd.f32 %v6394_v39, %v6029_v27  ;;  %v6018_v5 = vmul.f32 %v7286_v56, %v8827_v15 }
 0x74e   : > { %v6413_v18 = vpack.c.bf16 %v6041_v19, %v6041_v19  ;;  %v6030_v22 = vmul.f32 %v6393_v28, %v6018_v5 }
 0x750   : > { %6072 = vst.msk [vmem:[%s8844_s18 + $0x10] sm:$0xf] %vm6067_vm11, %v6413_v18  ;;  %v6042_v57 = vadd.f32 %v6394_v39, %v6030_v22 }
 0x752   : > { %v6414_v33 = vpack.c.bf16 %v6042_v57, %v6042_v57 }
 0x754   : > { %6073 = vst.msk [vmem:[%s8844_s18 + $0x14] sm:$0xf] %vm6067_vm11, %v6414_v33 }
 0x755 PF: > { %s22_s21 = sadd.s32 1, %s7293_s21  }
 0x756   : > { %p19_p7 = scmp.ge.s32.totalorder %s22_s21, 7  }
 0x758   :  { %21 = sbr.rel (!%p19_p7) target bundleno = 1 (0x1), region = 101 }

</bundles_post_ra>
